<compile_context>
chip_gen: v7x
topology: tpu7x:2x2x1
jax: 0.10.0
libtpu: 0.0.40
codegen_flags: <defaults>
</compile_context>

<pallas_src>
import functools

import jax
import jax.numpy as jnp
from jax import lax
from jax.experimental import pallas as pl
from jax.experimental.pallas import tpu as pltpu


# ----------------------------------------------------------------------------
# helpers
# ----------------------------------------------------------------------------
def _pick_tile(n, cap, mult=8):
    """Largest divisor of n that is <= cap (preferring multiples of `mult`)."""
    if n <= cap:
        return n
    for d in range(cap, 0, -1):
        if n % d == 0 and d % mult == 0:
            return d
    for d in range(cap, 0, -1):
        if n % d == 0:
            return d
    return n


def _vmem_limit(est_bytes):
    # generous margin, floor 16 MiB, cap 48 MiB (fits v7x's 64 MiB physical VMEM)
    return int(min(max(4 * est_bytes, 16 * 1024 * 1024), 48 * 1024 * 1024))


# ----------------------------------------------------------------------------
# Fused 3x3 conv kernel: (optional multi-input "concat") -> bias -> ReLU
#                         -> (optional fused 1x1 head)
# Activation layout: (N, H, C, W)  (lanes = W, sublanes = C)
# ----------------------------------------------------------------------------
def _conv3x3_kernel(*refs, n_in, th, relu, fuse_head):
    x_refs = refs[:n_in]                       # each (1, Hp, Cin_k, Wp) bf16
    w_refs = refs[n_in:2 * n_in]               # each (9, Cout, Cin_k)   bf16
    b_ref = refs[2 * n_in]                     # (Cout, 1) f32
    if fuse_head:
        hw_ref = refs[2 * n_in + 1]            # (1, Cout) f32
        hb_ref = refs[2 * n_in + 2]            # (1, 1)    f32
        o_ref = refs[2 * n_in + 3]             # (1, th, 1, W) f32
    else:
        o_ref = refs[2 * n_in + 1]             # (1, th, Cout, W) bf16

    i = pl.program_id(1)
    h0 = i * th                                # first padded input row of this tile
    cout = b_ref.shape[0]
    w_out = o_ref.shape[3]
    bias = b_ref[...].astype(jnp.float32)      # (Cout, 1), hoisted out of the loop

    def row_body(r, carry):
        acc = jnp.zeros((cout, w_out), jnp.float32)
        for k in range(n_in):
            xk = x_refs[k]
            wk = w_refs[k]
            for dy in range(3):
                xrow = xk[0, h0 + r + dy, :, :]            # (Cin_k, W+2) bf16
                for dx in range(3):
                    acc += jnp.dot(wk[3 * dy + dx], xrow[:, dx:dx + w_out],
                                   preferred_element_type=jnp.float32)
        acc = acc + bias
        if relu:
            acc = jnp.maximum(acc, 0.0)
        if fuse_head:
            out_row = jnp.dot(hw_ref[...], acc,
                              preferred_element_type=jnp.float32) + hb_ref[...]
        else:
            out_row = acc
        o_ref[0, r, :, :] = out_row.astype(o_ref.dtype)
        return carry

    lax.fori_loop(0, th, row_body, 0)


def conv3x3_block(xs, w_full, b, *, relu=True, head=None):
    """Fused (concat ->) 3x3 same conv -> bias -> [ReLU] -> [1x1 head].

    xs:     list of (N, H, Cin_k, W) activations (the would-be concat inputs).
    w_full: (3, 3, sum(Cin_k), Cout) f32 weight (HWIO over the virtual concat).
    b:      (Cout,) f32 bias.
    head:   optional (head_w (1,1,Cout,1), head_b (1,)); if given, the kernel
            emits only the 1-channel f32 logits (the pre-head activation never
            touches HBM).
    """
    n, hh, _, ww = xs[0].shape
    cin_list = [int(x.shape[2]) for x in xs]
    cout = int(w_full.shape[-1])

    # per-branch weights in kernel layout (tap, Cout, Cin_k), bf16
    w_list = []
    off = 0
    for c in cin_list:
        wk = w_full[:, :, off:off + c, :]                        # (3,3,c,Cout)
        wk = jnp.transpose(wk, (0, 1, 3, 2)).reshape(9, cout, c)
        w_list.append(wk.astype(jnp.bfloat16))
        off += c
    b2 = b.reshape(cout, 1).astype(jnp.float32)

    # spatial halo of 1, bf16 operands
    xs_p = [jnp.pad(x.astype(jnp.bfloat16), ((0, 0), (1, 1), (0, 0), (1, 1)))
            for x in xs]
    hp, wp = hh + 2, ww + 2

    fuse = head is not None
    if fuse:
        hw = head[0].reshape(1, cout).astype(jnp.float32)
        hb = head[1].reshape(1, 1).astype(jnp.float32)
        out_c, out_dtype = 1, jnp.float32
    else:
        out_c, out_dtype = cout, jnp.bfloat16

    th = _pick_tile(hh, 64)                    # output rows per grid step
    grid = (n, hh // th)

    in_specs = []
    for c in cin_list:
        in_specs.append(pl.BlockSpec((1, hp, c, wp), lambda ni, ii: (ni, 0, 0, 0)))
    for wk in w_list:
        in_specs.append(pl.BlockSpec(wk.shape, lambda ni, ii: (0, 0, 0)))
    in_specs.append(pl.BlockSpec((cout, 1), lambda ni, ii: (0, 0)))
    args = list(xs_p) + w_list + [b2]
    if fuse:
        in_specs.append(pl.BlockSpec((1, cout), lambda ni, ii: (0, 0)))
        in_specs.append(pl.BlockSpec((1, 1), lambda ni, ii: (0, 0)))
        args += [hw, hb]

    out_specs = pl.BlockSpec((1, th, out_c, ww), lambda ni, ii: (ni, ii, 0, 0))
    out_shape = jax.ShapeDtypeStruct((n, hh, out_c, ww), out_dtype)

    # VMEM budget: double-buffered resident padded inputs + weights + output tile
    est = sum(2 * c * hp * wp * 2 for c in cin_list)
    est += sum(int(wk.size) * 2 for wk in w_list) + cout * 4
    est += 2 * out_c * th * ww * (4 if fuse else 2) + cout * ww * 4

    flops = 2 * n * hh * ww * 9 * sum(cin_list) * cout
    if fuse:
        flops += 2 * n * hh * ww * cout
    bytes_accessed = (sum(int(x.size) for x in xs_p) * 2
                      + sum(int(wk.size) for wk in w_list) * 2
                      + n * out_c * hh * ww * (4 if fuse else 2))

    kernel = functools.partial(_conv3x3_kernel, n_in=len(xs), th=th,
                               relu=relu, fuse_head=fuse)
    return pl.pallas_call(
        kernel,
        out_shape=out_shape,
        grid=grid,
        in_specs=in_specs,
        out_specs=out_specs,
        compiler_params=pltpu.CompilerParams(
            dimension_semantics=("parallel", "parallel"),
            vmem_limit_bytes=_vmem_limit(est)),
        cost_estimate=pl.CostEstimate(flops=int(flops), transcendentals=0,
                                      bytes_accessed=int(bytes_accessed)),
    )(*args)


# ----------------------------------------------------------------------------
# Dice + Focal(gamma=3) loss: tiled reduction kernel with SMEM accumulator
# ----------------------------------------------------------------------------
def _loss_stats_kernel(z_ref, y_ref, o_ref, acc_ref):
    @pl.when(pl.program_id(0) == 0)
    def _init():
        for j in range(4):
            acc_ref[j] = jnp.float32(0.0)

    z = z_ref[...].astype(jnp.float32)
    y = y_ref[...].astype(jnp.float32)
    p = 1.0 / (1.0 + jnp.exp(-z))                              # sigmoid
    bce = jnp.maximum(z, 0.0) - z * y + jnp.log1p(jnp.exp(-jnp.abs(z)))
    pt = jnp.exp(-bce)
    focal = ((1.0 - pt) ** 3) * bce                            # gamma = 3

    acc_ref[0] = acc_ref[0] + jnp.sum(p * y)                   # intersection
    acc_ref[1] = acc_ref[1] + jnp.sum(p)
    acc_ref[2] = acc_ref[2] + jnp.sum(y)
    acc_ref[3] = acc_ref[3] + jnp.sum(focal)

    @pl.when(pl.program_id(0) == pl.num_programs(0) - 1)
    def _finalize():
        for j in range(4):
            o_ref[j] = acc_ref[j]


def dice_focal_loss_pallas(logits_nchw, mask_nchw):
    n, _, hh, ww = logits_nchw.shape
    rows = n * hh
    z = logits_nchw.reshape(rows, ww).astype(jnp.float32)      # free reshape
    y = mask_nchw.reshape(rows, ww).astype(jnp.float32)

    cap = max(8, (2 * 1024 * 1024) // (4 * ww))                # ~2 MiB / operand / step
    tr = _pick_tile(rows, cap)
    grid = (rows // tr,)

    est = 2 * 2 * tr * ww * 4
    stats = pl.pallas_call(
        _loss_stats_kernel,
        out_shape=jax.ShapeDtypeStruct((4,), jnp.float32),
        grid=grid,
        in_specs=[pl.BlockSpec((tr, ww), lambda i: (i, 0)),
                  pl.BlockSpec((tr, ww), lambda i: (i, 0))],
        out_specs=pl.BlockSpec((4,), lambda i: (0,),
                               memory_space=pltpu.MemorySpace.SMEM),
        scratch_shapes=[pltpu.SMEM((4,), jnp.float32)],
        compiler_params=pltpu.CompilerParams(
            dimension_semantics=("arbitrary",),
            vmem_limit_bytes=_vmem_limit(est)),
        cost_estimate=pl.CostEstimate(flops=int(12 * rows * ww),
                                      transcendentals=int(3 * rows * ww),
                                      bytes_accessed=int(2 * rows * ww * 4 + 16)),
    )(z, y)

    inter, sum_p, sum_y, sum_focal = stats[0], stats[1], stats[2], stats[3]
    eps = 1e-7
    dice_loss = jnp.where(sum_y > 0.0,
                          1.0 - (2.0 * inter) / jnp.maximum(sum_p + sum_y, eps),
                          0.0)
    focal_loss = sum_focal / float(rows * ww)
    return dice_loss + focal_loss


# ----------------------------------------------------------------------------
# Simplified UNet++ (nested skip connections, depth 3), layout (N, H, C, W)
# ----------------------------------------------------------------------------
def _maxpool2x2(x):                                   # glue
    n, h, c, w = x.shape
    return jnp.max(x.reshape(n, h // 2, 2, c, w // 2, 2), axis=(2, 5))


def _upsample2x(x):                                   # nearest-neighbor, glue
    return jnp.repeat(jnp.repeat(x, 2, axis=1), 2, axis=3)


def _init_conv(key, k, cin, cout):
    fan_in = k * k * cin
    w = jax.random.normal(key, (k, k, cin, cout), jnp.float32) * jnp.sqrt(2.0 / fan_in)
    b = jnp.zeros((cout,), jnp.float32)
    return w, b


def init_params(key):
    c0, c1, c2 = 8, 16, 32
    ks = jax.random.split(key, 7)
    return {
        "enc0":  _init_conv(ks[0], 3, 3, c0),
        "enc1":  _init_conv(ks[1], 3, c0, c1),
        "enc2":  _init_conv(ks[2], 3, c1, c2),
        "dec01": _init_conv(ks[3], 3, c0 + c1, c0),
        "dec11": _init_conv(ks[4], 3, c1 + c2, c1),
        "dec02": _init_conv(ks[5], 3, c0 + c0 + c1, c0),
        "head":  _init_conv(ks[6], 1, c0, 1),
    }


def segmentation_forward(params, images_nchw, mask_nchw=None):
    """Mirrors SegmentationModel.forward: logits, or (logits, dice+focal)."""
    # NCHW -> (N, H, C, W) bf16 (lanes = W); only transpose in the whole model.
    x = jnp.transpose(images_nchw, (0, 2, 1, 3)).astype(jnp.bfloat16)

    # encoder
    x00 = conv3x3_block([x], *params["enc0"])                          # H
    x10 = conv3x3_block([_maxpool2x2(x00)], *params["enc1"])           # H/2
    x20 = conv3x3_block([_maxpool2x2(x10)], *params["enc2"])           # H/4

    # nested (UNet++) decoder; the concat is fused into the conv kernels
    x01 = conv3x3_block([x00, _upsample2x(x10)], *params["dec01"])
    x11 = conv3x3_block([x10, _upsample2x(x20)], *params["dec11"])

    # dec02 conv + ReLU + 1x1 head fused in one kernel -> (N, H, 1, W) f32
    logits_nhcw = conv3x3_block([x00, x01, _upsample2x(x11)],
                                *params["dec02"], head=params["head"])

    # (N, H, 1, W) -> (N, 1, H, W) is a pure (free) reshape, not a transpose.
    logits = logits_nhcw.reshape(images_nchw.shape[0], 1,
                                 images_nchw.shape[2], images_nchw.shape[3])

    if mask_nchw is None:
        return logits
    loss = dice_focal_loss_pallas(logits, mask_nchw)
    return logits, loss


# ----------------------------------------------------------------------------
if __name__ == "__main__":
    key = jax.random.PRNGKey(0)
    k_img, k_mask, k_par = jax.random.split(key, 3)

    images = jax.random.normal(k_img, (2, 3, 16, 16), jnp.float32)       # NCHW
    mask = (jax.random.uniform(k_mask, (2, 1, 16, 16)) > 0.5).astype(jnp.float32)
    params = init_params(k_par)

    fwd = jax.jit(lambda p, im: segmentation_forward(p, im))
    fwd_loss = jax.jit(lambda p, im, m: segmentation_forward(p, im, m))

    logits = fwd(params, images)
    jax.block_until_ready(logits)
    assert logits.shape == (2, 1, 16, 16), logits.shape

    logits2, loss = fwd_loss(params, images, mask)
    jax.block_until_ready((logits2, loss))
    assert logits2.shape == (2, 1, 16, 16)
    assert loss.shape == ()
    assert bool(jnp.isfinite(loss))

    print("KERNEL_OK")
</pallas_src>

<mosaic_0001>
module attributes {stable_mosaic.version = 11 : i64} {
  func.func @_conv3x3_kernel(%arg0: i32, %arg1: i32, %arg2: memref<1x18x3x18xbf16, #tpu.memory_space<vmem>>, %arg3: memref<9x8x3xbf16, #tpu.memory_space<vmem>>, %arg4: memref<8x1xf32, #tpu.memory_space<vmem>>, %arg5: memref<1x16x8x16xbf16, #tpu.memory_space<vmem>>) attributes {dimension_semantics = [#tpu.dimension_semantics<parallel>, #tpu.dimension_semantics<parallel>], iteration_bounds = array<i64: 2, 1>, scalar_prefetch = 0 : i64, scratch_operands = 0 : i64, tpu.core_type = #tpu.core_type<tc>, window_params = [{transform_indices = @transform_0, window_bounds = array<i64: 1, 18, 3, 18>}, {pipeline_mode = #tpu.pipeline_mode<synchronous>, transform_indices = @transform_1, window_bounds = array<i64: 9, 8, 3>}, {pipeline_mode = #tpu.pipeline_mode<synchronous>, transform_indices = @transform_2, window_bounds = array<i64: 8, 1>}, {transform_indices = @transform_3, window_bounds = array<i64: 1, 16, 8, 16>}]} {
    %c16_i32 = arith.constant 16 : i32
    %0 = arith.muli %arg1, %c16_i32 : i32
    %c0 = arith.constant 0 : index
    %c0_0 = arith.constant 0 : index
    %1 = vector.load %arg4[%c0, %c0_0] : memref<8x1xf32, #tpu.memory_space<vmem>>, vector<8x1xf32>
    %c0_i32 = arith.constant 0 : i32
    %c16_i32_1 = arith.constant 16 : i32
    %2 = arith.addi %c0_i32, %c16_i32_1 : i32
    %c1_i32 = arith.constant 1 : i32
    scf.for %arg6 = %c0_i32 to %2 step %c1_i32  : i32 {
      %cst = arith.constant 0.000000e+00 : f32
      %3 = vector.broadcast %cst : f32 to vector<8x16xf32>
      %4 = arith.addi %0, %arg6 : i32
      %c0_i32_3 = arith.constant 0 : i32
      %5 = arith.addi %4, %c0_i32_3 : i32
      %c0_4 = arith.constant 0 : index
      %6 = arith.index_cast %5 : i32 to index
      %c0_5 = arith.constant 0 : index
      %c0_6 = arith.constant 0 : index
      %7 = vector.load %arg2[%c0_4, %6, %c0_5, %c0_6] : memref<1x18x3x18xbf16, #tpu.memory_space<vmem>>, vector<1x1x3x18xbf16>
      %8 = vector.shape_cast %7 : vector<1x1x3x18xbf16> to vector<3x18xbf16>
      %c0_7 = arith.constant 0 : index
      %c0_8 = arith.constant 0 : index
      %c0_9 = arith.constant 0 : index
      %9 = vector.load %arg3[%c0_7, %c0_8, %c0_9] : memref<9x8x3xbf16, #tpu.memory_space<vmem>>, vector<1x8x3xbf16>
      %10 = vector.shape_cast %9 : vector<1x8x3xbf16> to vector<8x3xbf16>
      %11 = vector.extract_strided_slice %8 {offsets = [0, 0], sizes = [3, 16], strides = [1, 1]} : vector<3x18xbf16> to vector<3x16xbf16>
      %cst_10 = arith.constant dense<0.000000e+00> : vector<8x16xf32>
      %12 = tpu.matmul %10, %11, %cst_10 {dimension_numbers = #tpu.dot_dimension_numbers<[1], [0], [0], [1], [0, 0, 1, 1], [], []>} : vector<8x3xbf16>, vector<3x16xbf16>, vector<8x16xf32> -> vector<8x16xf32>
      %13 = arith.addf %3, %12 : vector<8x16xf32>
      %c1 = arith.constant 1 : index
      %c0_11 = arith.constant 0 : index
      %c0_12 = arith.constant 0 : index
      %14 = vector.load %arg3[%c1, %c0_11, %c0_12] : memref<9x8x3xbf16, #tpu.memory_space<vmem>>, vector<1x8x3xbf16>
      %15 = vector.shape_cast %14 : vector<1x8x3xbf16> to vector<8x3xbf16>
      %16 = vector.extract_strided_slice %8 {offsets = [0, 1], sizes = [3, 16], strides = [1, 1]} : vector<3x18xbf16> to vector<3x16xbf16>
      %cst_13 = arith.constant dense<0.000000e+00> : vector<8x16xf32>
      %17 = tpu.matmul %15, %16, %cst_13 {dimension_numbers = #tpu.dot_dimension_numbers<[1], [0], [0], [1], [0, 0, 1, 1], [], []>} : vector<8x3xbf16>, vector<3x16xbf16>, vector<8x16xf32> -> vector<8x16xf32>
      %18 = arith.addf %13, %17 : vector<8x16xf32>
      %c2 = arith.constant 2 : index
      %c0_14 = arith.constant 0 : index
      %c0_15 = arith.constant 0 : index
      %19 = vector.load %arg3[%c2, %c0_14, %c0_15] : memref<9x8x3xbf16, #tpu.memory_space<vmem>>, vector<1x8x3xbf16>
      %20 = vector.shape_cast %19 : vector<1x8x3xbf16> to vector<8x3xbf16>
      %21 = vector.extract_strided_slice %8 {offsets = [0, 2], sizes = [3, 16], strides = [1, 1]} : vector<3x18xbf16> to vector<3x16xbf16>
      %cst_16 = arith.constant dense<0.000000e+00> : vector<8x16xf32>
      %22 = tpu.matmul %20, %21, %cst_16 {dimension_numbers = #tpu.dot_dimension_numbers<[1], [0], [0], [1], [0, 0, 1, 1], [], []>} : vector<8x3xbf16>, vector<3x16xbf16>, vector<8x16xf32> -> vector<8x16xf32>
      %23 = arith.addf %18, %22 : vector<8x16xf32>
      %24 = arith.addi %0, %arg6 : i32
      %c1_i32_17 = arith.constant 1 : i32
      %25 = arith.addi %24, %c1_i32_17 : i32
      %c0_18 = arith.constant 0 : index
      %26 = arith.index_cast %25 : i32 to index
      %c0_19 = arith.constant 0 : index
      %c0_20 = arith.constant 0 : index
      %27 = vector.load %arg2[%c0_18, %26, %c0_19, %c0_20] : memref<1x18x3x18xbf16, #tpu.memory_space<vmem>>, vector<1x1x3x18xbf16>
      %28 = vector.shape_cast %27 : vector<1x1x3x18xbf16> to vector<3x18xbf16>
      %c3 = arith.constant 3 : index
      %c0_21 = arith.constant 0 : index
      %c0_22 = arith.constant 0 : index
      %29 = vector.load %arg3[%c3, %c0_21, %c0_22] : memref<9x8x3xbf16, #tpu.memory_space<vmem>>, vector<1x8x3xbf16>
      %30 = vector.shape_cast %29 : vector<1x8x3xbf16> to vector<8x3xbf16>
      %31 = vector.extract_strided_slice %28 {offsets = [0, 0], sizes = [3, 16], strides = [1, 1]} : vector<3x18xbf16> to vector<3x16xbf16>
      %cst_23 = arith.constant dense<0.000000e+00> : vector<8x16xf32>
      %32 = tpu.matmul %30, %31, %cst_23 {dimension_numbers = #tpu.dot_dimension_numbers<[1], [0], [0], [1], [0, 0, 1, 1], [], []>} : vector<8x3xbf16>, vector<3x16xbf16>, vector<8x16xf32> -> vector<8x16xf32>
      %33 = arith.addf %23, %32 : vector<8x16xf32>
      %c4 = arith.constant 4 : index
      %c0_24 = arith.constant 0 : index
      %c0_25 = arith.constant 0 : index
      %34 = vector.load %arg3[%c4, %c0_24, %c0_25] : memref<9x8x3xbf16, #tpu.memory_space<vmem>>, vector<1x8x3xbf16>
      %35 = vector.shape_cast %34 : vector<1x8x3xbf16> to vector<8x3xbf16>
      %36 = vector.extract_strided_slice %28 {offsets = [0, 1], sizes = [3, 16], strides = [1, 1]} : vector<3x18xbf16> to vector<3x16xbf16>
      %cst_26 = arith.constant dense<0.000000e+00> : vector<8x16xf32>
      %37 = tpu.matmul %35, %36, %cst_26 {dimension_numbers = #tpu.dot_dimension_numbers<[1], [0], [0], [1], [0, 0, 1, 1], [], []>} : vector<8x3xbf16>, vector<3x16xbf16>, vector<8x16xf32> -> vector<8x16xf32>
      %38 = arith.addf %33, %37 : vector<8x16xf32>
      %c5 = arith.constant 5 : index
      %c0_27 = arith.constant 0 : index
      %c0_28 = arith.constant 0 : index
      %39 = vector.load %arg3[%c5, %c0_27, %c0_28] : memref<9x8x3xbf16, #tpu.memory_space<vmem>>, vector<1x8x3xbf16>
      %40 = vector.shape_cast %39 : vector<1x8x3xbf16> to vector<8x3xbf16>
      %41 = vector.extract_strided_slice %28 {offsets = [0, 2], sizes = [3, 16], strides = [1, 1]} : vector<3x18xbf16> to vector<3x16xbf16>
      %cst_29 = arith.constant dense<0.000000e+00> : vector<8x16xf32>
      %42 = tpu.matmul %40, %41, %cst_29 {dimension_numbers = #tpu.dot_dimension_numbers<[1], [0], [0], [1], [0, 0, 1, 1], [], []>} : vector<8x3xbf16>, vector<3x16xbf16>, vector<8x16xf32> -> vector<8x16xf32>
      %43 = arith.addf %38, %42 : vector<8x16xf32>
      %44 = arith.addi %0, %arg6 : i32
      %c2_i32 = arith.constant 2 : i32
      %45 = arith.addi %44, %c2_i32 : i32
      %c0_30 = arith.constant 0 : index
      %46 = arith.index_cast %45 : i32 to index
      %c0_31 = arith.constant 0 : index
      %c0_32 = arith.constant 0 : index
      %47 = vector.load %arg2[%c0_30, %46, %c0_31, %c0_32] : memref<1x18x3x18xbf16, #tpu.memory_space<vmem>>, vector<1x1x3x18xbf16>
      %48 = vector.shape_cast %47 : vector<1x1x3x18xbf16> to vector<3x18xbf16>
      %c6 = arith.constant 6 : index
      %c0_33 = arith.constant 0 : index
      %c0_34 = arith.constant 0 : index
      %49 = vector.load %arg3[%c6, %c0_33, %c0_34] : memref<9x8x3xbf16, #tpu.memory_space<vmem>>, vector<1x8x3xbf16>
      %50 = vector.shape_cast %49 : vector<1x8x3xbf16> to vector<8x3xbf16>
      %51 = vector.extract_strided_slice %48 {offsets = [0, 0], sizes = [3, 16], strides = [1, 1]} : vector<3x18xbf16> to vector<3x16xbf16>
      %cst_35 = arith.constant dense<0.000000e+00> : vector<8x16xf32>
      %52 = tpu.matmul %50, %51, %cst_35 {dimension_numbers = #tpu.dot_dimension_numbers<[1], [0], [0], [1], [0, 0, 1, 1], [], []>} : vector<8x3xbf16>, vector<3x16xbf16>, vector<8x16xf32> -> vector<8x16xf32>
      %53 = arith.addf %43, %52 : vector<8x16xf32>
      %c7 = arith.constant 7 : index
      %c0_36 = arith.constant 0 : index
      %c0_37 = arith.constant 0 : index
      %54 = vector.load %arg3[%c7, %c0_36, %c0_37] : memref<9x8x3xbf16, #tpu.memory_space<vmem>>, vector<1x8x3xbf16>
      %55 = vector.shape_cast %54 : vector<1x8x3xbf16> to vector<8x3xbf16>
      %56 = vector.extract_strided_slice %48 {offsets = [0, 1], sizes = [3, 16], strides = [1, 1]} : vector<3x18xbf16> to vector<3x16xbf16>
      %cst_38 = arith.constant dense<0.000000e+00> : vector<8x16xf32>
      %57 = tpu.matmul %55, %56, %cst_38 {dimension_numbers = #tpu.dot_dimension_numbers<[1], [0], [0], [1], [0, 0, 1, 1], [], []>} : vector<8x3xbf16>, vector<3x16xbf16>, vector<8x16xf32> -> vector<8x16xf32>
      %58 = arith.addf %53, %57 : vector<8x16xf32>
      %c8 = arith.constant 8 : index
      %c0_39 = arith.constant 0 : index
      %c0_40 = arith.constant 0 : index
      %59 = vector.load %arg3[%c8, %c0_39, %c0_40] : memref<9x8x3xbf16, #tpu.memory_space<vmem>>, vector<1x8x3xbf16>
      %60 = vector.shape_cast %59 : vector<1x8x3xbf16> to vector<8x3xbf16>
      %61 = vector.extract_strided_slice %48 {offsets = [0, 2], sizes = [3, 16], strides = [1, 1]} : vector<3x18xbf16> to vector<3x16xbf16>
      %cst_41 = arith.constant dense<0.000000e+00> : vector<8x16xf32>
      %62 = tpu.matmul %60, %61, %cst_41 {dimension_numbers = #tpu.dot_dimension_numbers<[1], [0], [0], [1], [0, 0, 1, 1], [], []>} : vector<8x3xbf16>, vector<3x16xbf16>, vector<8x16xf32> -> vector<8x16xf32>
      %63 = arith.addf %58, %62 : vector<8x16xf32>
      %64 = vector.broadcast %1 : vector<8x1xf32> to vector<8x16xf32>
      %65 = arith.addf %63, %64 : vector<8x16xf32>
      %cst_42 = arith.constant 0.000000e+00 : f32
      %66 = vector.broadcast %cst_42 : f32 to vector<8x16xf32>
      %67 = arith.maximumf %65, %66 : vector<8x16xf32>
      %68 = arith.truncf %67 : vector<8x16xf32> to vector<8x16xbf16>
      %c0_43 = arith.constant 0 : index
      %69 = arith.index_cast %arg6 : i32 to index
      %c0_44 = arith.constant 0 : index
      %c0_45 = arith.constant 0 : index
      %70 = vector.load %arg5[%c0_43, %69, %c0_44, %c0_45] : memref<1x16x8x16xbf16, #tpu.memory_space<vmem>>, vector<1x1x8x16xbf16>
      %71 = vector.shape_cast %70 : vector<1x1x8x16xbf16> to vector<8x16xbf16>
      %72 = vector.shape_cast %68 : vector<8x16xbf16> to vector<1x1x8x16xbf16>
      tpu.vector_store %arg5[%c0_43, %69, %c0_44, %c0_45], %72 {strides = array<i32>} : memref<1x16x8x16xbf16, #tpu.memory_space<vmem>>, vector<1x1x8x16xbf16>,
    }
    %c16_i32_2 = arith.constant 16 : i32
    return
  }
  func.func @transform_0(%arg0: i32, %arg1: i32) -> (i32, i32, i32, i32) {
    %c0_i32 = arith.constant 0 : i32
    %c0_i32_0 = arith.constant 0 : i32
    %c0_i32_1 = arith.constant 0 : i32
    %c0_i32_2 = arith.constant 0 : i32
    return %arg0, %c0_i32, %c0_i32_0, %c0_i32_1 : i32, i32, i32, i32
  }
  func.func @transform_1(%arg0: i32, %arg1: i32) -> (i32, i32, i32) {
    %c0_i32 = arith.constant 0 : i32
    %c0_i32_0 = arith.constant 0 : i32
    %c0_i32_1 = arith.constant 0 : i32
    %c0_i32_2 = arith.constant 0 : i32
    return %c0_i32, %c0_i32_0, %c0_i32_1 : i32, i32, i32
  }
  func.func @transform_2(%arg0: i32, %arg1: i32) -> (i32, i32) {
    %c0_i32 = arith.constant 0 : i32
    %c0_i32_0 = arith.constant 0 : i32
    %c0_i32_1 = arith.constant 0 : i32
    return %c0_i32, %c0_i32_0 : i32, i32
  }
  func.func @transform_3(%arg0: i32, %arg1: i32) -> (i32, i32, i32, i32) {
    %c0_i32 = arith.constant 0 : i32
    %c0_i32_0 = arith.constant 0 : i32
    %c0_i32_1 = arith.constant 0 : i32
    return %arg0, %arg1, %c0_i32, %c0_i32_0 : i32, i32, i32, i32
  }
}

module attributes {stable_mosaic.version = 11 : i64} {
  func.func @_conv3x3_kernel(%arg0: i32, %arg1: i32, %arg2: memref<1x10x8x10xbf16, #tpu.memory_space<vmem>>, %arg3: memref<9x16x8xbf16, #tpu.memory_space<vmem>>, %arg4: memref<16x1xf32, #tpu.memory_space<vmem>>, %arg5: memref<1x8x16x8xbf16, #tpu.memory_space<vmem>>) attributes {dimension_semantics = [#tpu.dimension_semantics<parallel>, #tpu.dimension_semantics<parallel>], iteration_bounds = array<i64: 2, 1>, scalar_prefetch = 0 : i64, scratch_operands = 0 : i64, tpu.core_type = #tpu.core_type<tc>, window_params = [{transform_indices = @transform_0, window_bounds = array<i64: 1, 10, 8, 10>}, {pipeline_mode = #tpu.pipeline_mode<synchronous>, transform_indices = @transform_1, window_bounds = array<i64: 9, 16, 8>}, {pipeline_mode = #tpu.pipeline_mode<synchronous>, transform_indices = @transform_2, window_bounds = array<i64: 16, 1>}, {transform_indices = @transform_3, window_bounds = array<i64: 1, 8, 16, 8>}]} {
    %c8_i32 = arith.constant 8 : i32
    %0 = arith.muli %arg1, %c8_i32 : i32
    %c0 = arith.constant 0 : index
    %c0_0 = arith.constant 0 : index
    %1 = vector.load %arg4[%c0, %c0_0] : memref<16x1xf32, #tpu.memory_space<vmem>>, vector<16x1xf32>
    %c0_i32 = arith.constant 0 : i32
    %c8_i32_1 = arith.constant 8 : i32
    %2 = arith.addi %c0_i32, %c8_i32_1 : i32
    %c1_i32 = arith.constant 1 : i32
    scf.for %arg6 = %c0_i32 to %2 step %c1_i32  : i32 {
      %cst = arith.constant 0.000000e+00 : f32
      %3 = vector.broadcast %cst : f32 to vector<16x8xf32>
      %4 = arith.addi %0, %arg6 : i32
      %c0_i32_3 = arith.constant 0 : i32
      %5 = arith.addi %4, %c0_i32_3 : i32
      %c0_4 = arith.constant 0 : index
      %6 = arith.index_cast %5 : i32 to index
      %c0_5 = arith.constant 0 : index
      %c0_6 = arith.constant 0 : index
      %7 = vector.load %arg2[%c0_4, %6, %c0_5, %c0_6] : memref<1x10x8x10xbf16, #tpu.memory_space<vmem>>, vector<1x1x8x10xbf16>
      %8 = vector.shape_cast %7 : vector<1x1x8x10xbf16> to vector<8x10xbf16>
      %c0_7 = arith.constant 0 : index
      %c0_8 = arith.constant 0 : index
      %c0_9 = arith.constant 0 : index
      %9 = vector.load %arg3[%c0_7, %c0_8, %c0_9] : memref<9x16x8xbf16, #tpu.memory_space<vmem>>, vector<1x16x8xbf16>
      %10 = vector.shape_cast %9 : vector<1x16x8xbf16> to vector<16x8xbf16>
      %11 = vector.extract_strided_slice %8 {offsets = [0, 0], sizes = [8, 8], strides = [1, 1]} : vector<8x10xbf16> to vector<8x8xbf16>
      %cst_10 = arith.constant dense<0.000000e+00> : vector<16x8xf32>
      %12 = tpu.matmul %10, %11, %cst_10 {dimension_numbers = #tpu.dot_dimension_numbers<[1], [0], [0], [1], [0, 0, 1, 1], [], []>} : vector<16x8xbf16>, vector<8x8xbf16>, vector<16x8xf32> -> vector<16x8xf32>
      %13 = arith.addf %3, %12 : vector<16x8xf32>
      %c1 = arith.constant 1 : index
      %c0_11 = arith.constant 0 : index
      %c0_12 = arith.constant 0 : index
      %14 = vector.load %arg3[%c1, %c0_11, %c0_12] : memref<9x16x8xbf16, #tpu.memory_space<vmem>>, vector<1x16x8xbf16>
      %15 = vector.shape_cast %14 : vector<1x16x8xbf16> to vector<16x8xbf16>
      %16 = vector.extract_strided_slice %8 {offsets = [0, 1], sizes = [8, 8], strides = [1, 1]} : vector<8x10xbf16> to vector<8x8xbf16>
      %cst_13 = arith.constant dense<0.000000e+00> : vector<16x8xf32>
      %17 = tpu.matmul %15, %16, %cst_13 {dimension_numbers = #tpu.dot_dimension_numbers<[1], [0], [0], [1], [0, 0, 1, 1], [], []>} : vector<16x8xbf16>, vector<8x8xbf16>, vector<16x8xf32> -> vector<16x8xf32>
      %18 = arith.addf %13, %17 : vector<16x8xf32>
      %c2 = arith.constant 2 : index
      %c0_14 = arith.constant 0 : index
      %c0_15 = arith.constant 0 : index
      %19 = vector.load %arg3[%c2, %c0_14, %c0_15] : memref<9x16x8xbf16, #tpu.memory_space<vmem>>, vector<1x16x8xbf16>
      %20 = vector.shape_cast %19 : vector<1x16x8xbf16> to vector<16x8xbf16>
      %21 = vector.extract_strided_slice %8 {offsets = [0, 2], sizes = [8, 8], strides = [1, 1]} : vector<8x10xbf16> to vector<8x8xbf16>
      %cst_16 = arith.constant dense<0.000000e+00> : vector<16x8xf32>
      %22 = tpu.matmul %20, %21, %cst_16 {dimension_numbers = #tpu.dot_dimension_numbers<[1], [0], [0], [1], [0, 0, 1, 1], [], []>} : vector<16x8xbf16>, vector<8x8xbf16>, vector<16x8xf32> -> vector<16x8xf32>
      %23 = arith.addf %18, %22 : vector<16x8xf32>
      %24 = arith.addi %0, %arg6 : i32
      %c1_i32_17 = arith.constant 1 : i32
      %25 = arith.addi %24, %c1_i32_17 : i32
      %c0_18 = arith.constant 0 : index
      %26 = arith.index_cast %25 : i32 to index
      %c0_19 = arith.constant 0 : index
      %c0_20 = arith.constant 0 : index
      %27 = vector.load %arg2[%c0_18, %26, %c0_19, %c0_20] : memref<1x10x8x10xbf16, #tpu.memory_space<vmem>>, vector<1x1x8x10xbf16>
      %28 = vector.shape_cast %27 : vector<1x1x8x10xbf16> to vector<8x10xbf16>
      %c3 = arith.constant 3 : index
      %c0_21 = arith.constant 0 : index
      %c0_22 = arith.constant 0 : index
      %29 = vector.load %arg3[%c3, %c0_21, %c0_22] : memref<9x16x8xbf16, #tpu.memory_space<vmem>>, vector<1x16x8xbf16>
      %30 = vector.shape_cast %29 : vector<1x16x8xbf16> to vector<16x8xbf16>
      %31 = vector.extract_strided_slice %28 {offsets = [0, 0], sizes = [8, 8], strides = [1, 1]} : vector<8x10xbf16> to vector<8x8xbf16>
      %cst_23 = arith.constant dense<0.000000e+00> : vector<16x8xf32>
      %32 = tpu.matmul %30, %31, %cst_23 {dimension_numbers = #tpu.dot_dimension_numbers<[1], [0], [0], [1], [0, 0, 1, 1], [], []>} : vector<16x8xbf16>, vector<8x8xbf16>, vector<16x8xf32> -> vector<16x8xf32>
      %33 = arith.addf %23, %32 : vector<16x8xf32>
      %c4 = arith.constant 4 : index
      %c0_24 = arith.constant 0 : index
      %c0_25 = arith.constant 0 : index
      %34 = vector.load %arg3[%c4, %c0_24, %c0_25] : memref<9x16x8xbf16, #tpu.memory_space<vmem>>, vector<1x16x8xbf16>
      %35 = vector.shape_cast %34 : vector<1x16x8xbf16> to vector<16x8xbf16>
      %36 = vector.extract_strided_slice %28 {offsets = [0, 1], sizes = [8, 8], strides = [1, 1]} : vector<8x10xbf16> to vector<8x8xbf16>
      %cst_26 = arith.constant dense<0.000000e+00> : vector<16x8xf32>
      %37 = tpu.matmul %35, %36, %cst_26 {dimension_numbers = #tpu.dot_dimension_numbers<[1], [0], [0], [1], [0, 0, 1, 1], [], []>} : vector<16x8xbf16>, vector<8x8xbf16>, vector<16x8xf32> -> vector<16x8xf32>
      %38 = arith.addf %33, %37 : vector<16x8xf32>
      %c5 = arith.constant 5 : index
      %c0_27 = arith.constant 0 : index
      %c0_28 = arith.constant 0 : index
      %39 = vector.load %arg3[%c5, %c0_27, %c0_28] : memref<9x16x8xbf16, #tpu.memory_space<vmem>>, vector<1x16x8xbf16>
      %40 = vector.shape_cast %39 : vector<1x16x8xbf16> to vector<16x8xbf16>
      %41 = vector.extract_strided_slice %28 {offsets = [0, 2], sizes = [8, 8], strides = [1, 1]} : vector<8x10xbf16> to vector<8x8xbf16>
      %cst_29 = arith.constant dense<0.000000e+00> : vector<16x8xf32>
      %42 = tpu.matmul %40, %41, %cst_29 {dimension_numbers = #tpu.dot_dimension_numbers<[1], [0], [0], [1], [0, 0, 1, 1], [], []>} : vector<16x8xbf16>, vector<8x8xbf16>, vector<16x8xf32> -> vector<16x8xf32>
      %43 = arith.addf %38, %42 : vector<16x8xf32>
      %44 = arith.addi %0, %arg6 : i32
      %c2_i32 = arith.constant 2 : i32
      %45 = arith.addi %44, %c2_i32 : i32
      %c0_30 = arith.constant 0 : index
      %46 = arith.index_cast %45 : i32 to index
      %c0_31 = arith.constant 0 : index
      %c0_32 = arith.constant 0 : index
      %47 = vector.load %arg2[%c0_30, %46, %c0_31, %c0_32] : memref<1x10x8x10xbf16, #tpu.memory_space<vmem>>, vector<1x1x8x10xbf16>
      %48 = vector.shape_cast %47 : vector<1x1x8x10xbf16> to vector<8x10xbf16>
      %c6 = arith.constant 6 : index
      %c0_33 = arith.constant 0 : index
      %c0_34 = arith.constant 0 : index
      %49 = vector.load %arg3[%c6, %c0_33, %c0_34] : memref<9x16x8xbf16, #tpu.memory_space<vmem>>, vector<1x16x8xbf16>
      %50 = vector.shape_cast %49 : vector<1x16x8xbf16> to vector<16x8xbf16>
      %51 = vector.extract_strided_slice %48 {offsets = [0, 0], sizes = [8, 8], strides = [1, 1]} : vector<8x10xbf16> to vector<8x8xbf16>
      %cst_35 = arith.constant dense<0.000000e+00> : vector<16x8xf32>
      %52 = tpu.matmul %50, %51, %cst_35 {dimension_numbers = #tpu.dot_dimension_numbers<[1], [0], [0], [1], [0, 0, 1, 1], [], []>} : vector<16x8xbf16>, vector<8x8xbf16>, vector<16x8xf32> -> vector<16x8xf32>
      %53 = arith.addf %43, %52 : vector<16x8xf32>
      %c7 = arith.constant 7 : index
      %c0_36 = arith.constant 0 : index
      %c0_37 = arith.constant 0 : index
      %54 = vector.load %arg3[%c7, %c0_36, %c0_37] : memref<9x16x8xbf16, #tpu.memory_space<vmem>>, vector<1x16x8xbf16>
      %55 = vector.shape_cast %54 : vector<1x16x8xbf16> to vector<16x8xbf16>
      %56 = vector.extract_strided_slice %48 {offsets = [0, 1], sizes = [8, 8], strides = [1, 1]} : vector<8x10xbf16> to vector<8x8xbf16>
      %cst_38 = arith.constant dense<0.000000e+00> : vector<16x8xf32>
      %57 = tpu.matmul %55, %56, %cst_38 {dimension_numbers = #tpu.dot_dimension_numbers<[1], [0], [0], [1], [0, 0, 1, 1], [], []>} : vector<16x8xbf16>, vector<8x8xbf16>, vector<16x8xf32> -> vector<16x8xf32>
      %58 = arith.addf %53, %57 : vector<16x8xf32>
      %c8 = arith.constant 8 : index
      %c0_39 = arith.constant 0 : index
      %c0_40 = arith.constant 0 : index
      %59 = vector.load %arg3[%c8, %c0_39, %c0_40] : memref<9x16x8xbf16, #tpu.memory_space<vmem>>, vector<1x16x8xbf16>
      %60 = vector.shape_cast %59 : vector<1x16x8xbf16> to vector<16x8xbf16>
      %61 = vector.extract_strided_slice %48 {offsets = [0, 2], sizes = [8, 8], strides = [1, 1]} : vector<8x10xbf16> to vector<8x8xbf16>
      %cst_41 = arith.constant dense<0.000000e+00> : vector<16x8xf32>
      %62 = tpu.matmul %60, %61, %cst_41 {dimension_numbers = #tpu.dot_dimension_numbers<[1], [0], [0], [1], [0, 0, 1, 1], [], []>} : vector<16x8xbf16>, vector<8x8xbf16>, vector<16x8xf32> -> vector<16x8xf32>
      %63 = arith.addf %58, %62 : vector<16x8xf32>
      %64 = vector.broadcast %1 : vector<16x1xf32> to vector<16x8xf32>
      %65 = arith.addf %63, %64 : vector<16x8xf32>
      %cst_42 = arith.constant 0.000000e+00 : f32
      %66 = vector.broadcast %cst_42 : f32 to vector<16x8xf32>
      %67 = arith.maximumf %65, %66 : vector<16x8xf32>
      %68 = arith.truncf %67 : vector<16x8xf32> to vector<16x8xbf16>
      %c0_43 = arith.constant 0 : index
      %69 = arith.index_cast %arg6 : i32 to index
      %c0_44 = arith.constant 0 : index
      %c0_45 = arith.constant 0 : index
      %70 = vector.load %arg5[%c0_43, %69, %c0_44, %c0_45] : memref<1x8x16x8xbf16, #tpu.memory_space<vmem>>, vector<1x1x16x8xbf16>
      %71 = vector.shape_cast %70 : vector<1x1x16x8xbf16> to vector<16x8xbf16>
      %72 = vector.shape_cast %68 : vector<16x8xbf16> to vector<1x1x16x8xbf16>
      tpu.vector_store %arg5[%c0_43, %69, %c0_44, %c0_45], %72 {strides = array<i32>} : memref<1x8x16x8xbf16, #tpu.memory_space<vmem>>, vector<1x1x16x8xbf16>,
    }
    %c8_i32_2 = arith.constant 8 : i32
    return
  }
  func.func @transform_0(%arg0: i32, %arg1: i32) -> (i32, i32, i32, i32) {
    %c0_i32 = arith.constant 0 : i32
    %c0_i32_0 = arith.constant 0 : i32
    %c0_i32_1 = arith.constant 0 : i32
    %c0_i32_2 = arith.constant 0 : i32
    return %arg0, %c0_i32, %c0_i32_0, %c0_i32_1 : i32, i32, i32, i32
  }
  func.func @transform_1(%arg0: i32, %arg1: i32) -> (i32, i32, i32) {
    %c0_i32 = arith.constant 0 : i32
    %c0_i32_0 = arith.constant 0 : i32
    %c0_i32_1 = arith.constant 0 : i32
    %c0_i32_2 = arith.constant 0 : i32
    return %c0_i32, %c0_i32_0, %c0_i32_1 : i32, i32, i32
  }
  func.func @transform_2(%arg0: i32, %arg1: i32) -> (i32, i32) {
    %c0_i32 = arith.constant 0 : i32
    %c0_i32_0 = arith.constant 0 : i32
    %c0_i32_1 = arith.constant 0 : i32
    return %c0_i32, %c0_i32_0 : i32, i32
  }
  func.func @transform_3(%arg0: i32, %arg1: i32) -> (i32, i32, i32, i32) {
    %c0_i32 = arith.constant 0 : i32
    %c0_i32_0 = arith.constant 0 : i32
    %c0_i32_1 = arith.constant 0 : i32
    return %arg0, %arg1, %c0_i32, %c0_i32_0 : i32, i32, i32, i32
  }
}

module attributes {stable_mosaic.version = 11 : i64} {
  func.func @_conv3x3_kernel(%arg0: i32, %arg1: i32, %arg2: memref<1x6x16x6xbf16, #tpu.memory_space<vmem>>, %arg3: memref<9x32x16xbf16, #tpu.memory_space<vmem>>, %arg4: memref<32x1xf32, #tpu.memory_space<vmem>>, %arg5: memref<1x4x32x4xbf16, #tpu.memory_space<vmem>>) attributes {dimension_semantics = [#tpu.dimension_semantics<parallel>, #tpu.dimension_semantics<parallel>], iteration_bounds = array<i64: 2, 1>, scalar_prefetch = 0 : i64, scratch_operands = 0 : i64, tpu.core_type = #tpu.core_type<tc>, window_params = [{transform_indices = @transform_0, window_bounds = array<i64: 1, 6, 16, 6>}, {pipeline_mode = #tpu.pipeline_mode<synchronous>, transform_indices = @transform_1, window_bounds = array<i64: 9, 32, 16>}, {pipeline_mode = #tpu.pipeline_mode<synchronous>, transform_indices = @transform_2, window_bounds = array<i64: 32, 1>}, {transform_indices = @transform_3, window_bounds = array<i64: 1, 4, 32, 4>}]} {
    %c4_i32 = arith.constant 4 : i32
    %0 = arith.muli %arg1, %c4_i32 : i32
    %c0 = arith.constant 0 : index
    %c0_0 = arith.constant 0 : index
    %1 = vector.load %arg4[%c0, %c0_0] : memref<32x1xf32, #tpu.memory_space<vmem>>, vector<32x1xf32>
    %c0_i32 = arith.constant 0 : i32
    %c4_i32_1 = arith.constant 4 : i32
    %2 = arith.addi %c0_i32, %c4_i32_1 : i32
    %c1_i32 = arith.constant 1 : i32
    scf.for %arg6 = %c0_i32 to %2 step %c1_i32  : i32 {
      %cst = arith.constant 0.000000e+00 : f32
      %3 = vector.broadcast %cst : f32 to vector<32x4xf32>
      %4 = arith.addi %0, %arg6 : i32
      %c0_i32_3 = arith.constant 0 : i32
      %5 = arith.addi %4, %c0_i32_3 : i32
      %c0_4 = arith.constant 0 : index
      %6 = arith.index_cast %5 : i32 to index
      %c0_5 = arith.constant 0 : index
      %c0_6 = arith.constant 0 : index
      %7 = vector.load %arg2[%c0_4, %6, %c0_5, %c0_6] : memref<1x6x16x6xbf16, #tpu.memory_space<vmem>>, vector<1x1x16x6xbf16>
      %8 = vector.shape_cast %7 : vector<1x1x16x6xbf16> to vector<16x6xbf16>
      %c0_7 = arith.constant 0 : index
      %c0_8 = arith.constant 0 : index
      %c0_9 = arith.constant 0 : index
      %9 = vector.load %arg3[%c0_7, %c0_8, %c0_9] : memref<9x32x16xbf16, #tpu.memory_space<vmem>>, vector<1x32x16xbf16>
      %10 = vector.shape_cast %9 : vector<1x32x16xbf16> to vector<32x16xbf16>
      %11 = vector.extract_strided_slice %8 {offsets = [0, 0], sizes = [16, 4], strides = [1, 1]} : vector<16x6xbf16> to vector<16x4xbf16>
      %cst_10 = arith.constant dense<0.000000e+00> : vector<32x4xf32>
      %12 = tpu.matmul %10, %11, %cst_10 {dimension_numbers = #tpu.dot_dimension_numbers<[1], [0], [0], [1], [0, 0, 1, 1], [], []>} : vector<32x16xbf16>, vector<16x4xbf16>, vector<32x4xf32> -> vector<32x4xf32>
      %13 = arith.addf %3, %12 : vector<32x4xf32>
      %c1 = arith.constant 1 : index
      %c0_11 = arith.constant 0 : index
      %c0_12 = arith.constant 0 : index
      %14 = vector.load %arg3[%c1, %c0_11, %c0_12] : memref<9x32x16xbf16, #tpu.memory_space<vmem>>, vector<1x32x16xbf16>
      %15 = vector.shape_cast %14 : vector<1x32x16xbf16> to vector<32x16xbf16>
      %16 = vector.extract_strided_slice %8 {offsets = [0, 1], sizes = [16, 4], strides = [1, 1]} : vector<16x6xbf16> to vector<16x4xbf16>
      %cst_13 = arith.constant dense<0.000000e+00> : vector<32x4xf32>
      %17 = tpu.matmul %15, %16, %cst_13 {dimension_numbers = #tpu.dot_dimension_numbers<[1], [0], [0], [1], [0, 0, 1, 1], [], []>} : vector<32x16xbf16>, vector<16x4xbf16>, vector<32x4xf32> -> vector<32x4xf32>
      %18 = arith.addf %13, %17 : vector<32x4xf32>
      %c2 = arith.constant 2 : index
      %c0_14 = arith.constant 0 : index
      %c0_15 = arith.constant 0 : index
      %19 = vector.load %arg3[%c2, %c0_14, %c0_15] : memref<9x32x16xbf16, #tpu.memory_space<vmem>>, vector<1x32x16xbf16>
      %20 = vector.shape_cast %19 : vector<1x32x16xbf16> to vector<32x16xbf16>
      %21 = vector.extract_strided_slice %8 {offsets = [0, 2], sizes = [16, 4], strides = [1, 1]} : vector<16x6xbf16> to vector<16x4xbf16>
      %cst_16 = arith.constant dense<0.000000e+00> : vector<32x4xf32>
      %22 = tpu.matmul %20, %21, %cst_16 {dimension_numbers = #tpu.dot_dimension_numbers<[1], [0], [0], [1], [0, 0, 1, 1], [], []>} : vector<32x16xbf16>, vector<16x4xbf16>, vector<32x4xf32> -> vector<32x4xf32>
      %23 = arith.addf %18, %22 : vector<32x4xf32>
      %24 = arith.addi %0, %arg6 : i32
      %c1_i32_17 = arith.constant 1 : i32
      %25 = arith.addi %24, %c1_i32_17 : i32
      %c0_18 = arith.constant 0 : index
      %26 = arith.index_cast %25 : i32 to index
      %c0_19 = arith.constant 0 : index
      %c0_20 = arith.constant 0 : index
      %27 = vector.load %arg2[%c0_18, %26, %c0_19, %c0_20] : memref<1x6x16x6xbf16, #tpu.memory_space<vmem>>, vector<1x1x16x6xbf16>
      %28 = vector.shape_cast %27 : vector<1x1x16x6xbf16> to vector<16x6xbf16>
      %c3 = arith.constant 3 : index
      %c0_21 = arith.constant 0 : index
      %c0_22 = arith.constant 0 : index
      %29 = vector.load %arg3[%c3, %c0_21, %c0_22] : memref<9x32x16xbf16, #tpu.memory_space<vmem>>, vector<1x32x16xbf16>
      %30 = vector.shape_cast %29 : vector<1x32x16xbf16> to vector<32x16xbf16>
      %31 = vector.extract_strided_slice %28 {offsets = [0, 0], sizes = [16, 4], strides = [1, 1]} : vector<16x6xbf16> to vector<16x4xbf16>
      %cst_23 = arith.constant dense<0.000000e+00> : vector<32x4xf32>
      %32 = tpu.matmul %30, %31, %cst_23 {dimension_numbers = #tpu.dot_dimension_numbers<[1], [0], [0], [1], [0, 0, 1, 1], [], []>} : vector<32x16xbf16>, vector<16x4xbf16>, vector<32x4xf32> -> vector<32x4xf32>
      %33 = arith.addf %23, %32 : vector<32x4xf32>
      %c4 = arith.constant 4 : index
      %c0_24 = arith.constant 0 : index
      %c0_25 = arith.constant 0 : index
      %34 = vector.load %arg3[%c4, %c0_24, %c0_25] : memref<9x32x16xbf16, #tpu.memory_space<vmem>>, vector<1x32x16xbf16>
      %35 = vector.shape_cast %34 : vector<1x32x16xbf16> to vector<32x16xbf16>
      %36 = vector.extract_strided_slice %28 {offsets = [0, 1], sizes = [16, 4], strides = [1, 1]} : vector<16x6xbf16> to vector<16x4xbf16>
      %cst_26 = arith.constant dense<0.000000e+00> : vector<32x4xf32>
      %37 = tpu.matmul %35, %36, %cst_26 {dimension_numbers = #tpu.dot_dimension_numbers<[1], [0], [0], [1], [0, 0, 1, 1], [], []>} : vector<32x16xbf16>, vector<16x4xbf16>, vector<32x4xf32> -> vector<32x4xf32>
      %38 = arith.addf %33, %37 : vector<32x4xf32>
      %c5 = arith.constant 5 : index
      %c0_27 = arith.constant 0 : index
      %c0_28 = arith.constant 0 : index
      %39 = vector.load %arg3[%c5, %c0_27, %c0_28] : memref<9x32x16xbf16, #tpu.memory_space<vmem>>, vector<1x32x16xbf16>
      %40 = vector.shape_cast %39 : vector<1x32x16xbf16> to vector<32x16xbf16>
      %41 = vector.extract_strided_slice %28 {offsets = [0, 2], sizes = [16, 4], strides = [1, 1]} : vector<16x6xbf16> to vector<16x4xbf16>
      %cst_29 = arith.constant dense<0.000000e+00> : vector<32x4xf32>
      %42 = tpu.matmul %40, %41, %cst_29 {dimension_numbers = #tpu.dot_dimension_numbers<[1], [0], [0], [1], [0, 0, 1, 1], [], []>} : vector<32x16xbf16>, vector<16x4xbf16>, vector<32x4xf32> -> vector<32x4xf32>
      %43 = arith.addf %38, %42 : vector<32x4xf32>
      %44 = arith.addi %0, %arg6 : i32
      %c2_i32 = arith.constant 2 : i32
      %45 = arith.addi %44, %c2_i32 : i32
      %c0_30 = arith.constant 0 : index
      %46 = arith.index_cast %45 : i32 to index
      %c0_31 = arith.constant 0 : index
      %c0_32 = arith.constant 0 : index
      %47 = vector.load %arg2[%c0_30, %46, %c0_31, %c0_32] : memref<1x6x16x6xbf16, #tpu.memory_space<vmem>>, vector<1x1x16x6xbf16>
      %48 = vector.shape_cast %47 : vector<1x1x16x6xbf16> to vector<16x6xbf16>
      %c6 = arith.constant 6 : index
      %c0_33 = arith.constant 0 : index
      %c0_34 = arith.constant 0 : index
      %49 = vector.load %arg3[%c6, %c0_33, %c0_34] : memref<9x32x16xbf16, #tpu.memory_space<vmem>>, vector<1x32x16xbf16>
      %50 = vector.shape_cast %49 : vector<1x32x16xbf16> to vector<32x16xbf16>
      %51 = vector.extract_strided_slice %48 {offsets = [0, 0], sizes = [16, 4], strides = [1, 1]} : vector<16x6xbf16> to vector<16x4xbf16>
      %cst_35 = arith.constant dense<0.000000e+00> : vector<32x4xf32>
      %52 = tpu.matmul %50, %51, %cst_35 {dimension_numbers = #tpu.dot_dimension_numbers<[1], [0], [0], [1], [0, 0, 1, 1], [], []>} : vector<32x16xbf16>, vector<16x4xbf16>, vector<32x4xf32> -> vector<32x4xf32>
      %53 = arith.addf %43, %52 : vector<32x4xf32>
      %c7 = arith.constant 7 : index
      %c0_36 = arith.constant 0 : index
      %c0_37 = arith.constant 0 : index
      %54 = vector.load %arg3[%c7, %c0_36, %c0_37] : memref<9x32x16xbf16, #tpu.memory_space<vmem>>, vector<1x32x16xbf16>
      %55 = vector.shape_cast %54 : vector<1x32x16xbf16> to vector<32x16xbf16>
      %56 = vector.extract_strided_slice %48 {offsets = [0, 1], sizes = [16, 4], strides = [1, 1]} : vector<16x6xbf16> to vector<16x4xbf16>
      %cst_38 = arith.constant dense<0.000000e+00> : vector<32x4xf32>
      %57 = tpu.matmul %55, %56, %cst_38 {dimension_numbers = #tpu.dot_dimension_numbers<[1], [0], [0], [1], [0, 0, 1, 1], [], []>} : vector<32x16xbf16>, vector<16x4xbf16>, vector<32x4xf32> -> vector<32x4xf32>
      %58 = arith.addf %53, %57 : vector<32x4xf32>
      %c8 = arith.constant 8 : index
      %c0_39 = arith.constant 0 : index
      %c0_40 = arith.constant 0 : index
      %59 = vector.load %arg3[%c8, %c0_39, %c0_40] : memref<9x32x16xbf16, #tpu.memory_space<vmem>>, vector<1x32x16xbf16>
      %60 = vector.shape_cast %59 : vector<1x32x16xbf16> to vector<32x16xbf16>
      %61 = vector.extract_strided_slice %48 {offsets = [0, 2], sizes = [16, 4], strides = [1, 1]} : vector<16x6xbf16> to vector<16x4xbf16>
      %cst_41 = arith.constant dense<0.000000e+00> : vector<32x4xf32>
      %62 = tpu.matmul %60, %61, %cst_41 {dimension_numbers = #tpu.dot_dimension_numbers<[1], [0], [0], [1], [0, 0, 1, 1], [], []>} : vector<32x16xbf16>, vector<16x4xbf16>, vector<32x4xf32> -> vector<32x4xf32>
      %63 = arith.addf %58, %62 : vector<32x4xf32>
      %64 = vector.broadcast %1 : vector<32x1xf32> to vector<32x4xf32>
      %65 = arith.addf %63, %64 : vector<32x4xf32>
      %cst_42 = arith.constant 0.000000e+00 : f32
      %66 = vector.broadcast %cst_42 : f32 to vector<32x4xf32>
      %67 = arith.maximumf %65, %66 : vector<32x4xf32>
      %68 = arith.truncf %67 : vector<32x4xf32> to vector<32x4xbf16>
      %c0_43 = arith.constant 0 : index
      %69 = arith.index_cast %arg6 : i32 to index
      %c0_44 = arith.constant 0 : index
      %c0_45 = arith.constant 0 : index
      %70 = vector.load %arg5[%c0_43, %69, %c0_44, %c0_45] : memref<1x4x32x4xbf16, #tpu.memory_space<vmem>>, vector<1x1x32x4xbf16>
      %71 = vector.shape_cast %70 : vector<1x1x32x4xbf16> to vector<32x4xbf16>
      %72 = vector.shape_cast %68 : vector<32x4xbf16> to vector<1x1x32x4xbf16>
      tpu.vector_store %arg5[%c0_43, %69, %c0_44, %c0_45], %72 {strides = array<i32>} : memref<1x4x32x4xbf16, #tpu.memory_space<vmem>>, vector<1x1x32x4xbf16>,
    }
    %c4_i32_2 = arith.constant 4 : i32
    return
  }
  func.func @transform_0(%arg0: i32, %arg1: i32) -> (i32, i32, i32, i32) {
    %c0_i32 = arith.constant 0 : i32
    %c0_i32_0 = arith.constant 0 : i32
    %c0_i32_1 = arith.constant 0 : i32
    %c0_i32_2 = arith.constant 0 : i32
    return %arg0, %c0_i32, %c0_i32_0, %c0_i32_1 : i32, i32, i32, i32
  }
  func.func @transform_1(%arg0: i32, %arg1: i32) -> (i32, i32, i32) {
    %c0_i32 = arith.constant 0 : i32
    %c0_i32_0 = arith.constant 0 : i32
    %c0_i32_1 = arith.constant 0 : i32
    %c0_i32_2 = arith.constant 0 : i32
    return %c0_i32, %c0_i32_0, %c0_i32_1 : i32, i32, i32
  }
  func.func @transform_2(%arg0: i32, %arg1: i32) -> (i32, i32) {
    %c0_i32 = arith.constant 0 : i32
    %c0_i32_0 = arith.constant 0 : i32
    %c0_i32_1 = arith.constant 0 : i32
    return %c0_i32, %c0_i32_0 : i32, i32
  }
  func.func @transform_3(%arg0: i32, %arg1: i32) -> (i32, i32, i32, i32) {
    %c0_i32 = arith.constant 0 : i32
    %c0_i32_0 = arith.constant 0 : i32
    %c0_i32_1 = arith.constant 0 : i32
    return %arg0, %arg1, %c0_i32, %c0_i32_0 : i32, i32, i32, i32
  }
}

module attributes {stable_mosaic.version = 11 : i64} {
  func.func @_conv3x3_kernel(%arg0: i32, %arg1: i32, %arg2: memref<1x10x16x10xbf16, #tpu.memory_space<vmem>>, %arg3: memref<1x10x32x10xbf16, #tpu.memory_space<vmem>>, %arg4: memref<9x16x16xbf16, #tpu.memory_space<vmem>>, %arg5: memref<9x16x32xbf16, #tpu.memory_space<vmem>>, %arg6: memref<16x1xf32, #tpu.memory_space<vmem>>, %arg7: memref<1x8x16x8xbf16, #tpu.memory_space<vmem>>) attributes {dimension_semantics = [#tpu.dimension_semantics<parallel>, #tpu.dimension_semantics<parallel>], iteration_bounds = array<i64: 2, 1>, scalar_prefetch = 0 : i64, scratch_operands = 0 : i64, tpu.core_type = #tpu.core_type<tc>, window_params = [{transform_indices = @transform_0, window_bounds = array<i64: 1, 10, 16, 10>}, {transform_indices = @transform_1, window_bounds = array<i64: 1, 10, 32, 10>}, {pipeline_mode = #tpu.pipeline_mode<synchronous>, transform_indices = @transform_2, window_bounds = array<i64: 9, 16, 16>}, {pipeline_mode = #tpu.pipeline_mode<synchronous>, transform_indices = @transform_3, window_bounds = array<i64: 9, 16, 32>}, {pipeline_mode = #tpu.pipeline_mode<synchronous>, transform_indices = @transform_4, window_bounds = array<i64: 16, 1>}, {transform_indices = @transform_5, window_bounds = array<i64: 1, 8, 16, 8>}]} {
    %c8_i32 = arith.constant 8 : i32
    %0 = arith.muli %arg1, %c8_i32 : i32
    %c0 = arith.constant 0 : index
    %c0_0 = arith.constant 0 : index
    %1 = vector.load %arg6[%c0, %c0_0] : memref<16x1xf32, #tpu.memory_space<vmem>>, vector<16x1xf32>
    %c0_i32 = arith.constant 0 : i32
    %c8_i32_1 = arith.constant 8 : i32
    %2 = arith.addi %c0_i32, %c8_i32_1 : i32
    %c1_i32 = arith.constant 1 : i32
    scf.for %arg8 = %c0_i32 to %2 step %c1_i32  : i32 {
      %cst = arith.constant 0.000000e+00 : f32
      %3 = vector.broadcast %cst : f32 to vector<16x8xf32>
      %4 = arith.addi %0, %arg8 : i32
      %c0_i32_3 = arith.constant 0 : i32
      %5 = arith.addi %4, %c0_i32_3 : i32
      %c0_4 = arith.constant 0 : index
      %6 = arith.index_cast %5 : i32 to index
      %c0_5 = arith.constant 0 : index
      %c0_6 = arith.constant 0 : index
      %7 = vector.load %arg2[%c0_4, %6, %c0_5, %c0_6] : memref<1x10x16x10xbf16, #tpu.memory_space<vmem>>, vector<1x1x16x10xbf16>
      %8 = vector.shape_cast %7 : vector<1x1x16x10xbf16> to vector<16x10xbf16>
      %c0_7 = arith.constant 0 : index
      %c0_8 = arith.constant 0 : index
      %c0_9 = arith.constant 0 : index
      %9 = vector.load %arg4[%c0_7, %c0_8, %c0_9] : memref<9x16x16xbf16, #tpu.memory_space<vmem>>, vector<1x16x16xbf16>
      %10 = vector.shape_cast %9 : vector<1x16x16xbf16> to vector<16x16xbf16>
      %11 = vector.extract_strided_slice %8 {offsets = [0, 0], sizes = [16, 8], strides = [1, 1]} : vector<16x10xbf16> to vector<16x8xbf16>
      %cst_10 = arith.constant dense<0.000000e+00> : vector<16x8xf32>
      %12 = tpu.matmul %10, %11, %cst_10 {dimension_numbers = #tpu.dot_dimension_numbers<[1], [0], [0], [1], [0, 0, 1, 1], [], []>} : vector<16x16xbf16>, vector<16x8xbf16>, vector<16x8xf32> -> vector<16x8xf32>
      %13 = arith.addf %3, %12 : vector<16x8xf32>
      %c1 = arith.constant 1 : index
      %c0_11 = arith.constant 0 : index
      %c0_12 = arith.constant 0 : index
      %14 = vector.load %arg4[%c1, %c0_11, %c0_12] : memref<9x16x16xbf16, #tpu.memory_space<vmem>>, vector<1x16x16xbf16>
      %15 = vector.shape_cast %14 : vector<1x16x16xbf16> to vector<16x16xbf16>
      %16 = vector.extract_strided_slice %8 {offsets = [0, 1], sizes = [16, 8], strides = [1, 1]} : vector<16x10xbf16> to vector<16x8xbf16>
      %cst_13 = arith.constant dense<0.000000e+00> : vector<16x8xf32>
      %17 = tpu.matmul %15, %16, %cst_13 {dimension_numbers = #tpu.dot_dimension_numbers<[1], [0], [0], [1], [0, 0, 1, 1], [], []>} : vector<16x16xbf16>, vector<16x8xbf16>, vector<16x8xf32> -> vector<16x8xf32>
      %18 = arith.addf %13, %17 : vector<16x8xf32>
      %c2 = arith.constant 2 : index
      %c0_14 = arith.constant 0 : index
      %c0_15 = arith.constant 0 : index
      %19 = vector.load %arg4[%c2, %c0_14, %c0_15] : memref<9x16x16xbf16, #tpu.memory_space<vmem>>, vector<1x16x16xbf16>
      %20 = vector.shape_cast %19 : vector<1x16x16xbf16> to vector<16x16xbf16>
      %21 = vector.extract_strided_slice %8 {offsets = [0, 2], sizes = [16, 8], strides = [1, 1]} : vector<16x10xbf16> to vector<16x8xbf16>
      %cst_16 = arith.constant dense<0.000000e+00> : vector<16x8xf32>
      %22 = tpu.matmul %20, %21, %cst_16 {dimension_numbers = #tpu.dot_dimension_numbers<[1], [0], [0], [1], [0, 0, 1, 1], [], []>} : vector<16x16xbf16>, vector<16x8xbf16>, vector<16x8xf32> -> vector<16x8xf32>
      %23 = arith.addf %18, %22 : vector<16x8xf32>
      %24 = arith.addi %0, %arg8 : i32
      %c1_i32_17 = arith.constant 1 : i32
      %25 = arith.addi %24, %c1_i32_17 : i32
      %c0_18 = arith.constant 0 : index
      %26 = arith.index_cast %25 : i32 to index
      %c0_19 = arith.constant 0 : index
      %c0_20 = arith.constant 0 : index
      %27 = vector.load %arg2[%c0_18, %26, %c0_19, %c0_20] : memref<1x10x16x10xbf16, #tpu.memory_space<vmem>>, vector<1x1x16x10xbf16>
      %28 = vector.shape_cast %27 : vector<1x1x16x10xbf16> to vector<16x10xbf16>
      %c3 = arith.constant 3 : index
      %c0_21 = arith.constant 0 : index
      %c0_22 = arith.constant 0 : index
      %29 = vector.load %arg4[%c3, %c0_21, %c0_22] : memref<9x16x16xbf16, #tpu.memory_space<vmem>>, vector<1x16x16xbf16>
      %30 = vector.shape_cast %29 : vector<1x16x16xbf16> to vector<16x16xbf16>
      %31 = vector.extract_strided_slice %28 {offsets = [0, 0], sizes = [16, 8], strides = [1, 1]} : vector<16x10xbf16> to vector<16x8xbf16>
      %cst_23 = arith.constant dense<0.000000e+00> : vector<16x8xf32>
      %32 = tpu.matmul %30, %31, %cst_23 {dimension_numbers = #tpu.dot_dimension_numbers<[1], [0], [0], [1], [0, 0, 1, 1], [], []>} : vector<16x16xbf16>, vector<16x8xbf16>, vector<16x8xf32> -> vector<16x8xf32>
      %33 = arith.addf %23, %32 : vector<16x8xf32>
      %c4 = arith.constant 4 : index
      %c0_24 = arith.constant 0 : index
      %c0_25 = arith.constant 0 : index
      %34 = vector.load %arg4[%c4, %c0_24, %c0_25] : memref<9x16x16xbf16, #tpu.memory_space<vmem>>, vector<1x16x16xbf16>
      %35 = vector.shape_cast %34 : vector<1x16x16xbf16> to vector<16x16xbf16>
      %36 = vector.extract_strided_slice %28 {offsets = [0, 1], sizes = [16, 8], strides = [1, 1]} : vector<16x10xbf16> to vector<16x8xbf16>
      %cst_26 = arith.constant dense<0.000000e+00> : vector<16x8xf32>
      %37 = tpu.matmul %35, %36, %cst_26 {dimension_numbers = #tpu.dot_dimension_numbers<[1], [0], [0], [1], [0, 0, 1, 1], [], []>} : vector<16x16xbf16>, vector<16x8xbf16>, vector<16x8xf32> -> vector<16x8xf32>
      %38 = arith.addf %33, %37 : vector<16x8xf32>
      %c5 = arith.constant 5 : index
      %c0_27 = arith.constant 0 : index
      %c0_28 = arith.constant 0 : index
      %39 = vector.load %arg4[%c5, %c0_27, %c0_28] : memref<9x16x16xbf16, #tpu.memory_space<vmem>>, vector<1x16x16xbf16>
      %40 = vector.shape_cast %39 : vector<1x16x16xbf16> to vector<16x16xbf16>
      %41 = vector.extract_strided_slice %28 {offsets = [0, 2], sizes = [16, 8], strides = [1, 1]} : vector<16x10xbf16> to vector<16x8xbf16>
      %cst_29 = arith.constant dense<0.000000e+00> : vector<16x8xf32>
      %42 = tpu.matmul %40, %41, %cst_29 {dimension_numbers = #tpu.dot_dimension_numbers<[1], [0], [0], [1], [0, 0, 1, 1], [], []>} : vector<16x16xbf16>, vector<16x8xbf16>, vector<16x8xf32> -> vector<16x8xf32>
      %43 = arith.addf %38, %42 : vector<16x8xf32>
      %44 = arith.addi %0, %arg8 : i32
      %c2_i32 = arith.constant 2 : i32
      %45 = arith.addi %44, %c2_i32 : i32
      %c0_30 = arith.constant 0 : index
      %46 = arith.index_cast %45 : i32 to index
      %c0_31 = arith.constant 0 : index
      %c0_32 = arith.constant 0 : index
      %47 = vector.load %arg2[%c0_30, %46, %c0_31, %c0_32] : memref<1x10x16x10xbf16, #tpu.memory_space<vmem>>, vector<1x1x16x10xbf16>
      %48 = vector.shape_cast %47 : vector<1x1x16x10xbf16> to vector<16x10xbf16>
      %c6 = arith.constant 6 : index
      %c0_33 = arith.constant 0 : index
      %c0_34 = arith.constant 0 : index
      %49 = vector.load %arg4[%c6, %c0_33, %c0_34] : memref<9x16x16xbf16, #tpu.memory_space<vmem>>, vector<1x16x16xbf16>
      %50 = vector.shape_cast %49 : vector<1x16x16xbf16> to vector<16x16xbf16>
      %51 = vector.extract_strided_slice %48 {offsets = [0, 0], sizes = [16, 8], strides = [1, 1]} : vector<16x10xbf16> to vector<16x8xbf16>
      %cst_35 = arith.constant dense<0.000000e+00> : vector<16x8xf32>
      %52 = tpu.matmul %50, %51, %cst_35 {dimension_numbers = #tpu.dot_dimension_numbers<[1], [0], [0], [1], [0, 0, 1, 1], [], []>} : vector<16x16xbf16>, vector<16x8xbf16>, vector<16x8xf32> -> vector<16x8xf32>
      %53 = arith.addf %43, %52 : vector<16x8xf32>
      %c7 = arith.constant 7 : index
      %c0_36 = arith.constant 0 : index
      %c0_37 = arith.constant 0 : index
      %54 = vector.load %arg4[%c7, %c0_36, %c0_37] : memref<9x16x16xbf16, #tpu.memory_space<vmem>>, vector<1x16x16xbf16>
      %55 = vector.shape_cast %54 : vector<1x16x16xbf16> to vector<16x16xbf16>
      %56 = vector.extract_strided_slice %48 {offsets = [0, 1], sizes = [16, 8], strides = [1, 1]} : vector<16x10xbf16> to vector<16x8xbf16>
      %cst_38 = arith.constant dense<0.000000e+00> : vector<16x8xf32>
      %57 = tpu.matmul %55, %56, %cst_38 {dimension_numbers = #tpu.dot_dimension_numbers<[1], [0], [0], [1], [0, 0, 1, 1], [], []>} : vector<16x16xbf16>, vector<16x8xbf16>, vector<16x8xf32> -> vector<16x8xf32>
      %58 = arith.addf %53, %57 : vector<16x8xf32>
      %c8 = arith.constant 8 : index
      %c0_39 = arith.constant 0 : index
      %c0_40 = arith.constant 0 : index
      %59 = vector.load %arg4[%c8, %c0_39, %c0_40] : memref<9x16x16xbf16, #tpu.memory_space<vmem>>, vector<1x16x16xbf16>
      %60 = vector.shape_cast %59 : vector<1x16x16xbf16> to vector<16x16xbf16>
      %61 = vector.extract_strided_slice %48 {offsets = [0, 2], sizes = [16, 8], strides = [1, 1]} : vector<16x10xbf16> to vector<16x8xbf16>
      %cst_41 = arith.constant dense<0.000000e+00> : vector<16x8xf32>
      %62 = tpu.matmul %60, %61, %cst_41 {dimension_numbers = #tpu.dot_dimension_numbers<[1], [0], [0], [1], [0, 0, 1, 1], [], []>} : vector<16x16xbf16>, vector<16x8xbf16>, vector<16x8xf32> -> vector<16x8xf32>
      %63 = arith.addf %58, %62 : vector<16x8xf32>
      %64 = arith.addi %0, %arg8 : i32
      %c0_i32_42 = arith.constant 0 : i32
      %65 = arith.addi %64, %c0_i32_42 : i32
      %c0_43 = arith.constant 0 : index
      %66 = arith.index_cast %65 : i32 to index
      %c0_44 = arith.constant 0 : index
      %c0_45 = arith.constant 0 : index
      %67 = vector.load %arg3[%c0_43, %66, %c0_44, %c0_45] : memref<1x10x32x10xbf16, #tpu.memory_space<vmem>>, vector<1x1x32x10xbf16>
      %68 = vector.shape_cast %67 : vector<1x1x32x10xbf16> to vector<32x10xbf16>
      %c0_46 = arith.constant 0 : index
      %c0_47 = arith.constant 0 : index
      %c0_48 = arith.constant 0 : index
      %69 = vector.load %arg5[%c0_46, %c0_47, %c0_48] : memref<9x16x32xbf16, #tpu.memory_space<vmem>>, vector<1x16x32xbf16>
      %70 = vector.shape_cast %69 : vector<1x16x32xbf16> to vector<16x32xbf16>
      %71 = vector.extract_strided_slice %68 {offsets = [0, 0], sizes = [32, 8], strides = [1, 1]} : vector<32x10xbf16> to vector<32x8xbf16>
      %cst_49 = arith.constant dense<0.000000e+00> : vector<16x8xf32>
      %72 = tpu.matmul %70, %71, %cst_49 {dimension_numbers = #tpu.dot_dimension_numbers<[1], [0], [0], [1], [0, 0, 1, 1], [], []>} : vector<16x32xbf16>, vector<32x8xbf16>, vector<16x8xf32> -> vector<16x8xf32>
      %73 = arith.addf %63, %72 : vector<16x8xf32>
      %c1_50 = arith.constant 1 : index
      %c0_51 = arith.constant 0 : index
      %c0_52 = arith.constant 0 : index
      %74 = vector.load %arg5[%c1_50, %c0_51, %c0_52] : memref<9x16x32xbf16, #tpu.memory_space<vmem>>, vector<1x16x32xbf16>
      %75 = vector.shape_cast %74 : vector<1x16x32xbf16> to vector<16x32xbf16>
      %76 = vector.extract_strided_slice %68 {offsets = [0, 1], sizes = [32, 8], strides = [1, 1]} : vector<32x10xbf16> to vector<32x8xbf16>
      %cst_53 = arith.constant dense<0.000000e+00> : vector<16x8xf32>
      %77 = tpu.matmul %75, %76, %cst_53 {dimension_numbers = #tpu.dot_dimension_numbers<[1], [0], [0], [1], [0, 0, 1, 1], [], []>} : vector<16x32xbf16>, vector<32x8xbf16>, vector<16x8xf32> -> vector<16x8xf32>
      %78 = arith.addf %73, %77 : vector<16x8xf32>
      %c2_54 = arith.constant 2 : index
      %c0_55 = arith.constant 0 : index
      %c0_56 = arith.constant 0 : index
      %79 = vector.load %arg5[%c2_54, %c0_55, %c0_56] : memref<9x16x32xbf16, #tpu.memory_space<vmem>>, vector<1x16x32xbf16>
      %80 = vector.shape_cast %79 : vector<1x16x32xbf16> to vector<16x32xbf16>
      %81 = vector.extract_strided_slice %68 {offsets = [0, 2], sizes = [32, 8], strides = [1, 1]} : vector<32x10xbf16> to vector<32x8xbf16>
      %cst_57 = arith.constant dense<0.000000e+00> : vector<16x8xf32>
      %82 = tpu.matmul %80, %81, %cst_57 {dimension_numbers = #tpu.dot_dimension_numbers<[1], [0], [0], [1], [0, 0, 1, 1], [], []>} : vector<16x32xbf16>, vector<32x8xbf16>, vector<16x8xf32> -> vector<16x8xf32>
      %83 = arith.addf %78, %82 : vector<16x8xf32>
      %84 = arith.addi %0, %arg8 : i32
      %c1_i32_58 = arith.constant 1 : i32
      %85 = arith.addi %84, %c1_i32_58 : i32
      %c0_59 = arith.constant 0 : index
      %86 = arith.index_cast %85 : i32 to index
      %c0_60 = arith.constant 0 : index
      %c0_61 = arith.constant 0 : index
      %87 = vector.load %arg3[%c0_59, %86, %c0_60, %c0_61] : memref<1x10x32x10xbf16, #tpu.memory_space<vmem>>, vector<1x1x32x10xbf16>
      %88 = vector.shape_cast %87 : vector<1x1x32x10xbf16> to vector<32x10xbf16>
      %c3_62 = arith.constant 3 : index
      %c0_63 = arith.constant 0 : index
      %c0_64 = arith.constant 0 : index
      %89 = vector.load %arg5[%c3_62, %c0_63, %c0_64] : memref<9x16x32xbf16, #tpu.memory_space<vmem>>, vector<1x16x32xbf16>
      %90 = vector.shape_cast %89 : vector<1x16x32xbf16> to vector<16x32xbf16>
      %91 = vector.extract_strided_slice %88 {offsets = [0, 0], sizes = [32, 8], strides = [1, 1]} : vector<32x10xbf16> to vector<32x8xbf16>
      %cst_65 = arith.constant dense<0.000000e+00> : vector<16x8xf32>
      %92 = tpu.matmul %90, %91, %cst_65 {dimension_numbers = #tpu.dot_dimension_numbers<[1], [0], [0], [1], [0, 0, 1, 1], [], []>} : vector<16x32xbf16>, vector<32x8xbf16>, vector<16x8xf32> -> vector<16x8xf32>
      %93 = arith.addf %83, %92 : vector<16x8xf32>
      %c4_66 = arith.constant 4 : index
      %c0_67 = arith.constant 0 : index
      %c0_68 = arith.constant 0 : index
      %94 = vector.load %arg5[%c4_66, %c0_67, %c0_68] : memref<9x16x32xbf16, #tpu.memory_space<vmem>>, vector<1x16x32xbf16>
      %95 = vector.shape_cast %94 : vector<1x16x32xbf16> to vector<16x32xbf16>
      %96 = vector.extract_strided_slice %88 {offsets = [0, 1], sizes = [32, 8], strides = [1, 1]} : vector<32x10xbf16> to vector<32x8xbf16>
      %cst_69 = arith.constant dense<0.000000e+00> : vector<16x8xf32>
      %97 = tpu.matmul %95, %96, %cst_69 {dimension_numbers = #tpu.dot_dimension_numbers<[1], [0], [0], [1], [0, 0, 1, 1], [], []>} : vector<16x32xbf16>, vector<32x8xbf16>, vector<16x8xf32> -> vector<16x8xf32>
      %98 = arith.addf %93, %97 : vector<16x8xf32>
      %c5_70 = arith.constant 5 : index
      %c0_71 = arith.constant 0 : index
      %c0_72 = arith.constant 0 : index
      %99 = vector.load %arg5[%c5_70, %c0_71, %c0_72] : memref<9x16x32xbf16, #tpu.memory_space<vmem>>, vector<1x16x32xbf16>
      %100 = vector.shape_cast %99 : vector<1x16x32xbf16> to vector<16x32xbf16>
      %101 = vector.extract_strided_slice %88 {offsets = [0, 2], sizes = [32, 8], strides = [1, 1]} : vector<32x10xbf16> to vector<32x8xbf16>
      %cst_73 = arith.constant dense<0.000000e+00> : vector<16x8xf32>
      %102 = tpu.matmul %100, %101, %cst_73 {dimension_numbers = #tpu.dot_dimension_numbers<[1], [0], [0], [1], [0, 0, 1, 1], [], []>} : vector<16x32xbf16>, vector<32x8xbf16>, vector<16x8xf32> -> vector<16x8xf32>
      %103 = arith.addf %98, %102 : vector<16x8xf32>
      %104 = arith.addi %0, %arg8 : i32
      %c2_i32_74 = arith.constant 2 : i32
      %105 = arith.addi %104, %c2_i32_74 : i32
      %c0_75 = arith.constant 0 : index
      %106 = arith.index_cast %105 : i32 to index
      %c0_76 = arith.constant 0 : index
      %c0_77 = arith.constant 0 : index
      %107 = vector.load %arg3[%c0_75, %106, %c0_76, %c0_77] : memref<1x10x32x10xbf16, #tpu.memory_space<vmem>>, vector<1x1x32x10xbf16>
      %108 = vector.shape_cast %107 : vector<1x1x32x10xbf16> to vector<32x10xbf16>
      %c6_78 = arith.constant 6 : index
      %c0_79 = arith.constant 0 : index
      %c0_80 = arith.constant 0 : index
      %109 = vector.load %arg5[%c6_78, %c0_79, %c0_80] : memref<9x16x32xbf16, #tpu.memory_space<vmem>>, vector<1x16x32xbf16>
      %110 = vector.shape_cast %109 : vector<1x16x32xbf16> to vector<16x32xbf16>
      %111 = vector.extract_strided_slice %108 {offsets = [0, 0], sizes = [32, 8], strides = [1, 1]} : vector<32x10xbf16> to vector<32x8xbf16>
      %cst_81 = arith.constant dense<0.000000e+00> : vector<16x8xf32>
      %112 = tpu.matmul %110, %111, %cst_81 {dimension_numbers = #tpu.dot_dimension_numbers<[1], [0], [0], [1], [0, 0, 1, 1], [], []>} : vector<16x32xbf16>, vector<32x8xbf16>, vector<16x8xf32> -> vector<16x8xf32>
      %113 = arith.addf %103, %112 : vector<16x8xf32>
      %c7_82 = arith.constant 7 : index
      %c0_83 = arith.constant 0 : index
      %c0_84 = arith.constant 0 : index
      %114 = vector.load %arg5[%c7_82, %c0_83, %c0_84] : memref<9x16x32xbf16, #tpu.memory_space<vmem>>, vector<1x16x32xbf16>
      %115 = vector.shape_cast %114 : vector<1x16x32xbf16> to vector<16x32xbf16>
      %116 = vector.extract_strided_slice %108 {offsets = [0, 1], sizes = [32, 8], strides = [1, 1]} : vector<32x10xbf16> to vector<32x8xbf16>
      %cst_85 = arith.constant dense<0.000000e+00> : vector<16x8xf32>
      %117 = tpu.matmul %115, %116, %cst_85 {dimension_numbers = #tpu.dot_dimension_numbers<[1], [0], [0], [1], [0, 0, 1, 1], [], []>} : vector<16x32xbf16>, vector<32x8xbf16>, vector<16x8xf32> -> vector<16x8xf32>
      %118 = arith.addf %113, %117 : vector<16x8xf32>
      %c8_86 = arith.constant 8 : index
      %c0_87 = arith.constant 0 : index
      %c0_88 = arith.constant 0 : index
      %119 = vector.load %arg5[%c8_86, %c0_87, %c0_88] : memref<9x16x32xbf16, #tpu.memory_space<vmem>>, vector<1x16x32xbf16>
      %120 = vector.shape_cast %119 : vector<1x16x32xbf16> to vector<16x32xbf16>
      %121 = vector.extract_strided_slice %108 {offsets = [0, 2], sizes = [32, 8], strides = [1, 1]} : vector<32x10xbf16> to vector<32x8xbf16>
      %cst_89 = arith.constant dense<0.000000e+00> : vector<16x8xf32>
      %122 = tpu.matmul %120, %121, %cst_89 {dimension_numbers = #tpu.dot_dimension_numbers<[1], [0], [0], [1], [0, 0, 1, 1], [], []>} : vector<16x32xbf16>, vector<32x8xbf16>, vector<16x8xf32> -> vector<16x8xf32>
      %123 = arith.addf %118, %122 : vector<16x8xf32>
      %124 = vector.broadcast %1 : vector<16x1xf32> to vector<16x8xf32>
      %125 = arith.addf %123, %124 : vector<16x8xf32>
      %cst_90 = arith.constant 0.000000e+00 : f32
      %126 = vector.broadcast %cst_90 : f32 to vector<16x8xf32>
      %127 = arith.maximumf %125, %126 : vector<16x8xf32>
      %128 = arith.truncf %127 : vector<16x8xf32> to vector<16x8xbf16>
      %c0_91 = arith.constant 0 : index
      %129 = arith.index_cast %arg8 : i32 to index
      %c0_92 = arith.constant 0 : index
      %c0_93 = arith.constant 0 : index
      %130 = vector.load %arg7[%c0_91, %129, %c0_92, %c0_93] : memref<1x8x16x8xbf16, #tpu.memory_space<vmem>>, vector<1x1x16x8xbf16>
      %131 = vector.shape_cast %130 : vector<1x1x16x8xbf16> to vector<16x8xbf16>
      %132 = vector.shape_cast %128 : vector<16x8xbf16> to vector<1x1x16x8xbf16>
      tpu.vector_store %arg7[%c0_91, %129, %c0_92, %c0_93], %132 {strides = array<i32>} : memref<1x8x16x8xbf16, #tpu.memory_space<vmem>>, vector<1x1x16x8xbf16>,
    }
    %c8_i32_2 = arith.constant 8 : i32
    return
  }
  func.func @transform_0(%arg0: i32, %arg1: i32) -> (i32, i32, i32, i32) {
    %c0_i32 = arith.constant 0 : i32
    %c0_i32_0 = arith.constant 0 : i32
    %c0_i32_1 = arith.constant 0 : i32
    %c0_i32_2 = arith.constant 0 : i32
    return %arg0, %c0_i32, %c0_i32_0, %c0_i32_1 : i32, i32, i32, i32
  }
  func.func @transform_1(%arg0: i32, %arg1: i32) -> (i32, i32, i32, i32) {
    %c0_i32 = arith.constant 0 : i32
    %c0_i32_0 = arith.constant 0 : i32
    %c0_i32_1 = arith.constant 0 : i32
    %c0_i32_2 = arith.constant 0 : i32
    return %arg0, %c0_i32, %c0_i32_0, %c0_i32_1 : i32, i32, i32, i32
  }
  func.func @transform_2(%arg0: i32, %arg1: i32) -> (i32, i32, i32) {
    %c0_i32 = arith.constant 0 : i32
    %c0_i32_0 = arith.constant 0 : i32
    %c0_i32_1 = arith.constant 0 : i32
    %c0_i32_2 = arith.constant 0 : i32
    return %c0_i32, %c0_i32_0, %c0_i32_1 : i32, i32, i32
  }
  func.func @transform_3(%arg0: i32, %arg1: i32) -> (i32, i32, i32) {
    %c0_i32 = arith.constant 0 : i32
    %c0_i32_0 = arith.constant 0 : i32
    %c0_i32_1 = arith.constant 0 : i32
    %c0_i32_2 = arith.constant 0 : i32
    return %c0_i32, %c0_i32_0, %c0_i32_1 : i32, i32, i32
  }
  func.func @transform_4(%arg0: i32, %arg1: i32) -> (i32, i32) {
    %c0_i32 = arith.constant 0 : i32
    %c0_i32_0 = arith.constant 0 : i32
    %c0_i32_1 = arith.constant 0 : i32
    return %c0_i32, %c0_i32_0 : i32, i32
  }
  func.func @transform_5(%arg0: i32, %arg1: i32) -> (i32, i32, i32, i32) {
    %c0_i32 = arith.constant 0 : i32
    %c0_i32_0 = arith.constant 0 : i32
    %c0_i32_1 = arith.constant 0 : i32
    return %arg0, %arg1, %c0_i32, %c0_i32_0 : i32, i32, i32, i32
  }
}

module attributes {stable_mosaic.version = 11 : i64} {
  func.func @_conv3x3_kernel(%arg0: i32, %arg1: i32, %arg2: memref<1x18x8x18xbf16, #tpu.memory_space<vmem>>, %arg3: memref<1x18x16x18xbf16, #tpu.memory_space<vmem>>, %arg4: memref<9x8x8xbf16, #tpu.memory_space<vmem>>, %arg5: memref<9x8x16xbf16, #tpu.memory_space<vmem>>, %arg6: memref<8x1xf32, #tpu.memory_space<vmem>>, %arg7: memref<1x16x8x16xbf16, #tpu.memory_space<vmem>>) attributes {dimension_semantics = [#tpu.dimension_semantics<parallel>, #tpu.dimension_semantics<parallel>], iteration_bounds = array<i64: 2, 1>, scalar_prefetch = 0 : i64, scratch_operands = 0 : i64, tpu.core_type = #tpu.core_type<tc>, window_params = [{transform_indices = @transform_0, window_bounds = array<i64: 1, 18, 8, 18>}, {transform_indices = @transform_1, window_bounds = array<i64: 1, 18, 16, 18>}, {pipeline_mode = #tpu.pipeline_mode<synchronous>, transform_indices = @transform_2, window_bounds = array<i64: 9, 8, 8>}, {pipeline_mode = #tpu.pipeline_mode<synchronous>, transform_indices = @transform_3, window_bounds = array<i64: 9, 8, 16>}, {pipeline_mode = #tpu.pipeline_mode<synchronous>, transform_indices = @transform_4, window_bounds = array<i64: 8, 1>}, {transform_indices = @transform_5, window_bounds = array<i64: 1, 16, 8, 16>}]} {
    %c16_i32 = arith.constant 16 : i32
    %0 = arith.muli %arg1, %c16_i32 : i32
    %c0 = arith.constant 0 : index
    %c0_0 = arith.constant 0 : index
    %1 = vector.load %arg6[%c0, %c0_0] : memref<8x1xf32, #tpu.memory_space<vmem>>, vector<8x1xf32>
    %c0_i32 = arith.constant 0 : i32
    %c16_i32_1 = arith.constant 16 : i32
    %2 = arith.addi %c0_i32, %c16_i32_1 : i32
    %c1_i32 = arith.constant 1 : i32
    scf.for %arg8 = %c0_i32 to %2 step %c1_i32  : i32 {
      %cst = arith.constant 0.000000e+00 : f32
      %3 = vector.broadcast %cst : f32 to vector<8x16xf32>
      %4 = arith.addi %0, %arg8 : i32
      %c0_i32_3 = arith.constant 0 : i32
      %5 = arith.addi %4, %c0_i32_3 : i32
      %c0_4 = arith.constant 0 : index
      %6 = arith.index_cast %5 : i32 to index
      %c0_5 = arith.constant 0 : index
      %c0_6 = arith.constant 0 : index
      %7 = vector.load %arg2[%c0_4, %6, %c0_5, %c0_6] : memref<1x18x8x18xbf16, #tpu.memory_space<vmem>>, vector<1x1x8x18xbf16>
      %8 = vector.shape_cast %7 : vector<1x1x8x18xbf16> to vector<8x18xbf16>
      %c0_7 = arith.constant 0 : index
      %c0_8 = arith.constant 0 : index
      %c0_9 = arith.constant 0 : index
      %9 = vector.load %arg4[%c0_7, %c0_8, %c0_9] : memref<9x8x8xbf16, #tpu.memory_space<vmem>>, vector<1x8x8xbf16>
      %10 = vector.shape_cast %9 : vector<1x8x8xbf16> to vector<8x8xbf16>
      %11 = vector.extract_strided_slice %8 {offsets = [0, 0], sizes = [8, 16], strides = [1, 1]} : vector<8x18xbf16> to vector<8x16xbf16>
      %cst_10 = arith.constant dense<0.000000e+00> : vector<8x16xf32>
      %12 = tpu.matmul %10, %11, %cst_10 {dimension_numbers = #tpu.dot_dimension_numbers<[1], [0], [0], [1], [0, 0, 1, 1], [], []>} : vector<8x8xbf16>, vector<8x16xbf16>, vector<8x16xf32> -> vector<8x16xf32>
      %13 = arith.addf %3, %12 : vector<8x16xf32>
      %c1 = arith.constant 1 : index
      %c0_11 = arith.constant 0 : index
      %c0_12 = arith.constant 0 : index
      %14 = vector.load %arg4[%c1, %c0_11, %c0_12] : memref<9x8x8xbf16, #tpu.memory_space<vmem>>, vector<1x8x8xbf16>
      %15 = vector.shape_cast %14 : vector<1x8x8xbf16> to vector<8x8xbf16>
      %16 = vector.extract_strided_slice %8 {offsets = [0, 1], sizes = [8, 16], strides = [1, 1]} : vector<8x18xbf16> to vector<8x16xbf16>
      %cst_13 = arith.constant dense<0.000000e+00> : vector<8x16xf32>
      %17 = tpu.matmul %15, %16, %cst_13 {dimension_numbers = #tpu.dot_dimension_numbers<[1], [0], [0], [1], [0, 0, 1, 1], [], []>} : vector<8x8xbf16>, vector<8x16xbf16>, vector<8x16xf32> -> vector<8x16xf32>
      %18 = arith.addf %13, %17 : vector<8x16xf32>
      %c2 = arith.constant 2 : index
      %c0_14 = arith.constant 0 : index
      %c0_15 = arith.constant 0 : index
      %19 = vector.load %arg4[%c2, %c0_14, %c0_15] : memref<9x8x8xbf16, #tpu.memory_space<vmem>>, vector<1x8x8xbf16>
      %20 = vector.shape_cast %19 : vector<1x8x8xbf16> to vector<8x8xbf16>
      %21 = vector.extract_strided_slice %8 {offsets = [0, 2], sizes = [8, 16], strides = [1, 1]} : vector<8x18xbf16> to vector<8x16xbf16>
      %cst_16 = arith.constant dense<0.000000e+00> : vector<8x16xf32>
      %22 = tpu.matmul %20, %21, %cst_16 {dimension_numbers = #tpu.dot_dimension_numbers<[1], [0], [0], [1], [0, 0, 1, 1], [], []>} : vector<8x8xbf16>, vector<8x16xbf16>, vector<8x16xf32> -> vector<8x16xf32>
      %23 = arith.addf %18, %22 : vector<8x16xf32>
      %24 = arith.addi %0, %arg8 : i32
      %c1_i32_17 = arith.constant 1 : i32
      %25 = arith.addi %24, %c1_i32_17 : i32
      %c0_18 = arith.constant 0 : index
      %26 = arith.index_cast %25 : i32 to index
      %c0_19 = arith.constant 0 : index
      %c0_20 = arith.constant 0 : index
      %27 = vector.load %arg2[%c0_18, %26, %c0_19, %c0_20] : memref<1x18x8x18xbf16, #tpu.memory_space<vmem>>, vector<1x1x8x18xbf16>
      %28 = vector.shape_cast %27 : vector<1x1x8x18xbf16> to vector<8x18xbf16>
      %c3 = arith.constant 3 : index
      %c0_21 = arith.constant 0 : index
      %c0_22 = arith.constant 0 : index
      %29 = vector.load %arg4[%c3, %c0_21, %c0_22] : memref<9x8x8xbf16, #tpu.memory_space<vmem>>, vector<1x8x8xbf16>
      %30 = vector.shape_cast %29 : vector<1x8x8xbf16> to vector<8x8xbf16>
      %31 = vector.extract_strided_slice %28 {offsets = [0, 0], sizes = [8, 16], strides = [1, 1]} : vector<8x18xbf16> to vector<8x16xbf16>
      %cst_23 = arith.constant dense<0.000000e+00> : vector<8x16xf32>
      %32 = tpu.matmul %30, %31, %cst_23 {dimension_numbers = #tpu.dot_dimension_numbers<[1], [0], [0], [1], [0, 0, 1, 1], [], []>} : vector<8x8xbf16>, vector<8x16xbf16>, vector<8x16xf32> -> vector<8x16xf32>
      %33 = arith.addf %23, %32 : vector<8x16xf32>
      %c4 = arith.constant 4 : index
      %c0_24 = arith.constant 0 : index
      %c0_25 = arith.constant 0 : index
      %34 = vector.load %arg4[%c4, %c0_24, %c0_25] : memref<9x8x8xbf16, #tpu.memory_space<vmem>>, vector<1x8x8xbf16>
      %35 = vector.shape_cast %34 : vector<1x8x8xbf16> to vector<8x8xbf16>
      %36 = vector.extract_strided_slice %28 {offsets = [0, 1], sizes = [8, 16], strides = [1, 1]} : vector<8x18xbf16> to vector<8x16xbf16>
      %cst_26 = arith.constant dense<0.000000e+00> : vector<8x16xf32>
      %37 = tpu.matmul %35, %36, %cst_26 {dimension_numbers = #tpu.dot_dimension_numbers<[1], [0], [0], [1], [0, 0, 1, 1], [], []>} : vector<8x8xbf16>, vector<8x16xbf16>, vector<8x16xf32> -> vector<8x16xf32>
      %38 = arith.addf %33, %37 : vector<8x16xf32>
      %c5 = arith.constant 5 : index
      %c0_27 = arith.constant 0 : index
      %c0_28 = arith.constant 0 : index
      %39 = vector.load %arg4[%c5, %c0_27, %c0_28] : memref<9x8x8xbf16, #tpu.memory_space<vmem>>, vector<1x8x8xbf16>
      %40 = vector.shape_cast %39 : vector<1x8x8xbf16> to vector<8x8xbf16>
      %41 = vector.extract_strided_slice %28 {offsets = [0, 2], sizes = [8, 16], strides = [1, 1]} : vector<8x18xbf16> to vector<8x16xbf16>
      %cst_29 = arith.constant dense<0.000000e+00> : vector<8x16xf32>
      %42 = tpu.matmul %40, %41, %cst_29 {dimension_numbers = #tpu.dot_dimension_numbers<[1], [0], [0], [1], [0, 0, 1, 1], [], []>} : vector<8x8xbf16>, vector<8x16xbf16>, vector<8x16xf32> -> vector<8x16xf32>
      %43 = arith.addf %38, %42 : vector<8x16xf32>
      %44 = arith.addi %0, %arg8 : i32
      %c2_i32 = arith.constant 2 : i32
      %45 = arith.addi %44, %c2_i32 : i32
      %c0_30 = arith.constant 0 : index
      %46 = arith.index_cast %45 : i32 to index
      %c0_31 = arith.constant 0 : index
      %c0_32 = arith.constant 0 : index
      %47 = vector.load %arg2[%c0_30, %46, %c0_31, %c0_32] : memref<1x18x8x18xbf16, #tpu.memory_space<vmem>>, vector<1x1x8x18xbf16>
      %48 = vector.shape_cast %47 : vector<1x1x8x18xbf16> to vector<8x18xbf16>
      %c6 = arith.constant 6 : index
      %c0_33 = arith.constant 0 : index
      %c0_34 = arith.constant 0 : index
      %49 = vector.load %arg4[%c6, %c0_33, %c0_34] : memref<9x8x8xbf16, #tpu.memory_space<vmem>>, vector<1x8x8xbf16>
      %50 = vector.shape_cast %49 : vector<1x8x8xbf16> to vector<8x8xbf16>
      %51 = vector.extract_strided_slice %48 {offsets = [0, 0], sizes = [8, 16], strides = [1, 1]} : vector<8x18xbf16> to vector<8x16xbf16>
      %cst_35 = arith.constant dense<0.000000e+00> : vector<8x16xf32>
      %52 = tpu.matmul %50, %51, %cst_35 {dimension_numbers = #tpu.dot_dimension_numbers<[1], [0], [0], [1], [0, 0, 1, 1], [], []>} : vector<8x8xbf16>, vector<8x16xbf16>, vector<8x16xf32> -> vector<8x16xf32>
      %53 = arith.addf %43, %52 : vector<8x16xf32>
      %c7 = arith.constant 7 : index
      %c0_36 = arith.constant 0 : index
      %c0_37 = arith.constant 0 : index
      %54 = vector.load %arg4[%c7, %c0_36, %c0_37] : memref<9x8x8xbf16, #tpu.memory_space<vmem>>, vector<1x8x8xbf16>
      %55 = vector.shape_cast %54 : vector<1x8x8xbf16> to vector<8x8xbf16>
      %56 = vector.extract_strided_slice %48 {offsets = [0, 1], sizes = [8, 16], strides = [1, 1]} : vector<8x18xbf16> to vector<8x16xbf16>
      %cst_38 = arith.constant dense<0.000000e+00> : vector<8x16xf32>
      %57 = tpu.matmul %55, %56, %cst_38 {dimension_numbers = #tpu.dot_dimension_numbers<[1], [0], [0], [1], [0, 0, 1, 1], [], []>} : vector<8x8xbf16>, vector<8x16xbf16>, vector<8x16xf32> -> vector<8x16xf32>
      %58 = arith.addf %53, %57 : vector<8x16xf32>
      %c8 = arith.constant 8 : index
      %c0_39 = arith.constant 0 : index
      %c0_40 = arith.constant 0 : index
      %59 = vector.load %arg4[%c8, %c0_39, %c0_40] : memref<9x8x8xbf16, #tpu.memory_space<vmem>>, vector<1x8x8xbf16>
      %60 = vector.shape_cast %59 : vector<1x8x8xbf16> to vector<8x8xbf16>
      %61 = vector.extract_strided_slice %48 {offsets = [0, 2], sizes = [8, 16], strides = [1, 1]} : vector<8x18xbf16> to vector<8x16xbf16>
      %cst_41 = arith.constant dense<0.000000e+00> : vector<8x16xf32>
      %62 = tpu.matmul %60, %61, %cst_41 {dimension_numbers = #tpu.dot_dimension_numbers<[1], [0], [0], [1], [0, 0, 1, 1], [], []>} : vector<8x8xbf16>, vector<8x16xbf16>, vector<8x16xf32> -> vector<8x16xf32>
      %63 = arith.addf %58, %62 : vector<8x16xf32>
      %64 = arith.addi %0, %arg8 : i32
      %c0_i32_42 = arith.constant 0 : i32
      %65 = arith.addi %64, %c0_i32_42 : i32
      %c0_43 = arith.constant 0 : index
      %66 = arith.index_cast %65 : i32 to index
      %c0_44 = arith.constant 0 : index
      %c0_45 = arith.constant 0 : index
      %67 = vector.load %arg3[%c0_43, %66, %c0_44, %c0_45] : memref<1x18x16x18xbf16, #tpu.memory_space<vmem>>, vector<1x1x16x18xbf16>
      %68 = vector.shape_cast %67 : vector<1x1x16x18xbf16> to vector<16x18xbf16>
      %c0_46 = arith.constant 0 : index
      %c0_47 = arith.constant 0 : index
      %c0_48 = arith.constant 0 : index
      %69 = vector.load %arg5[%c0_46, %c0_47, %c0_48] : memref<9x8x16xbf16, #tpu.memory_space<vmem>>, vector<1x8x16xbf16>
      %70 = vector.shape_cast %69 : vector<1x8x16xbf16> to vector<8x16xbf16>
      %71 = vector.extract_strided_slice %68 {offsets = [0, 0], sizes = [16, 16], strides = [1, 1]} : vector<16x18xbf16> to vector<16x16xbf16>
      %cst_49 = arith.constant dense<0.000000e+00> : vector<8x16xf32>
      %72 = tpu.matmul %70, %71, %cst_49 {dimension_numbers = #tpu.dot_dimension_numbers<[1], [0], [0], [1], [0, 0, 1, 1], [], []>} : vector<8x16xbf16>, vector<16x16xbf16>, vector<8x16xf32> -> vector<8x16xf32>
      %73 = arith.addf %63, %72 : vector<8x16xf32>
      %c1_50 = arith.constant 1 : index
      %c0_51 = arith.constant 0 : index
      %c0_52 = arith.constant 0 : index
      %74 = vector.load %arg5[%c1_50, %c0_51, %c0_52] : memref<9x8x16xbf16, #tpu.memory_space<vmem>>, vector<1x8x16xbf16>
      %75 = vector.shape_cast %74 : vector<1x8x16xbf16> to vector<8x16xbf16>
      %76 = vector.extract_strided_slice %68 {offsets = [0, 1], sizes = [16, 16], strides = [1, 1]} : vector<16x18xbf16> to vector<16x16xbf16>
      %cst_53 = arith.constant dense<0.000000e+00> : vector<8x16xf32>
      %77 = tpu.matmul %75, %76, %cst_53 {dimension_numbers = #tpu.dot_dimension_numbers<[1], [0], [0], [1], [0, 0, 1, 1], [], []>} : vector<8x16xbf16>, vector<16x16xbf16>, vector<8x16xf32> -> vector<8x16xf32>
      %78 = arith.addf %73, %77 : vector<8x16xf32>
      %c2_54 = arith.constant 2 : index
      %c0_55 = arith.constant 0 : index
      %c0_56 = arith.constant 0 : index
      %79 = vector.load %arg5[%c2_54, %c0_55, %c0_56] : memref<9x8x16xbf16, #tpu.memory_space<vmem>>, vector<1x8x16xbf16>
      %80 = vector.shape_cast %79 : vector<1x8x16xbf16> to vector<8x16xbf16>
      %81 = vector.extract_strided_slice %68 {offsets = [0, 2], sizes = [16, 16], strides = [1, 1]} : vector<16x18xbf16> to vector<16x16xbf16>
      %cst_57 = arith.constant dense<0.000000e+00> : vector<8x16xf32>
      %82 = tpu.matmul %80, %81, %cst_57 {dimension_numbers = #tpu.dot_dimension_numbers<[1], [0], [0], [1], [0, 0, 1, 1], [], []>} : vector<8x16xbf16>, vector<16x16xbf16>, vector<8x16xf32> -> vector<8x16xf32>
      %83 = arith.addf %78, %82 : vector<8x16xf32>
      %84 = arith.addi %0, %arg8 : i32
      %c1_i32_58 = arith.constant 1 : i32
      %85 = arith.addi %84, %c1_i32_58 : i32
      %c0_59 = arith.constant 0 : index
      %86 = arith.index_cast %85 : i32 to index
      %c0_60 = arith.constant 0 : index
      %c0_61 = arith.constant 0 : index
      %87 = vector.load %arg3[%c0_59, %86, %c0_60, %c0_61] : memref<1x18x16x18xbf16, #tpu.memory_space<vmem>>, vector<1x1x16x18xbf16>
      %88 = vector.shape_cast %87 : vector<1x1x16x18xbf16> to vector<16x18xbf16>
      %c3_62 = arith.constant 3 : index
      %c0_63 = arith.constant 0 : index
      %c0_64 = arith.constant 0 : index
      %89 = vector.load %arg5[%c3_62, %c0_63, %c0_64] : memref<9x8x16xbf16, #tpu.memory_space<vmem>>, vector<1x8x16xbf16>
      %90 = vector.shape_cast %89 : vector<1x8x16xbf16> to vector<8x16xbf16>
      %91 = vector.extract_strided_slice %88 {offsets = [0, 0], sizes = [16, 16], strides = [1, 1]} : vector<16x18xbf16> to vector<16x16xbf16>
      %cst_65 = arith.constant dense<0.000000e+00> : vector<8x16xf32>
      %92 = tpu.matmul %90, %91, %cst_65 {dimension_numbers = #tpu.dot_dimension_numbers<[1], [0], [0], [1], [0, 0, 1, 1], [], []>} : vector<8x16xbf16>, vector<16x16xbf16>, vector<8x16xf32> -> vector<8x16xf32>
      %93 = arith.addf %83, %92 : vector<8x16xf32>
      %c4_66 = arith.constant 4 : index
      %c0_67 = arith.constant 0 : index
      %c0_68 = arith.constant 0 : index
      %94 = vector.load %arg5[%c4_66, %c0_67, %c0_68] : memref<9x8x16xbf16, #tpu.memory_space<vmem>>, vector<1x8x16xbf16>
      %95 = vector.shape_cast %94 : vector<1x8x16xbf16> to vector<8x16xbf16>
      %96 = vector.extract_strided_slice %88 {offsets = [0, 1], sizes = [16, 16], strides = [1, 1]} : vector<16x18xbf16> to vector<16x16xbf16>
      %cst_69 = arith.constant dense<0.000000e+00> : vector<8x16xf32>
      %97 = tpu.matmul %95, %96, %cst_69 {dimension_numbers = #tpu.dot_dimension_numbers<[1], [0], [0], [1], [0, 0, 1, 1], [], []>} : vector<8x16xbf16>, vector<16x16xbf16>, vector<8x16xf32> -> vector<8x16xf32>
      %98 = arith.addf %93, %97 : vector<8x16xf32>
      %c5_70 = arith.constant 5 : index
      %c0_71 = arith.constant 0 : index
      %c0_72 = arith.constant 0 : index
      %99 = vector.load %arg5[%c5_70, %c0_71, %c0_72] : memref<9x8x16xbf16, #tpu.memory_space<vmem>>, vector<1x8x16xbf16>
      %100 = vector.shape_cast %99 : vector<1x8x16xbf16> to vector<8x16xbf16>
      %101 = vector.extract_strided_slice %88 {offsets = [0, 2], sizes = [16, 16], strides = [1, 1]} : vector<16x18xbf16> to vector<16x16xbf16>
      %cst_73 = arith.constant dense<0.000000e+00> : vector<8x16xf32>
      %102 = tpu.matmul %100, %101, %cst_73 {dimension_numbers = #tpu.dot_dimension_numbers<[1], [0], [0], [1], [0, 0, 1, 1], [], []>} : vector<8x16xbf16>, vector<16x16xbf16>, vector<8x16xf32> -> vector<8x16xf32>
      %103 = arith.addf %98, %102 : vector<8x16xf32>
      %104 = arith.addi %0, %arg8 : i32
      %c2_i32_74 = arith.constant 2 : i32
      %105 = arith.addi %104, %c2_i32_74 : i32
      %c0_75 = arith.constant 0 : index
      %106 = arith.index_cast %105 : i32 to index
      %c0_76 = arith.constant 0 : index
      %c0_77 = arith.constant 0 : index
      %107 = vector.load %arg3[%c0_75, %106, %c0_76, %c0_77] : memref<1x18x16x18xbf16, #tpu.memory_space<vmem>>, vector<1x1x16x18xbf16>
      %108 = vector.shape_cast %107 : vector<1x1x16x18xbf16> to vector<16x18xbf16>
      %c6_78 = arith.constant 6 : index
      %c0_79 = arith.constant 0 : index
      %c0_80 = arith.constant 0 : index
      %109 = vector.load %arg5[%c6_78, %c0_79, %c0_80] : memref<9x8x16xbf16, #tpu.memory_space<vmem>>, vector<1x8x16xbf16>
      %110 = vector.shape_cast %109 : vector<1x8x16xbf16> to vector<8x16xbf16>
      %111 = vector.extract_strided_slice %108 {offsets = [0, 0], sizes = [16, 16], strides = [1, 1]} : vector<16x18xbf16> to vector<16x16xbf16>
      %cst_81 = arith.constant dense<0.000000e+00> : vector<8x16xf32>
      %112 = tpu.matmul %110, %111, %cst_81 {dimension_numbers = #tpu.dot_dimension_numbers<[1], [0], [0], [1], [0, 0, 1, 1], [], []>} : vector<8x16xbf16>, vector<16x16xbf16>, vector<8x16xf32> -> vector<8x16xf32>
      %113 = arith.addf %103, %112 : vector<8x16xf32>
      %c7_82 = arith.constant 7 : index
      %c0_83 = arith.constant 0 : index
      %c0_84 = arith.constant 0 : index
      %114 = vector.load %arg5[%c7_82, %c0_83, %c0_84] : memref<9x8x16xbf16, #tpu.memory_space<vmem>>, vector<1x8x16xbf16>
      %115 = vector.shape_cast %114 : vector<1x8x16xbf16> to vector<8x16xbf16>
      %116 = vector.extract_strided_slice %108 {offsets = [0, 1], sizes = [16, 16], strides = [1, 1]} : vector<16x18xbf16> to vector<16x16xbf16>
      %cst_85 = arith.constant dense<0.000000e+00> : vector<8x16xf32>
      %117 = tpu.matmul %115, %116, %cst_85 {dimension_numbers = #tpu.dot_dimension_numbers<[1], [0], [0], [1], [0, 0, 1, 1], [], []>} : vector<8x16xbf16>, vector<16x16xbf16>, vector<8x16xf32> -> vector<8x16xf32>
      %118 = arith.addf %113, %117 : vector<8x16xf32>
      %c8_86 = arith.constant 8 : index
      %c0_87 = arith.constant 0 : index
      %c0_88 = arith.constant 0 : index
      %119 = vector.load %arg5[%c8_86, %c0_87, %c0_88] : memref<9x8x16xbf16, #tpu.memory_space<vmem>>, vector<1x8x16xbf16>
      %120 = vector.shape_cast %119 : vector<1x8x16xbf16> to vector<8x16xbf16>
      %121 = vector.extract_strided_slice %108 {offsets = [0, 2], sizes = [16, 16], strides = [1, 1]} : vector<16x18xbf16> to vector<16x16xbf16>
      %cst_89 = arith.constant dense<0.000000e+00> : vector<8x16xf32>
      %122 = tpu.matmul %120, %121, %cst_89 {dimension_numbers = #tpu.dot_dimension_numbers<[1], [0], [0], [1], [0, 0, 1, 1], [], []>} : vector<8x16xbf16>, vector<16x16xbf16>, vector<8x16xf32> -> vector<8x16xf32>
      %123 = arith.addf %118, %122 : vector<8x16xf32>
      %124 = vector.broadcast %1 : vector<8x1xf32> to vector<8x16xf32>
      %125 = arith.addf %123, %124 : vector<8x16xf32>
      %cst_90 = arith.constant 0.000000e+00 : f32
      %126 = vector.broadcast %cst_90 : f32 to vector<8x16xf32>
      %127 = arith.maximumf %125, %126 : vector<8x16xf32>
      %128 = arith.truncf %127 : vector<8x16xf32> to vector<8x16xbf16>
      %c0_91 = arith.constant 0 : index
      %129 = arith.index_cast %arg8 : i32 to index
      %c0_92 = arith.constant 0 : index
      %c0_93 = arith.constant 0 : index
      %130 = vector.load %arg7[%c0_91, %129, %c0_92, %c0_93] : memref<1x16x8x16xbf16, #tpu.memory_space<vmem>>, vector<1x1x8x16xbf16>
      %131 = vector.shape_cast %130 : vector<1x1x8x16xbf16> to vector<8x16xbf16>
      %132 = vector.shape_cast %128 : vector<8x16xbf16> to vector<1x1x8x16xbf16>
      tpu.vector_store %arg7[%c0_91, %129, %c0_92, %c0_93], %132 {strides = array<i32>} : memref<1x16x8x16xbf16, #tpu.memory_space<vmem>>, vector<1x1x8x16xbf16>,
    }
    %c16_i32_2 = arith.constant 16 : i32
    return
  }
  func.func @transform_0(%arg0: i32, %arg1: i32) -> (i32, i32, i32, i32) {
    %c0_i32 = arith.constant 0 : i32
    %c0_i32_0 = arith.constant 0 : i32
    %c0_i32_1 = arith.constant 0 : i32
    %c0_i32_2 = arith.constant 0 : i32
    return %arg0, %c0_i32, %c0_i32_0, %c0_i32_1 : i32, i32, i32, i32
  }
  func.func @transform_1(%arg0: i32, %arg1: i32) -> (i32, i32, i32, i32) {
    %c0_i32 = arith.constant 0 : i32
    %c0_i32_0 = arith.constant 0 : i32
    %c0_i32_1 = arith.constant 0 : i32
    %c0_i32_2 = arith.constant 0 : i32
    return %arg0, %c0_i32, %c0_i32_0, %c0_i32_1 : i32, i32, i32, i32
  }
  func.func @transform_2(%arg0: i32, %arg1: i32) -> (i32, i32, i32) {
    %c0_i32 = arith.constant 0 : i32
    %c0_i32_0 = arith.constant 0 : i32
    %c0_i32_1 = arith.constant 0 : i32
    %c0_i32_2 = arith.constant 0 : i32
    return %c0_i32, %c0_i32_0, %c0_i32_1 : i32, i32, i32
  }
  func.func @transform_3(%arg0: i32, %arg1: i32) -> (i32, i32, i32) {
    %c0_i32 = arith.constant 0 : i32
    %c0_i32_0 = arith.constant 0 : i32
    %c0_i32_1 = arith.constant 0 : i32
    %c0_i32_2 = arith.constant 0 : i32
    return %c0_i32, %c0_i32_0, %c0_i32_1 : i32, i32, i32
  }
  func.func @transform_4(%arg0: i32, %arg1: i32) -> (i32, i32) {
    %c0_i32 = arith.constant 0 : i32
    %c0_i32_0 = arith.constant 0 : i32
    %c0_i32_1 = arith.constant 0 : i32
    return %c0_i32, %c0_i32_0 : i32, i32
  }
  func.func @transform_5(%arg0: i32, %arg1: i32) -> (i32, i32, i32, i32) {
    %c0_i32 = arith.constant 0 : i32
    %c0_i32_0 = arith.constant 0 : i32
    %c0_i32_1 = arith.constant 0 : i32
    return %arg0, %arg1, %c0_i32, %c0_i32_0 : i32, i32, i32, i32
  }
}

module attributes {stable_mosaic.version = 11 : i64} {
  func.func @_conv3x3_kernel(%arg0: i32, %arg1: i32, %arg2: memref<1x18x8x18xbf16, #tpu.memory_space<vmem>>, %arg3: memref<1x18x8x18xbf16, #tpu.memory_space<vmem>>, %arg4: memref<1x18x16x18xbf16, #tpu.memory_space<vmem>>, %arg5: memref<9x8x8xbf16, #tpu.memory_space<vmem>>, %arg6: memref<9x8x8xbf16, #tpu.memory_space<vmem>>, %arg7: memref<9x8x16xbf16, #tpu.memory_space<vmem>>, %arg8: memref<8x1xf32, #tpu.memory_space<vmem>>, %arg9: memref<1x8xf32, #tpu.memory_space<vmem>>, %arg10: memref<1x1xf32, #tpu.memory_space<vmem>>, %arg11: memref<1x16x1x16xf32, #tpu.memory_space<vmem>>) attributes {dimension_semantics = [#tpu.dimension_semantics<parallel>, #tpu.dimension_semantics<parallel>], iteration_bounds = array<i64: 2, 1>, scalar_prefetch = 0 : i64, scratch_operands = 0 : i64, tpu.core_type = #tpu.core_type<tc>, window_params = [{transform_indices = @transform_0, window_bounds = array<i64: 1, 18, 8, 18>}, {transform_indices = @transform_1, window_bounds = array<i64: 1, 18, 8, 18>}, {transform_indices = @transform_2, window_bounds = array<i64: 1, 18, 16, 18>}, {pipeline_mode = #tpu.pipeline_mode<synchronous>, transform_indices = @transform_3, window_bounds = array<i64: 9, 8, 8>}, {pipeline_mode = #tpu.pipeline_mode<synchronous>, transform_indices = @transform_4, window_bounds = array<i64: 9, 8, 8>}, {pipeline_mode = #tpu.pipeline_mode<synchronous>, transform_indices = @transform_5, window_bounds = array<i64: 9, 8, 16>}, {pipeline_mode = #tpu.pipeline_mode<synchronous>, transform_indices = @transform_6, window_bounds = array<i64: 8, 1>}, {pipeline_mode = #tpu.pipeline_mode<synchronous>, transform_indices = @transform_7, window_bounds = array<i64: 1, 8>}, {pipeline_mode = #tpu.pipeline_mode<synchronous>, transform_indices = @transform_8, window_bounds = array<i64: 1, 1>}, {transform_indices = @transform_9, window_bounds = array<i64: 1, 16, 1, 16>}]} {
    %c16_i32 = arith.constant 16 : i32
    %0 = arith.muli %arg1, %c16_i32 : i32
    %c0 = arith.constant 0 : index
    %c0_0 = arith.constant 0 : index
    %1 = vector.load %arg8[%c0, %c0_0] : memref<8x1xf32, #tpu.memory_space<vmem>>, vector<8x1xf32>
    %c0_i32 = arith.constant 0 : i32
    %c16_i32_1 = arith.constant 16 : i32
    %2 = arith.addi %c0_i32, %c16_i32_1 : i32
    %c1_i32 = arith.constant 1 : i32
    scf.for %arg12 = %c0_i32 to %2 step %c1_i32  : i32 {
      %cst = arith.constant 0.000000e+00 : f32
      %3 = vector.broadcast %cst : f32 to vector<8x16xf32>
      %4 = arith.addi %0, %arg12 : i32
      %c0_i32_3 = arith.constant 0 : i32
      %5 = arith.addi %4, %c0_i32_3 : i32
      %c0_4 = arith.constant 0 : index
      %6 = arith.index_cast %5 : i32 to index
      %c0_5 = arith.constant 0 : index
      %c0_6 = arith.constant 0 : index
      %7 = vector.load %arg2[%c0_4, %6, %c0_5, %c0_6] : memref<1x18x8x18xbf16, #tpu.memory_space<vmem>>, vector<1x1x8x18xbf16>
      %8 = vector.shape_cast %7 : vector<1x1x8x18xbf16> to vector<8x18xbf16>
      %c0_7 = arith.constant 0 : index
      %c0_8 = arith.constant 0 : index
      %c0_9 = arith.constant 0 : index
      %9 = vector.load %arg5[%c0_7, %c0_8, %c0_9] : memref<9x8x8xbf16, #tpu.memory_space<vmem>>, vector<1x8x8xbf16>
      %10 = vector.shape_cast %9 : vector<1x8x8xbf16> to vector<8x8xbf16>
      %11 = vector.extract_strided_slice %8 {offsets = [0, 0], sizes = [8, 16], strides = [1, 1]} : vector<8x18xbf16> to vector<8x16xbf16>
      %cst_10 = arith.constant dense<0.000000e+00> : vector<8x16xf32>
      %12 = tpu.matmul %10, %11, %cst_10 {dimension_numbers = #tpu.dot_dimension_numbers<[1], [0], [0], [1], [0, 0, 1, 1], [], []>} : vector<8x8xbf16>, vector<8x16xbf16>, vector<8x16xf32> -> vector<8x16xf32>
      %13 = arith.addf %3, %12 : vector<8x16xf32>
      %c1 = arith.constant 1 : index
      %c0_11 = arith.constant 0 : index
      %c0_12 = arith.constant 0 : index
      %14 = vector.load %arg5[%c1, %c0_11, %c0_12] : memref<9x8x8xbf16, #tpu.memory_space<vmem>>, vector<1x8x8xbf16>
      %15 = vector.shape_cast %14 : vector<1x8x8xbf16> to vector<8x8xbf16>
      %16 = vector.extract_strided_slice %8 {offsets = [0, 1], sizes = [8, 16], strides = [1, 1]} : vector<8x18xbf16> to vector<8x16xbf16>
      %cst_13 = arith.constant dense<0.000000e+00> : vector<8x16xf32>
      %17 = tpu.matmul %15, %16, %cst_13 {dimension_numbers = #tpu.dot_dimension_numbers<[1], [0], [0], [1], [0, 0, 1, 1], [], []>} : vector<8x8xbf16>, vector<8x16xbf16>, vector<8x16xf32> -> vector<8x16xf32>
      %18 = arith.addf %13, %17 : vector<8x16xf32>
      %c2 = arith.constant 2 : index
      %c0_14 = arith.constant 0 : index
      %c0_15 = arith.constant 0 : index
      %19 = vector.load %arg5[%c2, %c0_14, %c0_15] : memref<9x8x8xbf16, #tpu.memory_space<vmem>>, vector<1x8x8xbf16>
      %20 = vector.shape_cast %19 : vector<1x8x8xbf16> to vector<8x8xbf16>
      %21 = vector.extract_strided_slice %8 {offsets = [0, 2], sizes = [8, 16], strides = [1, 1]} : vector<8x18xbf16> to vector<8x16xbf16>
      %cst_16 = arith.constant dense<0.000000e+00> : vector<8x16xf32>
      %22 = tpu.matmul %20, %21, %cst_16 {dimension_numbers = #tpu.dot_dimension_numbers<[1], [0], [0], [1], [0, 0, 1, 1], [], []>} : vector<8x8xbf16>, vector<8x16xbf16>, vector<8x16xf32> -> vector<8x16xf32>
      %23 = arith.addf %18, %22 : vector<8x16xf32>
      %24 = arith.addi %0, %arg12 : i32
      %c1_i32_17 = arith.constant 1 : i32
      %25 = arith.addi %24, %c1_i32_17 : i32
      %c0_18 = arith.constant 0 : index
      %26 = arith.index_cast %25 : i32 to index
      %c0_19 = arith.constant 0 : index
      %c0_20 = arith.constant 0 : index
      %27 = vector.load %arg2[%c0_18, %26, %c0_19, %c0_20] : memref<1x18x8x18xbf16, #tpu.memory_space<vmem>>, vector<1x1x8x18xbf16>
      %28 = vector.shape_cast %27 : vector<1x1x8x18xbf16> to vector<8x18xbf16>
      %c3 = arith.constant 3 : index
      %c0_21 = arith.constant 0 : index
      %c0_22 = arith.constant 0 : index
      %29 = vector.load %arg5[%c3, %c0_21, %c0_22] : memref<9x8x8xbf16, #tpu.memory_space<vmem>>, vector<1x8x8xbf16>
      %30 = vector.shape_cast %29 : vector<1x8x8xbf16> to vector<8x8xbf16>
      %31 = vector.extract_strided_slice %28 {offsets = [0, 0], sizes = [8, 16], strides = [1, 1]} : vector<8x18xbf16> to vector<8x16xbf16>
      %cst_23 = arith.constant dense<0.000000e+00> : vector<8x16xf32>
      %32 = tpu.matmul %30, %31, %cst_23 {dimension_numbers = #tpu.dot_dimension_numbers<[1], [0], [0], [1], [0, 0, 1, 1], [], []>} : vector<8x8xbf16>, vector<8x16xbf16>, vector<8x16xf32> -> vector<8x16xf32>
      %33 = arith.addf %23, %32 : vector<8x16xf32>
      %c4 = arith.constant 4 : index
      %c0_24 = arith.constant 0 : index
      %c0_25 = arith.constant 0 : index
      %34 = vector.load %arg5[%c4, %c0_24, %c0_25] : memref<9x8x8xbf16, #tpu.memory_space<vmem>>, vector<1x8x8xbf16>
      %35 = vector.shape_cast %34 : vector<1x8x8xbf16> to vector<8x8xbf16>
      %36 = vector.extract_strided_slice %28 {offsets = [0, 1], sizes = [8, 16], strides = [1, 1]} : vector<8x18xbf16> to vector<8x16xbf16>
      %cst_26 = arith.constant dense<0.000000e+00> : vector<8x16xf32>
      %37 = tpu.matmul %35, %36, %cst_26 {dimension_numbers = #tpu.dot_dimension_numbers<[1], [0], [0], [1], [0, 0, 1, 1], [], []>} : vector<8x8xbf16>, vector<8x16xbf16>, vector<8x16xf32> -> vector<8x16xf32>
      %38 = arith.addf %33, %37 : vector<8x16xf32>
      %c5 = arith.constant 5 : index
      %c0_27 = arith.constant 0 : index
      %c0_28 = arith.constant 0 : index
      %39 = vector.load %arg5[%c5, %c0_27, %c0_28] : memref<9x8x8xbf16, #tpu.memory_space<vmem>>, vector<1x8x8xbf16>
      %40 = vector.shape_cast %39 : vector<1x8x8xbf16> to vector<8x8xbf16>
      %41 = vector.extract_strided_slice %28 {offsets = [0, 2], sizes = [8, 16], strides = [1, 1]} : vector<8x18xbf16> to vector<8x16xbf16>
      %cst_29 = arith.constant dense<0.000000e+00> : vector<8x16xf32>
      %42 = tpu.matmul %40, %41, %cst_29 {dimension_numbers = #tpu.dot_dimension_numbers<[1], [0], [0], [1], [0, 0, 1, 1], [], []>} : vector<8x8xbf16>, vector<8x16xbf16>, vector<8x16xf32> -> vector<8x16xf32>
      %43 = arith.addf %38, %42 : vector<8x16xf32>
      %44 = arith.addi %0, %arg12 : i32
      %c2_i32 = arith.constant 2 : i32
      %45 = arith.addi %44, %c2_i32 : i32
      %c0_30 = arith.constant 0 : index
      %46 = arith.index_cast %45 : i32 to index
      %c0_31 = arith.constant 0 : index
      %c0_32 = arith.constant 0 : index
      %47 = vector.load %arg2[%c0_30, %46, %c0_31, %c0_32] : memref<1x18x8x18xbf16, #tpu.memory_space<vmem>>, vector<1x1x8x18xbf16>
      %48 = vector.shape_cast %47 : vector<1x1x8x18xbf16> to vector<8x18xbf16>
      %c6 = arith.constant 6 : index
      %c0_33 = arith.constant 0 : index
      %c0_34 = arith.constant 0 : index
      %49 = vector.load %arg5[%c6, %c0_33, %c0_34] : memref<9x8x8xbf16, #tpu.memory_space<vmem>>, vector<1x8x8xbf16>
      %50 = vector.shape_cast %49 : vector<1x8x8xbf16> to vector<8x8xbf16>
      %51 = vector.extract_strided_slice %48 {offsets = [0, 0], sizes = [8, 16], strides = [1, 1]} : vector<8x18xbf16> to vector<8x16xbf16>
      %cst_35 = arith.constant dense<0.000000e+00> : vector<8x16xf32>
      %52 = tpu.matmul %50, %51, %cst_35 {dimension_numbers = #tpu.dot_dimension_numbers<[1], [0], [0], [1], [0, 0, 1, 1], [], []>} : vector<8x8xbf16>, vector<8x16xbf16>, vector<8x16xf32> -> vector<8x16xf32>
      %53 = arith.addf %43, %52 : vector<8x16xf32>
      %c7 = arith.constant 7 : index
      %c0_36 = arith.constant 0 : index
      %c0_37 = arith.constant 0 : index
      %54 = vector.load %arg5[%c7, %c0_36, %c0_37] : memref<9x8x8xbf16, #tpu.memory_space<vmem>>, vector<1x8x8xbf16>
      %55 = vector.shape_cast %54 : vector<1x8x8xbf16> to vector<8x8xbf16>
      %56 = vector.extract_strided_slice %48 {offsets = [0, 1], sizes = [8, 16], strides = [1, 1]} : vector<8x18xbf16> to vector<8x16xbf16>
      %cst_38 = arith.constant dense<0.000000e+00> : vector<8x16xf32>
      %57 = tpu.matmul %55, %56, %cst_38 {dimension_numbers = #tpu.dot_dimension_numbers<[1], [0], [0], [1], [0, 0, 1, 1], [], []>} : vector<8x8xbf16>, vector<8x16xbf16>, vector<8x16xf32> -> vector<8x16xf32>
      %58 = arith.addf %53, %57 : vector<8x16xf32>
      %c8 = arith.constant 8 : index
      %c0_39 = arith.constant 0 : index
      %c0_40 = arith.constant 0 : index
      %59 = vector.load %arg5[%c8, %c0_39, %c0_40] : memref<9x8x8xbf16, #tpu.memory_space<vmem>>, vector<1x8x8xbf16>
      %60 = vector.shape_cast %59 : vector<1x8x8xbf16> to vector<8x8xbf16>
      %61 = vector.extract_strided_slice %48 {offsets = [0, 2], sizes = [8, 16], strides = [1, 1]} : vector<8x18xbf16> to vector<8x16xbf16>
      %cst_41 = arith.constant dense<0.000000e+00> : vector<8x16xf32>
      %62 = tpu.matmul %60, %61, %cst_41 {dimension_numbers = #tpu.dot_dimension_numbers<[1], [0], [0], [1], [0, 0, 1, 1], [], []>} : vector<8x8xbf16>, vector<8x16xbf16>, vector<8x16xf32> -> vector<8x16xf32>
      %63 = arith.addf %58, %62 : vector<8x16xf32>
      %64 = arith.addi %0, %arg12 : i32
      %c0_i32_42 = arith.constant 0 : i32
      %65 = arith.addi %64, %c0_i32_42 : i32
      %c0_43 = arith.constant 0 : index
      %66 = arith.index_cast %65 : i32 to index
      %c0_44 = arith.constant 0 : index
      %c0_45 = arith.constant 0 : index
      %67 = vector.load %arg3[%c0_43, %66, %c0_44, %c0_45] : memref<1x18x8x18xbf16, #tpu.memory_space<vmem>>, vector<1x1x8x18xbf16>
      %68 = vector.shape_cast %67 : vector<1x1x8x18xbf16> to vector<8x18xbf16>
      %c0_46 = arith.constant 0 : index
      %c0_47 = arith.constant 0 : index
      %c0_48 = arith.constant 0 : index
      %69 = vector.load %arg6[%c0_46, %c0_47, %c0_48] : memref<9x8x8xbf16, #tpu.memory_space<vmem>>, vector<1x8x8xbf16>
      %70 = vector.shape_cast %69 : vector<1x8x8xbf16> to vector<8x8xbf16>
      %71 = vector.extract_strided_slice %68 {offsets = [0, 0], sizes = [8, 16], strides = [1, 1]} : vector<8x18xbf16> to vector<8x16xbf16>
      %cst_49 = arith.constant dense<0.000000e+00> : vector<8x16xf32>
      %72 = tpu.matmul %70, %71, %cst_49 {dimension_numbers = #tpu.dot_dimension_numbers<[1], [0], [0], [1], [0, 0, 1, 1], [], []>} : vector<8x8xbf16>, vector<8x16xbf16>, vector<8x16xf32> -> vector<8x16xf32>
      %73 = arith.addf %63, %72 : vector<8x16xf32>
      %c1_50 = arith.constant 1 : index
      %c0_51 = arith.constant 0 : index
      %c0_52 = arith.constant 0 : index
      %74 = vector.load %arg6[%c1_50, %c0_51, %c0_52] : memref<9x8x8xbf16, #tpu.memory_space<vmem>>, vector<1x8x8xbf16>
      %75 = vector.shape_cast %74 : vector<1x8x8xbf16> to vector<8x8xbf16>
      %76 = vector.extract_strided_slice %68 {offsets = [0, 1], sizes = [8, 16], strides = [1, 1]} : vector<8x18xbf16> to vector<8x16xbf16>
      %cst_53 = arith.constant dense<0.000000e+00> : vector<8x16xf32>
      %77 = tpu.matmul %75, %76, %cst_53 {dimension_numbers = #tpu.dot_dimension_numbers<[1], [0], [0], [1], [0, 0, 1, 1], [], []>} : vector<8x8xbf16>, vector<8x16xbf16>, vector<8x16xf32> -> vector<8x16xf32>
      %78 = arith.addf %73, %77 : vector<8x16xf32>
      %c2_54 = arith.constant 2 : index
      %c0_55 = arith.constant 0 : index
      %c0_56 = arith.constant 0 : index
      %79 = vector.load %arg6[%c2_54, %c0_55, %c0_56] : memref<9x8x8xbf16, #tpu.memory_space<vmem>>, vector<1x8x8xbf16>
      %80 = vector.shape_cast %79 : vector<1x8x8xbf16> to vector<8x8xbf16>
      %81 = vector.extract_strided_slice %68 {offsets = [0, 2], sizes = [8, 16], strides = [1, 1]} : vector<8x18xbf16> to vector<8x16xbf16>
      %cst_57 = arith.constant dense<0.000000e+00> : vector<8x16xf32>
      %82 = tpu.matmul %80, %81, %cst_57 {dimension_numbers = #tpu.dot_dimension_numbers<[1], [0], [0], [1], [0, 0, 1, 1], [], []>} : vector<8x8xbf16>, vector<8x16xbf16>, vector<8x16xf32> -> vector<8x16xf32>
      %83 = arith.addf %78, %82 : vector<8x16xf32>
      %84 = arith.addi %0, %arg12 : i32
      %c1_i32_58 = arith.constant 1 : i32
      %85 = arith.addi %84, %c1_i32_58 : i32
      %c0_59 = arith.constant 0 : index
      %86 = arith.index_cast %85 : i32 to index
      %c0_60 = arith.constant 0 : index
      %c0_61 = arith.constant 0 : index
      %87 = vector.load %arg3[%c0_59, %86, %c0_60, %c0_61] : memref<1x18x8x18xbf16, #tpu.memory_space<vmem>>, vector<1x1x8x18xbf16>
      %88 = vector.shape_cast %87 : vector<1x1x8x18xbf16> to vector<8x18xbf16>
      %c3_62 = arith.constant 3 : index
      %c0_63 = arith.constant 0 : index
      %c0_64 = arith.constant 0 : index
      %89 = vector.load %arg6[%c3_62, %c0_63, %c0_64] : memref<9x8x8xbf16, #tpu.memory_space<vmem>>, vector<1x8x8xbf16>
      %90 = vector.shape_cast %89 : vector<1x8x8xbf16> to vector<8x8xbf16>
      %91 = vector.extract_strided_slice %88 {offsets = [0, 0], sizes = [8, 16], strides = [1, 1]} : vector<8x18xbf16> to vector<8x16xbf16>
      %cst_65 = arith.constant dense<0.000000e+00> : vector<8x16xf32>
      %92 = tpu.matmul %90, %91, %cst_65 {dimension_numbers = #tpu.dot_dimension_numbers<[1], [0], [0], [1], [0, 0, 1, 1], [], []>} : vector<8x8xbf16>, vector<8x16xbf16>, vector<8x16xf32> -> vector<8x16xf32>
      %93 = arith.addf %83, %92 : vector<8x16xf32>
      %c4_66 = arith.constant 4 : index
      %c0_67 = arith.constant 0 : index
      %c0_68 = arith.constant 0 : index
      %94 = vector.load %arg6[%c4_66, %c0_67, %c0_68] : memref<9x8x8xbf16, #tpu.memory_space<vmem>>, vector<1x8x8xbf16>
      %95 = vector.shape_cast %94 : vector<1x8x8xbf16> to vector<8x8xbf16>
      %96 = vector.extract_strided_slice %88 {offsets = [0, 1], sizes = [8, 16], strides = [1, 1]} : vector<8x18xbf16> to vector<8x16xbf16>
      %cst_69 = arith.constant dense<0.000000e+00> : vector<8x16xf32>
      %97 = tpu.matmul %95, %96, %cst_69 {dimension_numbers = #tpu.dot_dimension_numbers<[1], [0], [0], [1], [0, 0, 1, 1], [], []>} : vector<8x8xbf16>, vector<8x16xbf16>, vector<8x16xf32> -> vector<8x16xf32>
      %98 = arith.addf %93, %97 : vector<8x16xf32>
      %c5_70 = arith.constant 5 : index
      %c0_71 = arith.constant 0 : index
      %c0_72 = arith.constant 0 : index
      %99 = vector.load %arg6[%c5_70, %c0_71, %c0_72] : memref<9x8x8xbf16, #tpu.memory_space<vmem>>, vector<1x8x8xbf16>
      %100 = vector.shape_cast %99 : vector<1x8x8xbf16> to vector<8x8xbf16>
      %101 = vector.extract_strided_slice %88 {offsets = [0, 2], sizes = [8, 16], strides = [1, 1]} : vector<8x18xbf16> to vector<8x16xbf16>
      %cst_73 = arith.constant dense<0.000000e+00> : vector<8x16xf32>
      %102 = tpu.matmul %100, %101, %cst_73 {dimension_numbers = #tpu.dot_dimension_numbers<[1], [0], [0], [1], [0, 0, 1, 1], [], []>} : vector<8x8xbf16>, vector<8x16xbf16>, vector<8x16xf32> -> vector<8x16xf32>
      %103 = arith.addf %98, %102 : vector<8x16xf32>
      %104 = arith.addi %0, %arg12 : i32
      %c2_i32_74 = arith.constant 2 : i32
      %105 = arith.addi %104, %c2_i32_74 : i32
      %c0_75 = arith.constant 0 : index
      %106 = arith.index_cast %105 : i32 to index
      %c0_76 = arith.constant 0 : index
      %c0_77 = arith.constant 0 : index
      %107 = vector.load %arg3[%c0_75, %106, %c0_76, %c0_77] : memref<1x18x8x18xbf16, #tpu.memory_space<vmem>>, vector<1x1x8x18xbf16>
      %108 = vector.shape_cast %107 : vector<1x1x8x18xbf16> to vector<8x18xbf16>
      %c6_78 = arith.constant 6 : index
      %c0_79 = arith.constant 0 : index
      %c0_80 = arith.constant 0 : index
      %109 = vector.load %arg6[%c6_78, %c0_79, %c0_80] : memref<9x8x8xbf16, #tpu.memory_space<vmem>>, vector<1x8x8xbf16>
      %110 = vector.shape_cast %109 : vector<1x8x8xbf16> to vector<8x8xbf16>
      %111 = vector.extract_strided_slice %108 {offsets = [0, 0], sizes = [8, 16], strides = [1, 1]} : vector<8x18xbf16> to vector<8x16xbf16>
      %cst_81 = arith.constant dense<0.000000e+00> : vector<8x16xf32>
      %112 = tpu.matmul %110, %111, %cst_81 {dimension_numbers = #tpu.dot_dimension_numbers<[1], [0], [0], [1], [0, 0, 1, 1], [], []>} : vector<8x8xbf16>, vector<8x16xbf16>, vector<8x16xf32> -> vector<8x16xf32>
      %113 = arith.addf %103, %112 : vector<8x16xf32>
      %c7_82 = arith.constant 7 : index
      %c0_83 = arith.constant 0 : index
      %c0_84 = arith.constant 0 : index
      %114 = vector.load %arg6[%c7_82, %c0_83, %c0_84] : memref<9x8x8xbf16, #tpu.memory_space<vmem>>, vector<1x8x8xbf16>
      %115 = vector.shape_cast %114 : vector<1x8x8xbf16> to vector<8x8xbf16>
      %116 = vector.extract_strided_slice %108 {offsets = [0, 1], sizes = [8, 16], strides = [1, 1]} : vector<8x18xbf16> to vector<8x16xbf16>
      %cst_85 = arith.constant dense<0.000000e+00> : vector<8x16xf32>
      %117 = tpu.matmul %115, %116, %cst_85 {dimension_numbers = #tpu.dot_dimension_numbers<[1], [0], [0], [1], [0, 0, 1, 1], [], []>} : vector<8x8xbf16>, vector<8x16xbf16>, vector<8x16xf32> -> vector<8x16xf32>
      %118 = arith.addf %113, %117 : vector<8x16xf32>
      %c8_86 = arith.constant 8 : index
      %c0_87 = arith.constant 0 : index
      %c0_88 = arith.constant 0 : index
      %119 = vector.load %arg6[%c8_86, %c0_87, %c0_88] : memref<9x8x8xbf16, #tpu.memory_space<vmem>>, vector<1x8x8xbf16>
      %120 = vector.shape_cast %119 : vector<1x8x8xbf16> to vector<8x8xbf16>
      %121 = vector.extract_strided_slice %108 {offsets = [0, 2], sizes = [8, 16], strides = [1, 1]} : vector<8x18xbf16> to vector<8x16xbf16>
      %cst_89 = arith.constant dense<0.000000e+00> : vector<8x16xf32>
      %122 = tpu.matmul %120, %121, %cst_89 {dimension_numbers = #tpu.dot_dimension_numbers<[1], [0], [0], [1], [0, 0, 1, 1], [], []>} : vector<8x8xbf16>, vector<8x16xbf16>, vector<8x16xf32> -> vector<8x16xf32>
      %123 = arith.addf %118, %122 : vector<8x16xf32>
      %124 = arith.addi %0, %arg12 : i32
      %c0_i32_90 = arith.constant 0 : i32
      %125 = arith.addi %124, %c0_i32_90 : i32
      %c0_91 = arith.constant 0 : index
      %126 = arith.index_cast %125 : i32 to index
      %c0_92 = arith.constant 0 : index
      %c0_93 = arith.constant 0 : index
      %127 = vector.load %arg4[%c0_91, %126, %c0_92, %c0_93] : memref<1x18x16x18xbf16, #tpu.memory_space<vmem>>, vector<1x1x16x18xbf16>
      %128 = vector.shape_cast %127 : vector<1x1x16x18xbf16> to vector<16x18xbf16>
      %c0_94 = arith.constant 0 : index
      %c0_95 = arith.constant 0 : index
      %c0_96 = arith.constant 0 : index
      %129 = vector.load %arg7[%c0_94, %c0_95, %c0_96] : memref<9x8x16xbf16, #tpu.memory_space<vmem>>, vector<1x8x16xbf16>
      %130 = vector.shape_cast %129 : vector<1x8x16xbf16> to vector<8x16xbf16>
      %131 = vector.extract_strided_slice %128 {offsets = [0, 0], sizes = [16, 16], strides = [1, 1]} : vector<16x18xbf16> to vector<16x16xbf16>
      %cst_97 = arith.constant dense<0.000000e+00> : vector<8x16xf32>
      %132 = tpu.matmul %130, %131, %cst_97 {dimension_numbers = #tpu.dot_dimension_numbers<[1], [0], [0], [1], [0, 0, 1, 1], [], []>} : vector<8x16xbf16>, vector<16x16xbf16>, vector<8x16xf32> -> vector<8x16xf32>
      %133 = arith.addf %123, %132 : vector<8x16xf32>
      %c1_98 = arith.constant 1 : index
      %c0_99 = arith.constant 0 : index
      %c0_100 = arith.constant 0 : index
      %134 = vector.load %arg7[%c1_98, %c0_99, %c0_100] : memref<9x8x16xbf16, #tpu.memory_space<vmem>>, vector<1x8x16xbf16>
      %135 = vector.shape_cast %134 : vector<1x8x16xbf16> to vector<8x16xbf16>
      %136 = vector.extract_strided_slice %128 {offsets = [0, 1], sizes = [16, 16], strides = [1, 1]} : vector<16x18xbf16> to vector<16x16xbf16>
      %cst_101 = arith.constant dense<0.000000e+00> : vector<8x16xf32>
      %137 = tpu.matmul %135, %136, %cst_101 {dimension_numbers = #tpu.dot_dimension_numbers<[1], [0], [0], [1], [0, 0, 1, 1], [], []>} : vector<8x16xbf16>, vector<16x16xbf16>, vector<8x16xf32> -> vector<8x16xf32>
      %138 = arith.addf %133, %137 : vector<8x16xf32>
      %c2_102 = arith.constant 2 : index
      %c0_103 = arith.constant 0 : index
      %c0_104 = arith.constant 0 : index
      %139 = vector.load %arg7[%c2_102, %c0_103, %c0_104] : memref<9x8x16xbf16, #tpu.memory_space<vmem>>, vector<1x8x16xbf16>
      %140 = vector.shape_cast %139 : vector<1x8x16xbf16> to vector<8x16xbf16>
      %141 = vector.extract_strided_slice %128 {offsets = [0, 2], sizes = [16, 16], strides = [1, 1]} : vector<16x18xbf16> to vector<16x16xbf16>
      %cst_105 = arith.constant dense<0.000000e+00> : vector<8x16xf32>
      %142 = tpu.matmul %140, %141, %cst_105 {dimension_numbers = #tpu.dot_dimension_numbers<[1], [0], [0], [1], [0, 0, 1, 1], [], []>} : vector<8x16xbf16>, vector<16x16xbf16>, vector<8x16xf32> -> vector<8x16xf32>
      %143 = arith.addf %138, %142 : vector<8x16xf32>
      %144 = arith.addi %0, %arg12 : i32
      %c1_i32_106 = arith.constant 1 : i32
      %145 = arith.addi %144, %c1_i32_106 : i32
      %c0_107 = arith.constant 0 : index
      %146 = arith.index_cast %145 : i32 to index
      %c0_108 = arith.constant 0 : index
      %c0_109 = arith.constant 0 : index
      %147 = vector.load %arg4[%c0_107, %146, %c0_108, %c0_109] : memref<1x18x16x18xbf16, #tpu.memory_space<vmem>>, vector<1x1x16x18xbf16>
      %148 = vector.shape_cast %147 : vector<1x1x16x18xbf16> to vector<16x18xbf16>
      %c3_110 = arith.constant 3 : index
      %c0_111 = arith.constant 0 : index
      %c0_112 = arith.constant 0 : index
      %149 = vector.load %arg7[%c3_110, %c0_111, %c0_112] : memref<9x8x16xbf16, #tpu.memory_space<vmem>>, vector<1x8x16xbf16>
      %150 = vector.shape_cast %149 : vector<1x8x16xbf16> to vector<8x16xbf16>
      %151 = vector.extract_strided_slice %148 {offsets = [0, 0], sizes = [16, 16], strides = [1, 1]} : vector<16x18xbf16> to vector<16x16xbf16>
      %cst_113 = arith.constant dense<0.000000e+00> : vector<8x16xf32>
      %152 = tpu.matmul %150, %151, %cst_113 {dimension_numbers = #tpu.dot_dimension_numbers<[1], [0], [0], [1], [0, 0, 1, 1], [], []>} : vector<8x16xbf16>, vector<16x16xbf16>, vector<8x16xf32> -> vector<8x16xf32>
      %153 = arith.addf %143, %152 : vector<8x16xf32>
      %c4_114 = arith.constant 4 : index
      %c0_115 = arith.constant 0 : index
      %c0_116 = arith.constant 0 : index
      %154 = vector.load %arg7[%c4_114, %c0_115, %c0_116] : memref<9x8x16xbf16, #tpu.memory_space<vmem>>, vector<1x8x16xbf16>
      %155 = vector.shape_cast %154 : vector<1x8x16xbf16> to vector<8x16xbf16>
      %156 = vector.extract_strided_slice %148 {offsets = [0, 1], sizes = [16, 16], strides = [1, 1]} : vector<16x18xbf16> to vector<16x16xbf16>
      %cst_117 = arith.constant dense<0.000000e+00> : vector<8x16xf32>
      %157 = tpu.matmul %155, %156, %cst_117 {dimension_numbers = #tpu.dot_dimension_numbers<[1], [0], [0], [1], [0, 0, 1, 1], [], []>} : vector<8x16xbf16>, vector<16x16xbf16>, vector<8x16xf32> -> vector<8x16xf32>
      %158 = arith.addf %153, %157 : vector<8x16xf32>
      %c5_118 = arith.constant 5 : index
      %c0_119 = arith.constant 0 : index
      %c0_120 = arith.constant 0 : index
      %159 = vector.load %arg7[%c5_118, %c0_119, %c0_120] : memref<9x8x16xbf16, #tpu.memory_space<vmem>>, vector<1x8x16xbf16>
      %160 = vector.shape_cast %159 : vector<1x8x16xbf16> to vector<8x16xbf16>
      %161 = vector.extract_strided_slice %148 {offsets = [0, 2], sizes = [16, 16], strides = [1, 1]} : vector<16x18xbf16> to vector<16x16xbf16>
      %cst_121 = arith.constant dense<0.000000e+00> : vector<8x16xf32>
      %162 = tpu.matmul %160, %161, %cst_121 {dimension_numbers = #tpu.dot_dimension_numbers<[1], [0], [0], [1], [0, 0, 1, 1], [], []>} : vector<8x16xbf16>, vector<16x16xbf16>, vector<8x16xf32> -> vector<8x16xf32>
      %163 = arith.addf %158, %162 : vector<8x16xf32>
      %164 = arith.addi %0, %arg12 : i32
      %c2_i32_122 = arith.constant 2 : i32
      %165 = arith.addi %164, %c2_i32_122 : i32
      %c0_123 = arith.constant 0 : index
      %166 = arith.index_cast %165 : i32 to index
      %c0_124 = arith.constant 0 : index
      %c0_125 = arith.constant 0 : index
      %167 = vector.load %arg4[%c0_123, %166, %c0_124, %c0_125] : memref<1x18x16x18xbf16, #tpu.memory_space<vmem>>, vector<1x1x16x18xbf16>
      %168 = vector.shape_cast %167 : vector<1x1x16x18xbf16> to vector<16x18xbf16>
      %c6_126 = arith.constant 6 : index
      %c0_127 = arith.constant 0 : index
      %c0_128 = arith.constant 0 : index
      %169 = vector.load %arg7[%c6_126, %c0_127, %c0_128] : memref<9x8x16xbf16, #tpu.memory_space<vmem>>, vector<1x8x16xbf16>
      %170 = vector.shape_cast %169 : vector<1x8x16xbf16> to vector<8x16xbf16>
      %171 = vector.extract_strided_slice %168 {offsets = [0, 0], sizes = [16, 16], strides = [1, 1]} : vector<16x18xbf16> to vector<16x16xbf16>
      %cst_129 = arith.constant dense<0.000000e+00> : vector<8x16xf32>
      %172 = tpu.matmul %170, %171, %cst_129 {dimension_numbers = #tpu.dot_dimension_numbers<[1], [0], [0], [1], [0, 0, 1, 1], [], []>} : vector<8x16xbf16>, vector<16x16xbf16>, vector<8x16xf32> -> vector<8x16xf32>
      %173 = arith.addf %163, %172 : vector<8x16xf32>
      %c7_130 = arith.constant 7 : index
      %c0_131 = arith.constant 0 : index
      %c0_132 = arith.constant 0 : index
      %174 = vector.load %arg7[%c7_130, %c0_131, %c0_132] : memref<9x8x16xbf16, #tpu.memory_space<vmem>>, vector<1x8x16xbf16>
      %175 = vector.shape_cast %174 : vector<1x8x16xbf16> to vector<8x16xbf16>
      %176 = vector.extract_strided_slice %168 {offsets = [0, 1], sizes = [16, 16], strides = [1, 1]} : vector<16x18xbf16> to vector<16x16xbf16>
      %cst_133 = arith.constant dense<0.000000e+00> : vector<8x16xf32>
      %177 = tpu.matmul %175, %176, %cst_133 {dimension_numbers = #tpu.dot_dimension_numbers<[1], [0], [0], [1], [0, 0, 1, 1], [], []>} : vector<8x16xbf16>, vector<16x16xbf16>, vector<8x16xf32> -> vector<8x16xf32>
      %178 = arith.addf %173, %177 : vector<8x16xf32>
      %c8_134 = arith.constant 8 : index
      %c0_135 = arith.constant 0 : index
      %c0_136 = arith.constant 0 : index
      %179 = vector.load %arg7[%c8_134, %c0_135, %c0_136] : memref<9x8x16xbf16, #tpu.memory_space<vmem>>, vector<1x8x16xbf16>
      %180 = vector.shape_cast %179 : vector<1x8x16xbf16> to vector<8x16xbf16>
      %181 = vector.extract_strided_slice %168 {offsets = [0, 2], sizes = [16, 16], strides = [1, 1]} : vector<16x18xbf16> to vector<16x16xbf16>
      %cst_137 = arith.constant dense<0.000000e+00> : vector<8x16xf32>
      %182 = tpu.matmul %180, %181, %cst_137 {dimension_numbers = #tpu.dot_dimension_numbers<[1], [0], [0], [1], [0, 0, 1, 1], [], []>} : vector<8x16xbf16>, vector<16x16xbf16>, vector<8x16xf32> -> vector<8x16xf32>
      %183 = arith.addf %178, %182 : vector<8x16xf32>
      %184 = vector.broadcast %1 : vector<8x1xf32> to vector<8x16xf32>
      %185 = arith.addf %183, %184 : vector<8x16xf32>
      %cst_138 = arith.constant 0.000000e+00 : f32
      %186 = vector.broadcast %cst_138 : f32 to vector<8x16xf32>
      %187 = arith.maximumf %185, %186 : vector<8x16xf32>
      %c0_139 = arith.constant 0 : index
      %c0_140 = arith.constant 0 : index
      %188 = vector.load %arg9[%c0_139, %c0_140] : memref<1x8xf32, #tpu.memory_space<vmem>>, vector<1x8xf32>
      %cst_141 = arith.constant dense<0.000000e+00> : vector<1x16xf32>
      %189 = tpu.matmul %188, %187, %cst_141 {dimension_numbers = #tpu.dot_dimension_numbers<[1], [0], [0], [1], [0, 0, 1, 1], [], []>} : vector<1x8xf32>, vector<8x16xf32>, vector<1x16xf32> -> vector<1x16xf32>
      %c0_142 = arith.constant 0 : index
      %c0_143 = arith.constant 0 : index
      %190 = vector.load %arg10[%c0_142, %c0_143] : memref<1x1xf32, #tpu.memory_space<vmem>>, vector<1x1xf32>
      %191 = vector.broadcast %190 : vector<1x1xf32> to vector<1x16xf32>
      %192 = arith.addf %189, %191 : vector<1x16xf32>
      %c0_144 = arith.constant 0 : index
      %193 = arith.index_cast %arg12 : i32 to index
      %c0_145 = arith.constant 0 : index
      %c0_146 = arith.constant 0 : index
      %194 = vector.load %arg11[%c0_144, %193, %c0_145, %c0_146] : memref<1x16x1x16xf32, #tpu.memory_space<vmem>>, vector<1x1x1x16xf32>
      %195 = vector.shape_cast %194 : vector<1x1x1x16xf32> to vector<1x16xf32>
      %196 = vector.shape_cast %192 : vector<1x16xf32> to vector<1x1x1x16xf32>
      tpu.vector_store %arg11[%c0_144, %193, %c0_145, %c0_146], %196 {strides = array<i32>} : memref<1x16x1x16xf32, #tpu.memory_space<vmem>>, vector<1x1x1x16xf32>,
    }
    %c16_i32_2 = arith.constant 16 : i32
    return
  }
  func.func @transform_0(%arg0: i32, %arg1: i32) -> (i32, i32, i32, i32) {
    %c0_i32 = arith.constant 0 : i32
    %c0_i32_0 = arith.constant 0 : i32
    %c0_i32_1 = arith.constant 0 : i32
    %c0_i32_2 = arith.constant 0 : i32
    return %arg0, %c0_i32, %c0_i32_0, %c0_i32_1 : i32, i32, i32, i32
  }
  func.func @transform_1(%arg0: i32, %arg1: i32) -> (i32, i32, i32, i32) {
    %c0_i32 = arith.constant 0 : i32
    %c0_i32_0 = arith.constant 0 : i32
    %c0_i32_1 = arith.constant 0 : i32
    %c0_i32_2 = arith.constant 0 : i32
    return %arg0, %c0_i32, %c0_i32_0, %c0_i32_1 : i32, i32, i32, i32
  }
  func.func @transform_2(%arg0: i32, %arg1: i32) -> (i32, i32, i32, i32) {
    %c0_i32 = arith.constant 0 : i32
    %c0_i32_0 = arith.constant 0 : i32
    %c0_i32_1 = arith.constant 0 : i32
    %c0_i32_2 = arith.constant 0 : i32
    return %arg0, %c0_i32, %c0_i32_0, %c0_i32_1 : i32, i32, i32, i32
  }
  func.func @transform_3(%arg0: i32, %arg1: i32) -> (i32, i32, i32) {
    %c0_i32 = arith.constant 0 : i32
    %c0_i32_0 = arith.constant 0 : i32
    %c0_i32_1 = arith.constant 0 : i32
    %c0_i32_2 = arith.constant 0 : i32
    return %c0_i32, %c0_i32_0, %c0_i32_1 : i32, i32, i32
  }
  func.func @transform_4(%arg0: i32, %arg1: i32) -> (i32, i32, i32) {
    %c0_i32 = arith.constant 0 : i32
    %c0_i32_0 = arith.constant 0 : i32
    %c0_i32_1 = arith.constant 0 : i32
    %c0_i32_2 = arith.constant 0 : i32
    return %c0_i32, %c0_i32_0, %c0_i32_1 : i32, i32, i32
  }
  func.func @transform_5(%arg0: i32, %arg1: i32) -> (i32, i32, i32) {
    %c0_i32 = arith.constant 0 : i32
    %c0_i32_0 = arith.constant 0 : i32
    %c0_i32_1 = arith.constant 0 : i32
    %c0_i32_2 = arith.constant 0 : i32
    return %c0_i32, %c0_i32_0, %c0_i32_1 : i32, i32, i32
  }
  func.func @transform_6(%arg0: i32, %arg1: i32) -> (i32, i32) {
    %c0_i32 = arith.constant 0 : i32
    %c0_i32_0 = arith.constant 0 : i32
    %c0_i32_1 = arith.constant 0 : i32
    return %c0_i32, %c0_i32_0 : i32, i32
  }
  func.func @transform_7(%arg0: i32, %arg1: i32) -> (i32, i32) {
    %c0_i32 = arith.constant 0 : i32
    %c0_i32_0 = arith.constant 0 : i32
    %c0_i32_1 = arith.constant 0 : i32
    return %c0_i32, %c0_i32_0 : i32, i32
  }
  func.func @transform_8(%arg0: i32, %arg1: i32) -> (i32, i32) {
    %c0_i32 = arith.constant 0 : i32
    %c0_i32_0 = arith.constant 0 : i32
    %c0_i32_1 = arith.constant 0 : i32
    return %c0_i32, %c0_i32_0 : i32, i32
  }
  func.func @transform_9(%arg0: i32, %arg1: i32) -> (i32, i32, i32, i32) {
    %c0_i32 = arith.constant 0 : i32
    %c0_i32_0 = arith.constant 0 : i32
    %c0_i32_1 = arith.constant 0 : i32
    return %arg0, %arg1, %c0_i32, %c0_i32_0 : i32, i32, i32, i32
  }
}

</mosaic_0001>

<bundles_post_ra>
// kernel: _lambda_.6
= control target key start
LH: loop header
LB: loop body
LE: loop exit
PB: predicated region body
PF: predicated region fallthrough
CT: control target
= control target key end

     0   :  { %s1014_s12 = smov 0   ;;  %s1016_s13 = smov 0   ;;  %s1143_s0 = inlined_call_operand.vmem [shape: bf16[2,18,3,18], index: 0, kind: input, shape index: {}]   ;;  %s1144_s1 = inlined_call_operand.vmem [shape: bf16[9,8,3], index: 1, kind: input, shape index: {}]   ;;  %s1145_s2 = inlined_call_operand.vmem [shape: f32[8,1], index: 2, kind: input, shape index: {}]   ;;  %s1146_s3 = inlined_call_operand.vmem [shape: bf16[2,16,8,16], index: 3, kind: output, shape index: {}]  }
   0x1   :  { %s1018_s14 = smov 0  }
   0x2 LB: > { %s25_s15 = sadd.s32 1, %s977_s13  ;;  %p812_p0 = scmp.ge.s32.totalorder %s981_s14, 1  ;;  %s981_s14 = sphi %s1018_s14, %s13_s14   ;;  %s977_s13 = sphi %s1016_s13, %s1148_s13   ;;  %s973_s12 = sphi %s1014_s12, %s1147_s12  }
   0x3   : > { %p27_p1 = scmp.ge.s32.totalorder %s25_s15, 2  ;;  %p151_p2 = scmp.lt.s32.totalorder %s981_s14, 3 }
   0x5   : > { %s1150_s15 = smov (%p27_p1, %s25_s15), 0  ;;  %p152_p3 = pnand %p812_p0, %p151_p2 }
   0x6   : > { %p179_p4 = scmp.lt.s32.totalorder (!%p152_p3), %s973_s12, 1  ;;  %v1035_v0 = vld [vmem:[%s1145_s2] sm:$0xff] (!%p152_p3)  ;;  %s1047_s26 = smov (!%p152_p3), 0  }
   0x7   : > { %155 = sbr.rel (%p152_p3) target bundleno = 400 (0x190), region = 32 }
   0xe   : > { %s1152_s12 = smov (!%p179_p4, %s973_s12), 1 }
   0xf   : > { %s914_s18 = smul.u32 36, %s1152_s12  ;;  %s841_s19 = sshll.u32 %s1152_s12, 6 }
  0x10   : > { %s1040_s22 = scalar_lea.vmem %s1146_s3, %s841_s19 }
  0x11   : > { %s1045_s25 = scalar_lea.vmem %s1143_s0, %s914_s18 }
  0x12 LB: >> { %v214_v1 = vlaneseq  ;;  %vm224_vm0 = vcmask 1040384   ;;  %vm225_vm1 = vcmask 1041408   ;;  %v987_v2 = vmov 1983009808   ;;  %s816_s27 = sshll.u32 %s985_s26, 1  ;;  %s991_s4 = smov 127   ;;  %s985_s26 = sphi %s1047_s26, %s202_s26  }
  0x13   : >> { %v212_v3 = vunpack.c.l.s4 %v987_v2  ;;  %v988_v5 = vmov 65535   ;;  %v989_v7 = vmov 0.0   ;;  %s205_s28 = scalar_lea.vmem %s1045_s25, %s816_s27  ;;  %vm990_vm2 = vmmov 0   ;;  %v207_v17 = vld [vmem:[%s1144_s1] sm:$0xf]  ;;  %s992_s5 = smov 126  }
  0x14   : >> { %v215_v4 = vshrl.u32 %v214_v1, 7  ;;  %v226_v6 = vsel %vm224_vm0, 4294967295, %v988_v5  ;;  %860 = vmatprep.subr.bf16.mxu0 %v989_v7  ;;  %866 = vmatprep.subr.bf16.mxu1 %v989_v7  ;;  %v206_v10 = vld [vmem:[%s205_s28] sm:$0x3]  ;;  %v823_v11 = vld [vmem:[%s205_s28 + $0x2] sm:$0x3] }
  0x15   : >> { %v213_v8 = vunpack.c.0.s8 %v212_v3  ;;  %v1056_v9 = vsel %vm225_vm1, %v226_v6, 0  ;;  %862 = vmatprep.mubr.msk.bf16.mxu0 %vm990_vm2, %v989_v7  ;;  %868 = vmatprep.mubr.msk.bf16.mxu1 %vm990_vm2, %v989_v7  ;;  %vm220_vm3 = vcmask 23552   ;;  %v831_v18 = vld [vmem:[%s205_s28 + $0x4] sm:$0x3]  ;;  %v824_v20 = vld [vmem:[%s1144_s1 + $0xc] sm:$0xf] }
  0x16   : >> { %v275_v13 = vand.u32 %v1056_v9, %v206_v10  ;;  %v378_v16 = vand.u32 %v823_v11, %v1056_v9  ;;  %v993_v21 = vmov 0   ;;  %v817_v25 = vld [vmem:[%s1144_s1 + $0x4] sm:$0xf]  ;;  %v828_v30 = vld [vmem:[%s1144_s1 + $0x14] sm:$0xf]  ;;  %v541_v36 = vand.u32 %v831_v18, %v1056_v9  ;;  %s838_s28 = sshll.u32 %s985_s26, 2 }
  0x17   : >> { %v216_v12 = vsub.s32 %v213_v8, %v215_v4  ;;  %954 = vset.pattern.permute.xlu0 %v993_v21  ;;  %v820_v34 = vld [vmem:[%s1144_s1 + $0x8] sm:$0xf]  ;;  %v834_v35 = vld [vmem:[%s1144_s1 + $0x1c] sm:$0xf]  ;;  %v826_v37 = vld [vmem:[%s1144_s1 + $0x10] sm:$0xf]  ;;  %s703_s29 = scalar_lea.vmem %s1040_s22, %s838_s28 }
  0x18   : >> { %867 = vmatpush3.bf16.msra.mxu1 %v275_v13  ;;  %v832_v40 = vld [vmem:[%s1144_s1 + $0x18] sm:$0xf]  ;;  %v836_v41 = vld [vmem:[%s1144_s1 + $0x20] sm:$0xf]  ;;  %vm704_vm4 = vcmask 125952   ;;  %s202_s26 = sadd.s32 1, %s985_s26  }
  0x19   : >> { %v217_v14 = vrot.slane %v206_v10, %v216_v12  ;;  %v430_v15 = vrot.slane %v823_v11, %v216_v12  ;;  %878 = vmatprep.subr.bf16.mxu1 %v989_v7  ;;  %v593_v19 = vrot.slane %v831_v18, %v216_v12  ;;  %p199_p5 = scmp.ge.s32.totalorder %s202_s26, 16  }
  0x1b   : >> { %218 = vrot.lane.b32.xlu0 %v217_v14, %s991_s4  ;;  %431 = vrot.lane.b32.xlu1 %v430_v15, %s991_s4 }
  0x1c   : >> { %869 = vmatmul.mubr.msk.bf16.vlgmr.msra.gmra.mrb[0].mxu1 %vm220_vm3, %v207_v17 }
  0x1d   : >> { %879 = vmatpush3.bf16.msra.mxu1 %v378_v16  ;;  %880 = vmatprep.mubr.msk.bf16.mxu1 %vm990_vm2, %v989_v7 }
  0x1e   : >> { %890 = vmatprep.subr.bf16.mxu1 %v989_v7 }
  0x1f   : >> { %319 = vrot.lane.b32.xlu0 %v217_v14, %s992_s5  ;;  %482 = vrot.lane.b32.xlu1 %v430_v15, %s992_s5 }
  0x23   : >> { %594 = vrot.lane.b32.xlu0 %v593_v19, %s991_s4  ;;  %645 = vrot.lane.b32.xlu1 %v593_v19, %s992_s5 }
  0x24   : >> { %881 = vmatmul.mubr.msk.bf16.vlgmr.msra.gmra.mrb[4].mxu1 %vm220_vm3, %v824_v20 }
  0x25   : >> { %892 = vmatprep.mubr.msk.bf16.mxu1 %vm990_vm2, %v989_v7 }
  0x27   : >> { %696 = vperm.xlu0 %954, %v1035_v0  }
  0x8d   : >> { %v219_v22 = vpop.permute.xlu0 %218  ;;  %v432_v23 = vpop.permute.xlu1 %431 }
  0x8e   : >> { %v229_v24 = vand.u32 %v1056_v9, %v219_v22  ;;  %v437_v33 = vand.u32 %v432_v23, %v1056_v9 }
  0x90   : >> { %861 = vmatpush3.bf16.msra.mxu0 %v229_v24 }
  0x91   : >> { %v320_v26 = vpop.permute.xlu0 %319  ;;  %872 = vmatprep.subr.bf16.mxu0 %v989_v7  ;;  %v483_v27 = vpop.permute.xlu1 %482 }
  0x92   : >> { %v325_v28 = vand.u32 %v320_v26, %v1056_v9  ;;  %v488_v29 = vand.u32 %v483_v27, %v1056_v9 }
  0x93   : >> { %863 = vmatmul.mubr.msk.bf16.vlgmr.msra.gmra.mrb[0].mxu0 %vm220_vm3, %v817_v25 }
  0x94   : >> { %873 = vmatpush3.bf16.msra.mxu0 %v325_v28  ;;  %874 = vmatprep.mubr.msk.bf16.mxu0 %vm990_vm2, %v989_v7 }
  0x95   : >> { %884 = vmatprep.subr.bf16.mxu0 %v989_v7  ;;  %891 = vmatpush3.bf16.msra.mxu1 %v488_v29  ;;  %v595_v31 = vpop.permute.xlu0 %594  ;;  %v646_v38 = vpop.permute.xlu1 %645 }
  0x96   : >> { %v600_v32 = vand.u32 %v595_v31, %v1056_v9  ;;  %902 = vmatprep.subr.bf16.mxu1 %v989_v7  ;;  %v651_v39 = vand.u32 %v646_v38, %v1056_v9 }
  0x98   : >> { %893 = vmatmul.mubr.msk.bf16.vlgmr.msra.gmra.mrb[8].mxu1 %vm220_vm3, %v828_v30 }
  0x99   : >> { %903 = vmatpush3.bf16.msra.mxu1 %v600_v32  ;;  %904 = vmatprep.mubr.msk.bf16.mxu1 %vm990_vm2, %v989_v7 }
  0x9b   : >> { %875 = vmatmul.mubr.msk.bf16.vlgmr.msra.gmra.mrb[4].mxu0 %vm220_vm3, %v820_v34 }
  0x9c   : >> { %885 = vmatpush3.bf16.msra.mxu0 %v437_v33  ;;  %886 = vmatprep.mubr.msk.bf16.mxu0 %vm990_vm2, %v989_v7 }
  0x9d   : >> { %896 = vmatprep.subr.bf16.mxu0 %v989_v7 }
  0xa0   : >> { %905 = vmatmul.mubr.msk.bf16.vlgmr.msra.gmra.mrb[12].mxu1 %vm220_vm3, %v834_v35 }
  0xa3   : >> { %887 = vmatmul.mubr.msk.bf16.vlgmr.msra.gmra.mrb[8].mxu0 %vm220_vm3, %v826_v37 }
  0xa4   : >> { %897 = vmatpush3.bf16.msra.mxu0 %v541_v36  ;;  %898 = vmatprep.mubr.msk.bf16.mxu0 %vm990_vm2, %v989_v7 }
  0xa5   : >> { %908 = vmatprep.subr.bf16.mxu0 %v989_v7 }
  0xa6   : >> { %v697_v19 = vpop.permute.xlu0 %696 }
  0xab   : >> { %899 = vmatmul.mubr.msk.bf16.vlgmr.msra.gmra.mrb[12].mxu0 %vm220_vm3, %v832_v40 }
  0xac   : >> { %909 = vmatpush3.bf16.msra.mxu0 %v651_v39  ;;  %910 = vmatprep.mubr.msk.bf16.mxu0 %vm990_vm2, %v989_v7 }
  0xb3   : >> { %911 = vmatmul.mubr.msk.bf16.vlgmr.msra.gmra.mrb[16].mxu0 %vm220_vm3, %v836_v41 }
  0xef   : >> { %v311_v42 = vpop.f32.mrb[0].mxu1 }
  0xf0   : >> { %v870_v43 = vpop.f32.mrb[1].mxu1 }
  0xf1   : >> { %v314_v44 = vpop.f32.mrb[2].mxu1 }
  0xf2   : >> { %v871_v45 = vpop.f32.mrb[3].mxu1 }
  0xf7   : >> { %v414_v46 = vpop.f32.mrb[4].mxu1 }
  0xf8   : >> { %v882_v47 = vpop.f32.mrb[5].mxu1 }
  0xf9   : >> { %v417_v48 = vpop.f32.mrb[6].mxu1 }
  0xfa   : >> { %v883_v49 = vpop.f32.mrb[7].mxu1 }
 0x166   : >> { %v265_v50 = vpop.f32.mrb[0].mxu0 }
 0x167   : >> { %v864_v51 = vpop.f32.mrb[1].mxu0  ;;  %v312_v52 = vadd.f32 %v311_v42, %v265_v50 }
 0x168   : >> { %v268_v53 = vpop.f32.mrb[2].mxu0 }
 0x169   : >> { %v865_v54 = vpop.f32.mrb[3].mxu0 }
 0x16b   : >> { %v524_v55 = vpop.f32.mrb[8].mxu1 }
 0x16c   : >> { %v894_v56 = vpop.f32.mrb[9].mxu1 }
 0x16d   : >> { %v527_v57 = vpop.f32.mrb[10].mxu1 }
 0x16e   : >> { %v361_v58 = vpop.f32.mrb[4].mxu0  ;;  %v895_v59 = vpop.f32.mrb[11].mxu1 }
 0x16f   : >> { %v367_v60 = vadd.f32 %v361_v58, %v312_v52  ;;  %v876_v61 = vpop.f32.mrb[5].mxu0 }
 0x170   : >> { %v364_v62 = vpop.f32.mrb[6].mxu0 }
 0x171   : >> { %v420_v63 = vadd.f32 %v414_v46, %v367_v60  ;;  %v877_v1 = vpop.f32.mrb[7].mxu0 }
 0x173   : >> { %v636_v2 = vpop.f32.mrb[12].mxu1 }
 0x174   : >> { %v906_v3 = vpop.f32.mrb[13].mxu1 }
 0x175   : >> { %v639_v4 = vpop.f32.mrb[14].mxu1 }
 0x176   : >> { %v473_v5 = vpop.f32.mrb[8].mxu0  ;;  %v907_v6 = vpop.f32.mrb[15].mxu1 }
 0x177   : >> { %v479_v7 = vadd.f32 %v473_v5, %v420_v63  ;;  %v888_v8 = vpop.f32.mrb[9].mxu0 }
 0x178   : >> { %v476_v9 = vpop.f32.mrb[10].mxu0 }
 0x179   : >> { %v530_v10 = vadd.f32 %v524_v55, %v479_v7  ;;  %v889_v11 = vpop.f32.mrb[11].mxu0 }
 0x17e   : >> { %v577_v12 = vpop.f32.mrb[12].mxu0 }
 0x17f   : >> { %v583_v13 = vadd.f32 %v577_v12, %v530_v10  ;;  %v900_v14 = vpop.f32.mrb[13].mxu0 }
 0x180   : >> { %v580_v15 = vpop.f32.mrb[14].mxu0 }
 0x181   : >> { %v642_v16 = vadd.f32 %v636_v2, %v583_v13  ;;  %v901_v17 = vpop.f32.mrb[15].mxu0 }
 0x186   : >> { %v687_v18 = vpop.f32.mrb[16].mxu0 }
 0x187   : >> { %v693_v20 = vadd.f32 %v687_v18, %v642_v16  ;;  %v912_v21 = vpop.f32.mrb[17].mxu0 }
 0x188   : >> { %v690_v22 = vpop.f32.mrb[18].mxu0 }
 0x189   : >> { %v699_v23 = vadd.f32 %v697_v19, %v693_v20  ;;  %v913_v24 = vpop.f32.mrb[19].mxu0  ;;  %201 = sbr.rel (!%p199_p5) target bundleno = 18 (0x12), region = 81 }
 0x18b   : >> { %v700_v25 = vmax.f32 %v699_v23, 0.0 }
 0x18d   : >> { %v701_v26 = vpack.c.bf16 %v700_v25, %v700_v25 }
 0x18f   : >> { %705 = vst.msk [vmem:[%s703_s29] sm:$0xf] %vm704_vm4, %v701_v26 }
 0x190 PF: > { %s13_s14 = sadd.s32 1, %s981_s14   ;;  %s1147_s12 = smov %s977_s13 }
 0x191   : > { %p10_p6 = scmp.ge.s32.totalorder %s13_s14, 4   ;;  %s1148_s13 = smov %s1150_s15 }
 0x193   :  { %12 = sbr.rel (!%p10_p6) target bundleno = 2 (0x2), region = 92 }

// kernel: _lambda_.7
= control target key start
LH: loop header
LB: loop body
LE: loop exit
PB: predicated region body
PF: predicated region fallthrough
CT: control target
= control target key end

     0   :  { %s1126_s12 = smov 0   ;;  %s1128_s13 = smov 0   ;;  %s1259_s0 = inlined_call_operand.vmem [shape: bf16[2,10,8,10], index: 0, kind: input, shape index: {}]   ;;  %s1260_s1 = inlined_call_operand.vmem [shape: bf16[9,16,8], index: 1, kind: input, shape index: {}]   ;;  %s1261_s2 = inlined_call_operand.vmem [shape: f32[16,1], index: 2, kind: input, shape index: {}]   ;;  %s1262_s3 = inlined_call_operand.vmem [shape: bf16[2,8,16,8], index: 3, kind: output, shape index: {}]  }
   0x1   :  { %s1130_s14 = smov 0  }
   0x2 LB: > { %s25_s15 = sadd.s32 1, %s1091_s13  ;;  %p889_p0 = scmp.ge.s32.totalorder %s1095_s14, 1  ;;  %s1095_s14 = sphi %s1130_s14, %s13_s14   ;;  %s1091_s13 = sphi %s1128_s13, %s1264_s13   ;;  %s1087_s12 = sphi %s1126_s12, %s1263_s12  }
   0x3   : > { %p27_p1 = scmp.ge.s32.totalorder %s25_s15, 2  ;;  %p151_p2 = scmp.lt.s32.totalorder %s1095_s14, 3 }
   0x5   : > { %s1266_s15 = smov (%p27_p1, %s25_s15), 0  ;;  %p152_p3 = pnand %p889_p0, %p151_p2 }
   0x6   : > { %p180_p4 = scmp.lt.s32.totalorder (!%p152_p3), %s1087_s12, 1  ;;  %v1147_v0 = vld [vmem:[%s1261_s2] sm:$0xff] (!%p152_p3)  ;;  %v1152_v1 = vld [vmem:[%s1261_s2 + $0x8] sm:$0xff] (!%p152_p3)  ;;  %s1164_s28 = smov (!%p152_p3), 0  }
   0x7   : > { %155 = sbr.rel (%p152_p3) target bundleno = 397 (0x18d), region = 32 }
   0xe   : > { %s1268_s12 = smov (!%p180_p4, %s1087_s12), 1 }
   0xf   : > { %s1017_s20 = smul.u32 40, %s1268_s12  ;;  %s941_s21 = sshll.u32 %s1268_s12, 6 }
  0x10   : > { %s1157_s24 = scalar_lea.vmem %s1262_s3, %s941_s21 }
  0x11   : > { %s1162_s27 = scalar_lea.vmem %s1259_s0, %s1017_s20 }
  0x12 LB: >> { %v1101_v2 = vmov 0.0   ;;  %s893_s29 = sshll.u32 %s1099_s28, 2  ;;  %vm229_vm0 = vcmask 1043456   ;;  %vm1102_vm1 = vmmov 0   ;;  %v1061_v8 = vld [vmem:[%s1260_s1] sm:$0xff]   ;;  %vm225_vm2 = vcmask 64512   ;;  %s1099_s28 = sphi %s1164_s28, %s205_s28  }
  0x13   : >> { %963 = vmatprep.subr.bf16.mxu0 %v1101_v2  ;;  %969 = vmatprep.subr.bf16.mxu1 %v1101_v2  ;;  %s208_s30 = scalar_lea.vmem %s1162_s27, %s893_s29  ;;  %s1103_s6 = smov 127   ;;  %v1063_v12 = vld [vmem:[%s1260_s1 + $0x18] sm:$0xff]   ;;  %v1105_v13 = vmov 0   ;;  %v1060_v17 = vld [vmem:[%s1260_s1 + $0x8] sm:$0xff]   ;;  %v1062_v24 = vld [vmem:[%s1260_s1 + $0x10] sm:$0xff]   ;;  %vm774_vm3 = vcmask 60416  }
  0x14   : >> { %965 = vmatprep.mubr.msk.bf16.mxu0 %vm1102_vm1, %v1101_v2  ;;  %971 = vmatprep.mubr.msk.bf16.mxu1 %vm1102_vm1, %v1101_v2  ;;  %v209_v3 = vld [vmem:[%s208_s30] sm:$0xf]  ;;  %v906_v4 = vld [vmem:[%s208_s30 + $0x4] sm:$0xf]  ;;  %v921_v9 = vld [vmem:[%s208_s30 + $0x8] sm:$0xf] }
  0x15   : >> { %v897_v5 = vcombine.low %v209_v3, %v209_v3  ;;  %v914_v6 = vcombine.low %v906_v4, %v906_v4  ;;  %v283_v7 = vsel %vm229_vm0, %v209_v3, 0  ;;  %v401_v10 = vsel %vm229_vm0, %v906_v4, 0  ;;  %s1104_s7 = smov 126   ;;  %1055 = vset.pattern.permute.xlu0 %v1105_v13  ;;  %1056 = vset.pattern.permute.xlu1 %v1105_v13  ;;  %v1065_v22 = vld [vmem:[%s1260_s1 + $0x28] sm:$0xff]   ;;  %v1067_v27 = vld [vmem:[%s1260_s1 + $0x38] sm:$0xff]   ;;  %v1064_v28 = vld [vmem:[%s1260_s1 + $0x20] sm:$0xff]  }
  0x16   : >> { %970 = vmatpush3.bf16.msra.mxu1 %v283_v7  ;;  %v929_v11 = vcombine.low %v921_v9, %v921_v9  ;;  %v583_v29 = vsel %vm229_vm0, %v921_v9, 0  ;;  %v1066_v31 = vld [vmem:[%s1260_s1 + $0x30] sm:$0xff]   ;;  %v1068_v33 = vld [vmem:[%s1260_s1 + $0x40] sm:$0xff]   ;;  %s944_s30 = sshll.u32 %s1099_s28, 3  ;;  %s205_s28 = sadd.s32 1, %s1099_s28  }
  0x17   : >> { %223 = vrot.lane.b32.xlu0 %v897_v5, %s1103_s6  ;;  %457 = vrot.lane.b32.xlu1 %v914_v6, %s1103_s6  ;;  %s773_s4 = scalar_lea.vmem %s1157_s24, %s944_s30  ;;  %p202_p5 = scmp.ge.s32.totalorder %s205_s28, 8  }
  0x18   : >> { %981 = vmatprep.subr.bf16.mxu1 %v1101_v2 }
  0x19   : >> { %972 = vmatmul.mubr.msk.bf16.vlgmr.msra.gmra.mrb[0].mxu1 %vm225_vm2, %v1061_v8 }
  0x1a   : >> { %982 = vmatpush3.bf16.msra.mxu1 %v401_v10  ;;  %983 = vmatprep.mubr.msk.bf16.mxu1 %vm1102_vm1, %v1101_v2 }
  0x1b   : >> { %334 = vrot.lane.b32.xlu0 %v897_v5, %s1104_s7  ;;  %516 = vrot.lane.b32.xlu1 %v914_v6, %s1104_s7 }
  0x1c   : >> { %993 = vmatprep.subr.bf16.mxu1 %v1101_v2 }
  0x1f   : >> { %639 = vrot.lane.b32.xlu0 %v929_v11, %s1103_s6  ;;  %698 = vrot.lane.b32.xlu1 %v929_v11, %s1104_s7 }
  0x21   : >> { %984 = vmatmul.mubr.msk.bf16.vlgmr.msra.gmra.mrb[4].mxu1 %vm225_vm2, %v1063_v12 }
  0x22   : >> { %995 = vmatprep.mubr.msk.bf16.mxu1 %vm1102_vm1, %v1101_v2 }
  0x23   : >> { %751 = vperm.xlu0 %1055, %v1147_v0   ;;  %756 = vperm.xlu1 %1056, %v1152_v1  }
  0x89   : >> { %v224_v14 = vpop.permute.xlu0 %223  ;;  %v458_v15 = vpop.permute.xlu1 %457 }
  0x8a   : >> { %v231_v16 = vsel %vm229_vm0, %v224_v14, 0  ;;  %v463_v26 = vsel %vm229_vm0, %v458_v15, 0 }
  0x8b   : >> { %964 = vmatpush3.bf16.msra.mxu0 %v231_v16 }
  0x8c   : >> { %975 = vmatprep.subr.bf16.mxu0 %v1101_v2 }
  0x8d   : >> { %v335_v18 = vpop.permute.xlu0 %334  ;;  %v517_v19 = vpop.permute.xlu1 %516 }
  0x8e   : >> { %v340_v20 = vsel %vm229_vm0, %v335_v18, 0  ;;  %966 = vmatmul.mubr.msk.bf16.vlgmr.msra.gmra.mrb[0].mxu0 %vm225_vm2, %v1060_v17  ;;  %v522_v21 = vsel %vm229_vm0, %v517_v19, 0 }
  0x8f   : >> { %976 = vmatpush3.bf16.msra.mxu0 %v340_v20  ;;  %977 = vmatprep.mubr.msk.bf16.mxu0 %vm1102_vm1, %v1101_v2 }
  0x90   : >> { %987 = vmatprep.subr.bf16.mxu0 %v1101_v2  ;;  %994 = vmatpush3.bf16.msra.mxu1 %v522_v21 }
  0x91   : >> { %v640_v23 = vpop.permute.xlu0 %639  ;;  %1005 = vmatprep.subr.bf16.mxu1 %v1101_v2  ;;  %v699_v30 = vpop.permute.xlu1 %698 }
  0x92   : >> { %v645_v25 = vsel %vm229_vm0, %v640_v23, 0  ;;  %v704_v32 = vsel %vm229_vm0, %v699_v30, 0 }
  0x93   : >> { %996 = vmatmul.mubr.msk.bf16.vlgmr.msra.gmra.mrb[8].mxu1 %vm225_vm2, %v1065_v22 }
  0x94   : >> { %1006 = vmatpush3.bf16.msra.mxu1 %v645_v25  ;;  %1007 = vmatprep.mubr.msk.bf16.mxu1 %vm1102_vm1, %v1101_v2 }
  0x96   : >> { %978 = vmatmul.mubr.msk.bf16.vlgmr.msra.gmra.mrb[4].mxu0 %vm225_vm2, %v1062_v24 }
  0x97   : >> { %988 = vmatpush3.bf16.msra.mxu0 %v463_v26  ;;  %989 = vmatprep.mubr.msk.bf16.mxu0 %vm1102_vm1, %v1101_v2 }
  0x98   : >> { %999 = vmatprep.subr.bf16.mxu0 %v1101_v2 }
  0x9b   : >> { %1008 = vmatmul.mubr.msk.bf16.vlgmr.msra.gmra.mrb[12].mxu1 %vm225_vm2, %v1067_v27 }
  0x9e   : >> { %990 = vmatmul.mubr.msk.bf16.vlgmr.msra.gmra.mrb[8].mxu0 %vm225_vm2, %v1064_v28 }
  0x9f   : >> { %1000 = vmatpush3.bf16.msra.mxu0 %v583_v29  ;;  %1001 = vmatprep.mubr.msk.bf16.mxu0 %vm1102_vm1, %v1101_v2 }
  0xa0   : >> { %1011 = vmatprep.subr.bf16.mxu0 %v1101_v2 }
  0xa2   : >> { %v752_v19 = vpop.permute.xlu0 %751  ;;  %v757_v23 = vpop.permute.xlu1 %756 }
  0xa6   : >> { %1002 = vmatmul.mubr.msk.bf16.vlgmr.msra.gmra.mrb[12].mxu0 %vm225_vm2, %v1066_v31 }
  0xa7   : >> { %1012 = vmatpush3.bf16.msra.mxu0 %v704_v32  ;;  %1013 = vmatprep.mubr.msk.bf16.mxu0 %vm1102_vm1, %v1101_v2 }
  0xae   : >> { %1014 = vmatmul.mubr.msk.bf16.vlgmr.msra.gmra.mrb[16].mxu0 %vm225_vm2, %v1068_v33 }
  0xec   : >> { %v319_v34 = vpop.f32.mrb[0].mxu1 }
  0xed   : >> { %v973_v35 = vpop.f32.mrb[1].mxu1 }
  0xee   : >> { %v322_v36 = vpop.f32.mrb[2].mxu1 }
  0xef   : >> { %v974_v37 = vpop.f32.mrb[3].mxu1 }
  0xf4   : >> { %v437_v38 = vpop.f32.mrb[4].mxu1 }
  0xf5   : >> { %v985_v39 = vpop.f32.mrb[5].mxu1 }
  0xf6   : >> { %v440_v40 = vpop.f32.mrb[6].mxu1 }
  0xf7   : >> { %v986_v41 = vpop.f32.mrb[7].mxu1 }
 0x161   : >> { %v267_v42 = vpop.f32.mrb[0].mxu0 }
 0x162   : >> { %v320_v43 = vadd.f32 %v319_v34, %v267_v42  ;;  %v967_v44 = vpop.f32.mrb[1].mxu0 }
 0x163   : >> { %v270_v45 = vpop.f32.mrb[2].mxu0 }
 0x164   : >> { %v323_v46 = vadd.f32 %v322_v36, %v270_v45  ;;  %v968_v47 = vpop.f32.mrb[3].mxu0 }
 0x166   : >> { %v558_v48 = vpop.f32.mrb[8].mxu1 }
 0x167   : >> { %v997_v49 = vpop.f32.mrb[9].mxu1 }
 0x168   : >> { %v561_v50 = vpop.f32.mrb[10].mxu1 }
 0x169   : >> { %v376_v51 = vpop.f32.mrb[4].mxu0  ;;  %v998_v52 = vpop.f32.mrb[11].mxu1 }
 0x16a   : >> { %v383_v53 = vadd.f32 %v376_v51, %v320_v43  ;;  %v979_v54 = vpop.f32.mrb[5].mxu0 }
 0x16b   : >> { %v379_v55 = vpop.f32.mrb[6].mxu0 }
 0x16c   : >> { %v384_v56 = vadd.f32 %v379_v55, %v323_v46  ;;  %v444_v57 = vadd.f32 %v437_v38, %v383_v53  ;;  %v980_v58 = vpop.f32.mrb[7].mxu0 }
 0x16e   : >> { %v445_v59 = vadd.f32 %v440_v40, %v384_v56  ;;  %v681_v60 = vpop.f32.mrb[12].mxu1 }
 0x16f   : >> { %v1009_v61 = vpop.f32.mrb[13].mxu1 }
 0x170   : >> { %v684_v62 = vpop.f32.mrb[14].mxu1 }
 0x171   : >> { %v499_v63 = vpop.f32.mrb[8].mxu0  ;;  %v1010_v2 = vpop.f32.mrb[15].mxu1 }
 0x172   : >> { %v506_v3 = vadd.f32 %v499_v63, %v444_v57  ;;  %v991_v4 = vpop.f32.mrb[9].mxu0 }
 0x173   : >> { %v502_v5 = vpop.f32.mrb[10].mxu0 }
 0x174   : >> { %v507_v6 = vadd.f32 %v502_v5, %v445_v59  ;;  %v565_v7 = vadd.f32 %v558_v48, %v506_v3  ;;  %v992_v8 = vpop.f32.mrb[11].mxu0 }
 0x176   : >> { %v566_v9 = vadd.f32 %v561_v50, %v507_v6 }
 0x179   : >> { %v619_v10 = vpop.f32.mrb[12].mxu0 }
 0x17a   : >> { %v626_v11 = vadd.f32 %v619_v10, %v565_v7  ;;  %v1003_v12 = vpop.f32.mrb[13].mxu0 }
 0x17b   : >> { %v622_v13 = vpop.f32.mrb[14].mxu0 }
 0x17c   : >> { %v627_v14 = vadd.f32 %v622_v13, %v566_v9  ;;  %v688_v15 = vadd.f32 %v681_v60, %v626_v11  ;;  %v1004_v16 = vpop.f32.mrb[15].mxu0 }
 0x17e   : >> { %v689_v17 = vadd.f32 %v684_v62, %v627_v14 }
 0x181   : >> { %v740_v18 = vpop.f32.mrb[16].mxu0 }
 0x182   : >> { %v747_v20 = vadd.f32 %v740_v18, %v688_v15  ;;  %v1015_v21 = vpop.f32.mrb[17].mxu0 }
 0x183   : >> { %v743_v22 = vpop.f32.mrb[18].mxu0 }
 0x184   : >> { %v748_v24 = vadd.f32 %v743_v22, %v689_v17  ;;  %v759_v25 = vadd.f32 %v752_v19, %v747_v20  ;;  %v1016_v26 = vpop.f32.mrb[19].mxu0 }
 0x186   : >> { %v761_v27 = vmax.f32 %v759_v25, 0.0  ;;  %v760_v28 = vadd.f32 %v757_v23, %v748_v24  ;;  %204 = sbr.rel (!%p202_p5) target bundleno = 18 (0x12), region = 81 }
 0x188   : >> { %v942_v29 = vpack.c.bf16 %v761_v27, %v761_v27  ;;  %v762_v30 = vmax.f32 %v760_v28, 0.0 }
 0x18a   : >> { %775 = vst.msk [vmem:[%s773_s4] sm:$0xf] %vm774_vm3, %v942_v29  ;;  %v943_v31 = vpack.c.bf16 %v762_v30, %v762_v30 }
 0x18c   : >> { %776 = vst.msk [vmem:[%s773_s4 + $0x4] sm:$0xf] %vm774_vm3, %v943_v31 }
 0x18d PF: > { %s13_s14 = sadd.s32 1, %s1095_s14   ;;  %s1263_s12 = smov %s1091_s13 }
 0x18e   : > { %p10_p6 = scmp.ge.s32.totalorder %s13_s14, 4   ;;  %s1264_s13 = smov %s1266_s15 }
 0x190   :  { %12 = sbr.rel (!%p10_p6) target bundleno = 2 (0x2), region = 92 }

// kernel: _lambda_.8
= control target key start
LH: loop header
LB: loop body
LE: loop exit
PB: predicated region body
PF: predicated region fallthrough
CT: control target
= control target key end

     0   :  { %s1409_s12 = smov 0   ;;  %s1411_s13 = smov 0   ;;  %s1560_s0 = inlined_call_operand.vmem [shape: bf16[2,6,16,6], index: 0, kind: input, shape index: {}]   ;;  %s1561_s1 = inlined_call_operand.vmem [shape: bf16[9,32,16], index: 1, kind: input, shape index: {}]   ;;  %s1562_s2 = inlined_call_operand.vmem [shape: f32[32,1], index: 2, kind: input, shape index: {}]   ;;  %s1563_s3 = inlined_call_operand.vmem [shape: bf16[2,4,32,4], index: 3, kind: output, shape index: {}]  }
   0x1   :  { %s1413_s14 = smov 0  }
   0x2 LB: > { %s25_s15 = sadd.s32 1, %s1376_s13  ;;  %p1084_p0 = scmp.ge.s32.totalorder %s1380_s14, 1  ;;  %s1380_s14 = sphi %s1413_s14, %s13_s14   ;;  %s1376_s13 = sphi %s1411_s13, %s1565_s13   ;;  %s1372_s12 = sphi %s1409_s12, %s1564_s12  }
   0x3   : > { %p27_p1 = scmp.ge.s32.totalorder %s25_s15, 2  ;;  %p151_p2 = scmp.lt.s32.totalorder %s1380_s14, 3 }
   0x5   : > { %s1567_s15 = smov (%p27_p1, %s25_s15), 0  ;;  %p152_p3 = pnand %p1084_p0, %p151_p2 }
   0x6   : > { %p180_p4 = scmp.lt.s32.totalorder (!%p152_p3), %s1372_s12, 1  ;;  %v1430_v0 = vld [vmem:[%s1562_s2] sm:$0xff] (!%p152_p3)  ;;  %v1435_v1 = vld [vmem:[%s1562_s2 + $0x8] sm:$0xff] (!%p152_p3)  ;;  %v1440_v2 = vld [vmem:[%s1562_s2 + $0x10] sm:$0xff] (!%p152_p3)  ;;  %s1457_s5 = smov (!%p152_p3), 0  }
   0x7   : > { %155 = sbr.rel (%p152_p3) target bundleno = 412 (0x19c), region = 32  ;;  %v1445_v3 = vld [vmem:[%s1562_s2 + $0x18] sm:$0xff] (!%p152_p3) }
   0xe   : > { %s1569_s12 = smov (!%p180_p4, %s1372_s12), 1 }
   0xf   : > { %s1295_s24 = smul.u32 48, %s1569_s12  ;;  %s1175_s25 = sshll.u32 %s1569_s12, 6 }
  0x10   : > { %s1450_s28 = scalar_lea.vmem %s1563_s3, %s1175_s25 }
  0x11   : > { %s1455_s4 = scalar_lea.vmem %s1560_s0, %s1295_s24 }
  0x12 LB: >> { %vm241_vm0 = vcmask 130048   ;;  %v1336_v4 = vld [vmem:[%s1561_s1 + $0x40] sm:$0xff]   ;;  %s1176_s8 = sshll.u32 %s1384_s5, 3  ;;  %v1338_v5 = vld [vmem:[%s1561_s1 + $0x10] sm:$0xff]   ;;  %s1386_s12 = smov 127   ;;  %v1388_v9 = vmov 0   ;;  %s1384_s5 = sphi %s1457_s5, %s207_s5  }
  0x13   : >> { %s211_s9 = scalar_lea.vmem %s1455_s4, %s1176_s8  ;;  %1235 = vmatprep.mubr.msk.bf16.mxu0 %vm241_vm0, %v1336_v4  ;;  %1211 = vmatprep.mubr.msk.bf16.mxu1 %vm241_vm0, %v1338_v5  ;;  %s1387_s16 = smov 126   ;;  %v1337_v12 = vld [vmem:[%s1561_s1 + $0x48] sm:$0xff]   ;;  %v1340_v13 = vld [vmem:[%s1561_s1 + $0x50] sm:$0xff]   ;;  %v1339_v15 = vld [vmem:[%s1561_s1 + $0x18] sm:$0xff]   ;;  %vm967_vm1 = vcmask 27648  }
  0x14   : >> { %v1471_v6 = vld [vmem:[%s211_s9 + $0x8] sm:$0xff]   ;;  %v1334_v7 = vld [vmem:[%s211_s9] sm:$0xff]   ;;  %v1335_v8 = vld [vmem:[%s211_s9 + $0x10] sm:$0xff]   ;;  %1332 = vset.pattern.permute.xlu1 %v1388_v9  ;;  %1331 = vset.pattern.permute.xlu0 %v1388_v9  ;;  %s1181_s29 = sshll.u32 %s1384_s5, 4  ;;  %s207_s5 = sadd.s32 1, %s1384_s5  }
  0x15   : >> { %541 = vrot.lane.b32.xlu0 %v1471_v6, %s1386_s12  ;;  %618 = vrot.lane.b32.xlu1 %v1471_v6, %s1387_s16  ;;  %v1342_v16 = vld [vmem:[%s1561_s1] sm:$0xff]   ;;  %v1341_v18 = vld [vmem:[%s1561_s1 + $0x58] sm:$0xff]   ;;  %s966_s30 = scalar_lea.vmem %s1450_s28, %s1181_s29  ;;  %p204_p5 = scmp.ge.s32.totalorder %s207_s5, 4  }
  0x16   : >> { %v1344_v19 = vld [vmem:[%s1561_s1 + $0x60] sm:$0xff]   ;;  %v1343_v21 = vld [vmem:[%s1561_s1 + $0x8] sm:$0xff]   ;;  %v1348_v24 = vld [vmem:[%s1561_s1 + $0x70] sm:$0xff]  }
  0x17   : >> { %v1346_v22 = vld [vmem:[%s1561_s1 + $0x20] sm:$0xff]   ;;  %v1345_v23 = vld [vmem:[%s1561_s1 + $0x68] sm:$0xff]   ;;  %v1350_v27 = vld [vmem:[%s1561_s1 + $0x30] sm:$0xff]  }
  0x18   : >> { %v1347_v26 = vld [vmem:[%s1561_s1 + $0x28] sm:$0xff]   ;;  %v1349_v28 = vld [vmem:[%s1561_s1 + $0x78] sm:$0xff]   ;;  %v1352_v29 = vld [vmem:[%s1561_s1 + $0x80] sm:$0xff]  }
  0x19   : >> { %238 = vrot.lane.b32.xlu0 %v1334_v7, %s1386_s12  ;;  %378 = vrot.lane.b32.xlu1 %v1334_v7, %s1387_s16  ;;  %v1351_v30 = vld [vmem:[%s1561_s1 + $0x38] sm:$0xff]   ;;  %v1353_v31 = vld [vmem:[%s1561_s1 + $0x88] sm:$0xff]  }
  0x1d   : >> { %781 = vrot.lane.b32.xlu0 %v1335_v8, %s1386_s12  ;;  %858 = vrot.lane.b32.xlu1 %v1335_v8, %s1387_s16 }
  0x21   : >> { %927 = vperm.xlu1 %1332, %v1435_v1   ;;  %922 = vperm.xlu0 %1331, %v1430_v0  }
  0x25   : >> { %932 = vperm.xlu1 %1332, %v1440_v2   ;;  %937 = vperm.xlu0 %1331, %v1445_v3  }
  0x87   : >> { %v542_v10 = vpop.permute.xlu0 %541  ;;  %v619_v11 = vpop.permute.xlu1 %618 }
  0x88   : >> { %1233 = vmatprep.subr.bf16.mxu0 %v542_v10 }
  0x89   : >> { %1234 = vmatpush3.bf16.msra.mxu0 %v542_v10 }
  0x8a   : >> { %1239 = vmatprep.subr.bf16.mxu0 %v619_v11 }
  0x8b   : >> { %v239_v14 = vpop.permute.xlu0 %238  ;;  %v379_v17 = vpop.permute.xlu1 %378 }
  0x8c   : >> { %1209 = vmatprep.subr.bf16.mxu1 %v239_v14  ;;  %1236 = vmatmul.mubr.msk.bf16.vlgmr.msra.gmra.mrb[0].mxu0 %vm241_vm0, %v1337_v12 }
  0x8d   : >> { %1210 = vmatpush3.bf16.msra.mxu1 %v239_v14  ;;  %1240 = vmatpush3.bf16.msra.mxu0 %v619_v11 }
  0x8e   : >> { %1241 = vmatprep.mubr.msk.bf16.mxu0 %vm241_vm0, %v1340_v13  ;;  %1215 = vmatprep.subr.bf16.mxu1 %v1334_v7 }
  0x8f   : >> { %1245 = vmatprep.subr.bf16.mxu0 %v1335_v8  ;;  %v782_v20 = vpop.permute.xlu0 %781  ;;  %v859_v25 = vpop.permute.xlu1 %858 }
  0x90   : >> { %1212 = vmatmul.mubr.msk.bf16.vlgmr.msra.gmra.mrb[0].mxu1 %vm241_vm0, %v1339_v15 }
  0x91   : >> { %1216 = vmatpush3.bf16.msra.mxu1 %v1334_v7  ;;  %1217 = vmatprep.mubr.msk.bf16.mxu1 %vm241_vm0, %v1342_v16 }
  0x92   : >> { %1221 = vmatprep.subr.bf16.mxu1 %v379_v17 }
  0x98   : >> { %1242 = vmatmul.mubr.msk.bf16.vlgmr.msra.gmra.mrb[0].mxu0 %vm241_vm0, %v1341_v18 }
  0x99   : >> { %1246 = vmatpush3.bf16.msra.mxu0 %v1335_v8  ;;  %1247 = vmatprep.mubr.msk.bf16.mxu0 %vm241_vm0, %v1344_v19 }
  0x9a   : >> { %1251 = vmatprep.subr.bf16.mxu0 %v782_v20 }
  0x9c   : >> { %1218 = vmatmul.mubr.msk.bf16.vlgmr.msra.gmra.mrb[0].mxu1 %vm241_vm0, %v1343_v21 }
  0x9d   : >> { %1222 = vmatpush3.bf16.msra.mxu1 %v379_v17  ;;  %1223 = vmatprep.mubr.msk.bf16.mxu1 %vm241_vm0, %v1346_v22 }
  0x9e   : >> { %1227 = vmatprep.subr.bf16.mxu1 %v1471_v6 }
  0xa0   : >> { %v928_v35 = vpop.permute.xlu1 %927  ;;  %v923_v37 = vpop.permute.xlu0 %922 }
  0xa4   : >> { %1248 = vmatmul.mubr.msk.bf16.vlgmr.msra.gmra.mrb[0].mxu0 %vm241_vm0, %v1345_v23  ;;  %v933_v39 = vpop.permute.xlu1 %932  ;;  %v938_v48 = vpop.permute.xlu0 %937 }
  0xa5   : >> { %1252 = vmatpush3.bf16.msra.mxu0 %v782_v20  ;;  %1253 = vmatprep.mubr.msk.bf16.mxu0 %vm241_vm0, %v1348_v24 }
  0xa6   : >> { %1257 = vmatprep.subr.bf16.mxu0 %v859_v25 }
  0xa8   : >> { %1224 = vmatmul.mubr.msk.bf16.vlgmr.msra.gmra.mrb[0].mxu1 %vm241_vm0, %v1347_v26 }
  0xa9   : >> { %1228 = vmatpush3.bf16.msra.mxu1 %v1471_v6  ;;  %1229 = vmatprep.mubr.msk.bf16.mxu1 %vm241_vm0, %v1350_v27 }
  0xb0   : >> { %1254 = vmatmul.mubr.msk.bf16.vlgmr.msra.gmra.mrb[0].mxu0 %vm241_vm0, %v1349_v28 }
  0xb1   : >> { %1258 = vmatpush3.bf16.msra.mxu0 %v859_v25  ;;  %1259 = vmatprep.mubr.msk.bf16.mxu0 %vm241_vm0, %v1352_v29 }
  0xb4   : >> { %1230 = vmatmul.mubr.msk.bf16.vlgmr.msra.gmra.mrb[0].mxu1 %vm241_vm0, %v1351_v30 }
  0xbc   : >> { %1260 = vmatmul.mubr.msk.bf16.vlgmr.msra.gmra.mrb[0].mxu0 %vm241_vm0, %v1353_v31 }
 0x187   : >> { %v1231_v32 = vpop.f32.mrb[0].mxu1 }
 0x188   : >> { %v507_v33 = vpop.f32.mrb[1].mxu1 }
 0x189   : >> { %v1232_v34 = vpop.f32.mrb[2].mxu1 }
 0x18a   : >> { %v510_v36 = vpop.f32.mrb[3].mxu1 }
 0x18f   : >> { %v1261_v38 = vpop.f32.mrb[0].mxu0 }
 0x190   : >> { %v1263_v40 = vadd.f32 %v1261_v38, %v1231_v32  ;;  %v901_v41 = vpop.f32.mrb[1].mxu0 }
 0x191   : >> { %v1264_v42 = vadd.f32 %v901_v41, %v507_v33  ;;  %v1262_v43 = vpop.f32.mrb[2].mxu0 }
 0x192   : >> { %v942_v44 = vadd.f32 %v1263_v40, %v933_v39  ;;  %v1265_v45 = vadd.f32 %v1262_v43, %v1232_v34  ;;  %v904_v46 = vpop.f32.mrb[3].mxu0 }
 0x193   : >> { %v940_v47 = vadd.f32 %v1264_v42, %v923_v37  ;;  %v1266_v49 = vadd.f32 %v904_v46, %v510_v36 }
 0x194   : >> { %v946_v50 = vmax.f32 %v942_v44, 0.0  ;;  %v943_v51 = vadd.f32 %v1265_v45, %v938_v48 }
 0x195   : >> { %v944_v52 = vmax.f32 %v940_v47, 0.0  ;;  %v941_v53 = vadd.f32 %v1266_v49, %v928_v35  ;;  %206 = sbr.rel (!%p204_p5) target bundleno = 18 (0x12), region = 81 }
 0x196   : >> { %v1179_v54 = vpack.c.bf16 %v946_v50, %v946_v50  ;;  %v947_v55 = vmax.f32 %v943_v51, 0.0 }
 0x197   : >> { %v1177_v56 = vpack.c.bf16 %v944_v52, %v944_v52  ;;  %v945_v57 = vmax.f32 %v941_v53, 0.0 }
 0x198   : >> { %970 = vst.msk [vmem:[%s966_s30 + $0x8] sm:$0xf] %vm967_vm1, %v1179_v54  ;;  %v1180_v58 = vpack.c.bf16 %v947_v55, %v947_v55 }
 0x199   : >> { %968 = vst.msk [vmem:[%s966_s30] sm:$0xf] %vm967_vm1, %v1177_v56  ;;  %v1178_v59 = vpack.c.bf16 %v945_v57, %v945_v57 }
 0x19a   : >> { %971 = vst.msk [vmem:[%s966_s30 + $0xc] sm:$0xf] %vm967_vm1, %v1180_v58 }
 0x19b   : >> { %969 = vst.msk [vmem:[%s966_s30 + $0x4] sm:$0xf] %vm967_vm1, %v1178_v59 }
 0x19c PF: > { %s13_s14 = sadd.s32 1, %s1380_s14   ;;  %s1564_s12 = smov %s1376_s13 }
 0x19d   : > { %p10_p6 = scmp.ge.s32.totalorder %s13_s14, 4   ;;  %s1565_s13 = smov %s1567_s15 }
 0x19f   :  { %12 = sbr.rel (!%p10_p6) target bundleno = 2 (0x2), region = 92 }

// kernel: _lambda_.10
= control target key start
LH: loop header
LB: loop body
LE: loop exit
PB: predicated region body
PF: predicated region fallthrough
CT: control target
= control target key end

     0   :  { %s1981_s18 = smov 0   ;;  %s1983_s19 = smov 0   ;;  %s2229_s0 = inlined_call_operand.vmem [shape: bf16[2,10,16,10], index: 0, kind: input, shape index: {}]   ;;  %s2230_s1 = inlined_call_operand.vmem [shape: bf16[2,10,32,10], index: 1, kind: input, shape index: {}]   ;;  %s2231_s2 = inlined_call_operand.vmem [shape: bf16[9,16,16], index: 2, kind: input, shape index: {}]   ;;  %s2232_s3 = inlined_call_operand.vmem [shape: bf16[9,16,32], index: 3, kind: input, shape index: {}]   ;;  %s2233_s4 = inlined_call_operand.vmem [shape: f32[16,1], index: 4, kind: input, shape index: {}]   ;;  %s2234_s5 = inlined_call_operand.vmem [shape: bf16[2,8,16,8], index: 5, kind: output, shape index: {}]  }
   0x1   :  { %s1985_s20 = smov 0  }
   0x2 LB: > { %s27_s21 = sadd.s32 1, %s1936_s19  ;;  %p1561_p0 = scmp.ge.s32.totalorder %s1940_s20, 1  ;;  %s1940_s20 = sphi %s1985_s20, %s15_s20   ;;  %s1936_s19 = sphi %s1983_s19, %s2236_s19   ;;  %s1932_s18 = sphi %s1981_s18, %s2235_s18  }
   0x3   : > { %p29_p1 = scmp.ge.s32.totalorder %s27_s21, 2  ;;  %p211_p2 = scmp.lt.s32.totalorder %s1940_s20, 3 }
   0x5   : > { %s2238_s21 = smov (%p29_p1, %s27_s21), 0  ;;  %p212_p3 = pnand %p1561_p0, %p211_p2 }
   0x6   : > { %p249_p4 = scmp.lt.s32.totalorder (!%p212_p3), %s1932_s18, 1  ;;  %v2002_v0 = vld [vmem:[%s2233_s4] sm:$0xff] (!%p212_p3)  ;;  %v2007_v1 = vld [vmem:[%s2233_s4 + $0x8] sm:$0xff] (!%p212_p3)  ;;  %s2024_s13 = smov (!%p212_p3), 0  }
   0x7   : > { %215 = sbr.rel (%p212_p3) target bundleno = 429 (0x1ad), region = 40 }
   0xe   : > { %s2240_s18 = smov (!%p249_p4, %s1932_s18), 1 }
   0xf   : > { %s1846_s26 = smul.u32 80, %s2240_s18  ;;  %s1669_s27 = sshll.u32 %s2240_s18, 6 }
  0x10   : > { %s1847_s28 = smul.u32 160, %s2240_s18  ;;  %s2012_s6 = scalar_lea.vmem %s2234_s5, %s1669_s27 }
  0x11   : > { %s2017_s9 = scalar_lea.vmem %s2229_s0, %s1846_s26 }
  0x12   : > { %s2022_s12 = scalar_lea.vmem %s2230_s1, %s1847_s28 }
  0x13 LB: >> { %v1946_v2 = vmov 0.0   ;;  %s1670_s14 = sshll.u32 %s1944_s13, 3  ;;  %s1671_s15 = sshll.u32 %s1944_s13, 4  ;;  %vm1947_vm0 = vmmov 0   ;;  %v1897_v3 = vld [vmem:[%s2231_s2] sm:$0xff]   ;;  %vm304_vm1 = vcmask 130048   ;;  %s1944_s13 = sphi %s2024_s13, %s279_s13  }
  0x14   : >> { %1720 = vmatprep.subr.bf16.mxu0 %v1946_v2  ;;  %1726 = vmatprep.subr.bf16.mxu1 %v1946_v2  ;;  %s283_s16 = scalar_lea.vmem %s2017_s9, %s1670_s14  ;;  %s2044_s22 = scalar_lea.vmem %s2022_s12, %s1671_s15  ;;  %v1899_v7 = vld [vmem:[%s2231_s2 + $0x18] sm:$0xff]   ;;  %v1950_v14 = vmov 0   ;;  %v1896_v16 = vld [vmem:[%s2231_s2 + $0x8] sm:$0xff]   ;;  %v1898_v21 = vld [vmem:[%s2231_s2 + $0x10] sm:$0xff]   ;;  %vm842_vm2 = vcmask 261120   ;;  %vm1420_vm3 = vcmask 60416  }
  0x15   : >> { %1722 = vmatprep.mubr.msk.bf16.mxu0 %vm1947_vm0, %v1946_v2  ;;  %1728 = vmatprep.mubr.msk.bf16.mxu1 %vm1947_vm0, %v1946_v2  ;;  %v1887_v4 = vld [vmem:[%s283_s16] sm:$0xff]   ;;  %v1888_v5 = vld [vmem:[%s283_s16 + $0x8] sm:$0xff]   ;;  %s1948_s23 = smov 127   ;;  %s1949_s24 = smov 126   ;;  %v2050_v6 = vld [vmem:[%s283_s16 + $0x10] sm:$0xff]  }
  0x16   : >> { %301 = vrot.lane.b32.xlu0 %v1887_v4, %s1948_s23  ;;  %1727 = vmatpush3.bf16.msra.mxu1 %v1887_v4  ;;  %v1890_v8 = vld [vmem:[%s2044_s22] sm:$0xff]   ;;  %v1891_v9 = vld [vmem:[%s2044_s22 + $0x8] sm:$0xff]   ;;  %v2068_v10 = vld [vmem:[%s2044_s22 + $0x10] sm:$0xff]   ;;  %s1419_s25 = scalar_lea.vmem %s2012_s6, %s1670_s14  ;;  %s279_s13 = sadd.s32 1, %s1944_s13  }
  0x17   : >> { %530 = vrot.lane.b32.xlu1 %v1888_v5, %s1948_s23  ;;  %1738 = vmatprep.subr.bf16.mxu1 %v1946_v2  ;;  %v2071_v11 = vld [vmem:[%s2044_s22 + $0x18] sm:$0xff]   ;;  %v2080_v12 = vld [vmem:[%s2044_s22 + $0x20] sm:$0xff]   ;;  %v2086_v13 = vld [vmem:[%s2044_s22 + $0x28] sm:$0xff]   ;;  %p276_p5 = scmp.ge.s32.totalorder %s279_s13, 8  }
  0x18   : >> { %1885 = vset.pattern.permute.xlu0 %v1950_v14  ;;  %1886 = vset.pattern.permute.xlu1 %v1950_v14  ;;  %v1901_v20 = vld [vmem:[%s2231_s2 + $0x28] sm:$0xff]   ;;  %v1903_v23 = vld [vmem:[%s2231_s2 + $0x38] sm:$0xff]   ;;  %v1900_v25 = vld [vmem:[%s2231_s2 + $0x20] sm:$0xff]  }
  0x19   : >> { %1729 = vmatmul.mubr.msk.bf16.vlgmr.msra.gmra.mrb[0].mxu1 %vm304_vm1, %v1897_v3  ;;  %v1905_v28 = vld [vmem:[%s2232_s3] sm:$0xff]   ;;  %v1902_v29 = vld [vmem:[%s2231_s2 + $0x30] sm:$0xff]   ;;  %v1906_v38 = vld [vmem:[%s2232_s3 + $0x8] sm:$0xff]  }
  0x1a   : >> { %407 = vrot.lane.b32.xlu0 %v1887_v4, %s1949_s24  ;;  %1739 = vmatpush3.bf16.msra.mxu1 %v1888_v5  ;;  %v1907_v32 = vld [vmem:[%s2232_s3 + $0x10] sm:$0xff]   ;;  %v1904_v34 = vld [vmem:[%s2231_s2 + $0x40] sm:$0xff]   ;;  %v1908_v41 = vld [vmem:[%s2232_s3 + $0x18] sm:$0xff]  }
  0x1b   : >> { %587 = vrot.lane.b32.xlu1 %v1888_v5, %s1949_s24  ;;  %1740 = vmatprep.mubr.msk.bf16.mxu1 %vm1947_vm0, %v1946_v2  ;;  %v1909_v36 = vld [vmem:[%s2232_s3 + $0x20] sm:$0xff]   ;;  %v1911_v40 = vld [vmem:[%s2232_s3 + $0x30] sm:$0xff]   ;;  %v1910_v45 = vld [vmem:[%s2232_s3 + $0x28] sm:$0xff]  }
  0x1c   : >> { %1750 = vmatprep.subr.bf16.mxu1 %v1946_v2  ;;  %v1913_v44 = vld [vmem:[%s2232_s3 + $0x40] sm:$0xff]   ;;  %v1912_v48 = vld [vmem:[%s2232_s3 + $0x38] sm:$0xff]  }
  0x1e   : >> { %710 = vrot.lane.b32.xlu0 %v2050_v6, %s1948_s23 }
  0x1f   : >> { %767 = vrot.lane.b32.xlu1 %v2050_v6, %s1949_s24 }
  0x21   : >> { %1741 = vmatmul.mubr.msk.bf16.vlgmr.msra.gmra.mrb[4].mxu1 %vm304_vm1, %v1899_v7 }
  0x22   : >> { %897 = vrot.lane.b32.xlu0 %v1890_v8, %s1948_s23  ;;  %1752 = vmatprep.mubr.msk.bf16.mxu1 %vm1947_vm0, %v1946_v2 }
  0x23   : >> { %957 = vrot.lane.b32.xlu1 %v1890_v8, %s1949_s24 }
  0x26   : >> { %899 = vrot.lane.b32.xlu0 %v1891_v9, %s1948_s23 }
  0x27   : >> { %959 = vrot.lane.b32.xlu1 %v1891_v9, %s1949_s24 }
  0x2a   : >> { %1090 = vrot.lane.b32.xlu0 %v2068_v10, %s1948_s23 }
  0x2b   : >> { %1092 = vrot.lane.b32.xlu1 %v2071_v11, %s1948_s23 }
  0x2e   : >> { %1150 = vrot.lane.b32.xlu0 %v2068_v10, %s1949_s24 }
  0x2f   : >> { %1152 = vrot.lane.b32.xlu1 %v2071_v11, %s1949_s24 }
  0x32   : >> { %1283 = vrot.lane.b32.xlu0 %v2080_v12, %s1948_s23 }
  0x33   : >> { %1343 = vrot.lane.b32.xlu1 %v2080_v12, %s1949_s24 }
  0x36   : >> { %1285 = vrot.lane.b32.xlu0 %v2086_v13, %s1948_s23 }
  0x37   : >> { %1345 = vrot.lane.b32.xlu1 %v2086_v13, %s1949_s24 }
  0x3a   : >> { %1397 = vperm.xlu0 %1885, %v2002_v0  }
  0x3b   : >> { %1402 = vperm.xlu1 %1886, %v2007_v1  }
  0x88   : >> { %v302_v15 = vpop.permute.xlu0 %301 }
  0x89   : >> { %1721 = vmatpush3.bf16.msra.mxu0 %v302_v15  ;;  %v531_v17 = vpop.permute.xlu1 %530 }
  0x8a   : >> { %1732 = vmatprep.subr.bf16.mxu0 %v1946_v2 }
  0x8c   : >> { %1723 = vmatmul.mubr.msk.bf16.vlgmr.msra.gmra.mrb[0].mxu0 %vm304_vm1, %v1896_v16  ;;  %v408_v18 = vpop.permute.xlu0 %407 }
  0x8d   : >> { %1733 = vmatpush3.bf16.msra.mxu0 %v408_v18  ;;  %1734 = vmatprep.mubr.msk.bf16.mxu0 %vm1947_vm0, %v1946_v2  ;;  %v588_v19 = vpop.permute.xlu1 %587 }
  0x8e   : >> { %1744 = vmatprep.subr.bf16.mxu0 %v1946_v2  ;;  %1751 = vmatpush3.bf16.msra.mxu1 %v588_v19 }
  0x8f   : >> { %1762 = vmatprep.subr.bf16.mxu1 %v1946_v2 }
  0x90   : >> { %v711_v22 = vpop.permute.xlu0 %710 }
  0x91   : >> { %1753 = vmatmul.mubr.msk.bf16.vlgmr.msra.gmra.mrb[8].mxu1 %vm304_vm1, %v1901_v20  ;;  %v768_v24 = vpop.permute.xlu1 %767 }
  0x92   : >> { %1763 = vmatpush3.bf16.msra.mxu1 %v711_v22  ;;  %1764 = vmatprep.mubr.msk.bf16.mxu1 %vm1947_vm0, %v1946_v2 }
  0x93   : >> { %1774 = vmatprep.subr.bf16.mxu1 %v1946_v2 }
  0x94   : >> { %1735 = vmatmul.mubr.msk.bf16.vlgmr.msra.gmra.mrb[4].mxu0 %vm304_vm1, %v1898_v21  ;;  %v898_v26 = vpop.permute.xlu0 %897 }
  0x95   : >> { %1745 = vmatpush3.bf16.msra.mxu0 %v531_v17  ;;  %1746 = vmatprep.mubr.msk.bf16.mxu0 %vm1947_vm0, %v1946_v2  ;;  %v958_v27 = vpop.permute.xlu1 %957 }
  0x96   : >> { %1756 = vmatprep.subr.bf16.mxu0 %v1946_v2 }
  0x98   : >> { %v900_v30 = vpop.permute.xlu0 %899 }
  0x99   : >> { %1765 = vmatmul.mubr.msk.bf16.vlgmr.msra.gmra.mrb[12].mxu1 %vm304_vm1, %v1903_v23  ;;  %v960_v31 = vpop.permute.xlu1 %959 }
  0x9a   : >> { %1775 = vmatpush3.bf16.msra.mxu1 %v1890_v8  ;;  %1778 = vmatprep.mubr.msk.bf16.mxu1 %vm1947_vm0, %v1946_v2 }
  0x9b   : >> { %1776 = vmatprep.subr.bf16.mxu1 %v1946_v2 }
  0x9c   : >> { %1747 = vmatmul.mubr.msk.bf16.vlgmr.msra.gmra.mrb[8].mxu0 %vm304_vm1, %v1900_v25  ;;  %v1091_v33 = vpop.permute.xlu0 %1090 }
  0x9d   : >> { %1757 = vmatpush3.bf16.msra.mxu0 %v2050_v6  ;;  %1758 = vmatprep.mubr.msk.bf16.mxu0 %vm1947_vm0, %v1946_v2  ;;  %v1093_v35 = vpop.permute.xlu1 %1092 }
  0x9e   : >> { %1768 = vmatprep.subr.bf16.mxu0 %v1946_v2  ;;  %1777 = vmatpush3.bf16.msra.mxu1 %v1891_v9 }
  0x9f   : >> { %1790 = vmatprep.subr.bf16.mxu1 %v1946_v2 }
  0xa0   : >> { %v1151_v42 = vpop.permute.xlu0 %1150 }
  0xa1   : >> { %1779 = vmatmul.mubr.msk.bf16.vlgmr.msra.gmra.mrb[16].mxu1 %vm842_vm2, %v1905_v28  ;;  %v1153_v37 = vpop.permute.xlu1 %1152 }
  0xa2   : >> { %1791 = vmatpush3.bf16.msra.mxu1 %v958_v27  ;;  %1794 = vmatprep.mubr.msk.bf16.mxu1 %vm1947_vm0, %v1946_v2 }
  0xa3   : >> { %1792 = vmatprep.subr.bf16.mxu1 %v1946_v2 }
  0xa4   : >> { %1759 = vmatmul.mubr.msk.bf16.vlgmr.msra.gmra.mrb[12].mxu0 %vm304_vm1, %v1902_v29  ;;  %v1284_v46 = vpop.permute.xlu0 %1283 }
  0xa5   : >> { %1769 = vmatpush3.bf16.msra.mxu0 %v768_v24  ;;  %1770 = vmatprep.mubr.msk.bf16.mxu0 %vm1947_vm0, %v1946_v2  ;;  %v1344_v39 = vpop.permute.xlu1 %1343 }
  0xa6   : >> { %1782 = vmatprep.subr.bf16.mxu0 %v1946_v2  ;;  %1793 = vmatpush3.bf16.msra.mxu1 %v960_v31 }
  0xa7   : >> { %1806 = vmatprep.subr.bf16.mxu1 %v1946_v2 }
  0xa8   : >> { %v1286_v47 = vpop.permute.xlu0 %1285 }
  0xa9   : >> { %1795 = vmatmul.mubr.msk.bf16.vlgmr.msra.gmra.mrb[20].mxu1 %vm842_vm2, %v1907_v32  ;;  %v1346_v43 = vpop.permute.xlu1 %1345 }
  0xaa   : >> { %1807 = vmatpush3.bf16.msra.mxu1 %v1091_v33  ;;  %1810 = vmatprep.mubr.msk.bf16.mxu1 %vm1947_vm0, %v1946_v2 }
  0xab   : >> { %1808 = vmatprep.subr.bf16.mxu1 %v1946_v2 }
  0xac   : >> { %1771 = vmatmul.mubr.msk.bf16.vlgmr.msra.gmra.mrb[16].mxu0 %vm304_vm1, %v1904_v34 }
  0xad   : >> { %1783 = vmatpush3.bf16.msra.mxu0 %v898_v26  ;;  %1786 = vmatprep.mubr.msk.bf16.mxu0 %vm1947_vm0, %v1946_v2 }
  0xae   : >> { %1784 = vmatprep.subr.bf16.mxu0 %v1946_v2  ;;  %1809 = vmatpush3.bf16.msra.mxu1 %v1093_v35 }
  0xaf   : >> { %1822 = vmatprep.subr.bf16.mxu1 %v1946_v2 }
  0xb1   : >> { %1785 = vmatpush3.bf16.msra.mxu0 %v900_v30  ;;  %1811 = vmatmul.mubr.msk.bf16.vlgmr.msra.gmra.mrb[24].mxu1 %vm842_vm2, %v1909_v36 }
  0xb2   : >> { %1798 = vmatprep.subr.bf16.mxu0 %v1946_v2  ;;  %1823 = vmatpush3.bf16.msra.mxu1 %v2080_v12 }
  0xb3   : >> { %1824 = vmatprep.subr.bf16.mxu1 %v1946_v2  ;;  %1826 = vmatprep.mubr.msk.bf16.mxu1 %vm1947_vm0, %v1946_v2 }
  0xb4   : >> { %1787 = vmatmul.mubr.msk.bf16.vlgmr.msra.gmra.mrb[20].mxu0 %vm842_vm2, %v1906_v38 }
  0xb5   : >> { %1799 = vmatpush3.bf16.msra.mxu0 %v2068_v10  ;;  %1802 = vmatprep.mubr.msk.bf16.mxu0 %vm1947_vm0, %v1946_v2 }
  0xb6   : >> { %1800 = vmatprep.subr.bf16.mxu0 %v1946_v2  ;;  %1825 = vmatpush3.bf16.msra.mxu1 %v2086_v13 }
  0xb7   : >> { %1838 = vmatprep.subr.bf16.mxu1 %v1946_v2 }
  0xb9   : >> { %1801 = vmatpush3.bf16.msra.mxu0 %v2071_v11  ;;  %1827 = vmatmul.mubr.msk.bf16.vlgmr.msra.gmra.mrb[28].mxu1 %vm842_vm2, %v1911_v40 }
  0xba   : >> { %1814 = vmatprep.subr.bf16.mxu0 %v1946_v2  ;;  %1839 = vmatpush3.bf16.msra.mxu1 %v1344_v39 }
  0xbb   : >> { %1840 = vmatprep.subr.bf16.mxu1 %v1946_v2  ;;  %1842 = vmatprep.mubr.msk.bf16.mxu1 %vm1947_vm0, %v1946_v2 }
  0xbc   : >> { %1803 = vmatmul.mubr.msk.bf16.vlgmr.msra.gmra.mrb[24].mxu0 %vm842_vm2, %v1908_v41 }
  0xbd   : >> { %1815 = vmatpush3.bf16.msra.mxu0 %v1151_v42  ;;  %1818 = vmatprep.mubr.msk.bf16.mxu0 %vm1947_vm0, %v1946_v2 }
  0xbe   : >> { %1816 = vmatprep.subr.bf16.mxu0 %v1946_v2  ;;  %1841 = vmatpush3.bf16.msra.mxu1 %v1346_v43 }
  0xc1   : >> { %1817 = vmatpush3.bf16.msra.mxu0 %v1153_v37  ;;  %1843 = vmatmul.mubr.msk.bf16.vlgmr.msra.gmra.mrb[32].mxu1 %vm842_vm2, %v1913_v44 }
  0xc2   : >> { %1830 = vmatprep.subr.bf16.mxu0 %v1946_v2 }
  0xc4   : >> { %1819 = vmatmul.mubr.msk.bf16.vlgmr.msra.gmra.mrb[28].mxu0 %vm842_vm2, %v1910_v45 }
  0xc5   : >> { %1831 = vmatpush3.bf16.msra.mxu0 %v1284_v46  ;;  %1834 = vmatprep.mubr.msk.bf16.mxu0 %vm1947_vm0, %v1946_v2 }
  0xc6   : >> { %1832 = vmatprep.subr.bf16.mxu0 %v1946_v2 }
  0xc9   : >> { %1833 = vmatpush3.bf16.msra.mxu0 %v1286_v47 }
  0xcc   : >> { %1835 = vmatmul.mubr.msk.bf16.vlgmr.msra.gmra.mrb[32].mxu0 %vm842_vm2, %v1912_v48 }
  0xec   : >> { %v392_v49 = vpop.f32.mrb[0].mxu1 }
  0xed   : >> { %v1730_v50 = vpop.f32.mrb[1].mxu1 }
  0xee   : >> { %v395_v51 = vpop.f32.mrb[2].mxu1 }
  0xef   : >> { %v1731_v52 = vpop.f32.mrb[3].mxu1 }
  0xf4   : >> { %v513_v53 = vpop.f32.mrb[4].mxu1 }
  0xf5   : >> { %v1742_v54 = vpop.f32.mrb[5].mxu1 }
  0xf6   : >> { %v516_v55 = vpop.f32.mrb[6].mxu1 }
  0xf7   : >> { %v1743_v56 = vpop.f32.mrb[7].mxu1 }
 0x15f   : >> { %v342_v57 = vpop.f32.mrb[0].mxu0 }
 0x160   : >> { %v393_v58 = vadd.f32 %v392_v49, %v342_v57  ;;  %v1724_v59 = vpop.f32.mrb[1].mxu0 }
 0x161   : >> { %v345_v60 = vpop.f32.mrb[2].mxu0 }
 0x162   : >> { %v396_v61 = vadd.f32 %v395_v51, %v345_v60  ;;  %v1725_v62 = vpop.f32.mrb[3].mxu0 }
 0x164   : >> { %v627_v63 = vpop.f32.mrb[8].mxu1 }
 0x165   : >> { %v1754_v2 = vpop.f32.mrb[9].mxu1 }
 0x166   : >> { %v630_v3 = vpop.f32.mrb[10].mxu1 }
 0x167   : >> { %v447_v4 = vpop.f32.mrb[4].mxu0  ;;  %v1755_v5 = vpop.f32.mrb[11].mxu1 }
 0x168   : >> { %v454_v6 = vadd.f32 %v447_v4, %v393_v58  ;;  %v1736_v7 = vpop.f32.mrb[5].mxu0 }
 0x169   : >> { %v450_v8 = vpop.f32.mrb[6].mxu0 }
 0x16a   : >> { %v520_v9 = vadd.f32 %v513_v53, %v454_v6  ;;  %v455_v10 = vadd.f32 %v450_v8, %v396_v61  ;;  %v1737_v11 = vpop.f32.mrb[7].mxu0 }
 0x16c   : >> { %v521_v12 = vadd.f32 %v516_v55, %v455_v10  ;;  %v750_v13 = vpop.f32.mrb[12].mxu1 }
 0x16d   : >> { %v1766_v14 = vpop.f32.mrb[13].mxu1 }
 0x16e   : >> { %v753_v15 = vpop.f32.mrb[14].mxu1 }
 0x16f   : >> { %v570_v16 = vpop.f32.mrb[8].mxu0  ;;  %v1767_v17 = vpop.f32.mrb[15].mxu1 }
 0x170   : >> { %v577_v18 = vadd.f32 %v570_v16, %v520_v9  ;;  %v1748_v19 = vpop.f32.mrb[9].mxu0 }
 0x171   : >> { %v573_v20 = vpop.f32.mrb[10].mxu0 }
 0x172   : >> { %v634_v21 = vadd.f32 %v627_v63, %v577_v18  ;;  %v578_v22 = vadd.f32 %v573_v20, %v521_v12  ;;  %v1749_v23 = vpop.f32.mrb[11].mxu0 }
 0x174   : >> { %v635_v24 = vadd.f32 %v630_v3, %v578_v22  ;;  %v880_v25 = vpop.f32.mrb[16].mxu1 }
 0x175   : >> { %v1780_v26 = vpop.f32.mrb[17].mxu1 }
 0x176   : >> { %v883_v27 = vpop.f32.mrb[18].mxu1 }
 0x177   : >> { %v693_v28 = vpop.f32.mrb[12].mxu0  ;;  %v1781_v29 = vpop.f32.mrb[19].mxu1 }
 0x178   : >> { %v700_v30 = vadd.f32 %v693_v28, %v634_v21  ;;  %v1760_v31 = vpop.f32.mrb[13].mxu0 }
 0x179   : >> { %v696_v32 = vpop.f32.mrb[14].mxu0  ;;  %v1403_v31 = vpop.permute.xlu1 %1402 }
 0x17a   : >> { %v757_v33 = vadd.f32 %v750_v13, %v700_v30  ;;  %v701_v34 = vadd.f32 %v696_v32, %v635_v24  ;;  %v1761_v35 = vpop.f32.mrb[15].mxu0 }
 0x17c   : >> { %v758_v36 = vadd.f32 %v753_v15, %v701_v34  ;;  %v1000_v37 = vpop.f32.mrb[20].mxu1 }
 0x17d   : >> { %v1796_v38 = vpop.f32.mrb[21].mxu1 }
 0x17e   : >> { %v1003_v39 = vpop.f32.mrb[22].mxu1 }
 0x17f   : >> { %v807_v40 = vpop.f32.mrb[16].mxu0  ;;  %v1797_v41 = vpop.f32.mrb[23].mxu1 }
 0x180   : >> { %v814_v42 = vadd.f32 %v807_v40, %v757_v33  ;;  %v1772_v43 = vpop.f32.mrb[17].mxu0 }
 0x181   : >> { %v810_v44 = vpop.f32.mrb[18].mxu0 }
 0x182   : >> { %v887_v45 = vadd.f32 %v880_v25, %v814_v42  ;;  %v815_v46 = vadd.f32 %v810_v44, %v758_v36  ;;  %v1773_v47 = vpop.f32.mrb[19].mxu0 }
 0x184   : >> { %v888_v48 = vadd.f32 %v883_v27, %v815_v46  ;;  %v1133_v49 = vpop.f32.mrb[24].mxu1  ;;  %v1398_v27 = vpop.permute.xlu0 %1397 }
 0x185   : >> { %v1812_v50 = vpop.f32.mrb[25].mxu1 }
 0x186   : >> { %v1136_v51 = vpop.f32.mrb[26].mxu1 }
 0x187   : >> { %v940_v52 = vpop.f32.mrb[20].mxu0  ;;  %v1813_v53 = vpop.f32.mrb[27].mxu1 }
 0x188   : >> { %v947_v54 = vadd.f32 %v940_v52, %v887_v45  ;;  %v1788_v55 = vpop.f32.mrb[21].mxu0 }
 0x189   : >> { %v943_v56 = vpop.f32.mrb[22].mxu0 }
 0x18a   : >> { %v1007_v57 = vadd.f32 %v1000_v37, %v947_v54  ;;  %v948_v58 = vadd.f32 %v943_v56, %v888_v48  ;;  %v1789_v59 = vpop.f32.mrb[23].mxu0 }
 0x18c   : >> { %v1008_v60 = vadd.f32 %v1003_v39, %v948_v58  ;;  %v1266_v61 = vpop.f32.mrb[28].mxu1 }
 0x18d   : >> { %v1828_v62 = vpop.f32.mrb[29].mxu1 }
 0x18e   : >> { %v1269_v63 = vpop.f32.mrb[30].mxu1 }
 0x18f   : >> { %v1073_v2 = vpop.f32.mrb[24].mxu0  ;;  %v1829_v3 = vpop.f32.mrb[31].mxu1 }
 0x190   : >> { %v1080_v4 = vadd.f32 %v1073_v2, %v1007_v57  ;;  %v1804_v5 = vpop.f32.mrb[25].mxu0 }
 0x191   : >> { %v1076_v6 = vpop.f32.mrb[26].mxu0 }
 0x192   : >> { %v1140_v7 = vadd.f32 %v1133_v49, %v1080_v4  ;;  %v1081_v8 = vadd.f32 %v1076_v6, %v1008_v60  ;;  %v1805_v9 = vpop.f32.mrb[27].mxu0 }
 0x194   : >> { %v1141_v10 = vadd.f32 %v1136_v51, %v1081_v8  ;;  %v1386_v11 = vpop.f32.mrb[32].mxu1 }
 0x195   : >> { %v1844_v12 = vpop.f32.mrb[33].mxu1 }
 0x196   : >> { %v1389_v13 = vpop.f32.mrb[34].mxu1 }
 0x197   : >> { %v1193_v14 = vpop.f32.mrb[28].mxu0  ;;  %v1845_v15 = vpop.f32.mrb[35].mxu1 }
 0x198   : >> { %v1200_v16 = vadd.f32 %v1193_v14, %v1140_v7  ;;  %v1820_v17 = vpop.f32.mrb[29].mxu0 }
 0x199   : >> { %v1196_v18 = vpop.f32.mrb[30].mxu0 }
 0x19a   : >> { %v1273_v19 = vadd.f32 %v1266_v61, %v1200_v16  ;;  %v1201_v20 = vadd.f32 %v1196_v18, %v1141_v10  ;;  %v1821_v21 = vpop.f32.mrb[31].mxu0 }
 0x19c   : >> { %v1274_v22 = vadd.f32 %v1269_v63, %v1201_v20 }
 0x19f   : >> { %v1326_v23 = vpop.f32.mrb[32].mxu0 }
 0x1a0   : >> { %v1333_v24 = vadd.f32 %v1326_v23, %v1273_v19  ;;  %v1836_v25 = vpop.f32.mrb[33].mxu0 }
 0x1a1   : >> { %v1329_v26 = vpop.f32.mrb[34].mxu0 }
 0x1a2   : >> { %v1393_v28 = vadd.f32 %v1386_v11, %v1333_v24  ;;  %v1334_v29 = vadd.f32 %v1329_v26, %v1274_v22  ;;  %v1837_v30 = vpop.f32.mrb[35].mxu0 }
 0x1a4   : >> { %v1394_v32 = vadd.f32 %v1389_v13, %v1334_v29  ;;  %v1405_v33 = vadd.f32 %v1398_v27, %v1393_v28 }
 0x1a6   : >> { %v1407_v34 = vmax.f32 %v1405_v33, 0.0  ;;  %v1406_v35 = vadd.f32 %v1403_v31, %v1394_v32  ;;  %278 = sbr.rel (!%p276_p5) target bundleno = 19 (0x13), region = 103 }
 0x1a8   : >> { %v1672_v36 = vpack.c.bf16 %v1407_v34, %v1407_v34  ;;  %v1408_v37 = vmax.f32 %v1406_v35, 0.0 }
 0x1aa   : >> { %1421 = vst.msk [vmem:[%s1419_s25] sm:$0xf] %vm1420_vm3, %v1672_v36  ;;  %v1673_v38 = vpack.c.bf16 %v1408_v37, %v1408_v37 }
 0x1ac   : >> { %1422 = vst.msk [vmem:[%s1419_s25 + $0x4] sm:$0xf] %vm1420_vm3, %v1673_v38 }
 0x1ad PF: > { %s15_s20 = sadd.s32 1, %s1940_s20   ;;  %s2235_s18 = smov %s1936_s19 }
 0x1ae   : > { %p12_p6 = scmp.ge.s32.totalorder %s15_s20, 4   ;;  %s2236_s19 = smov %s2238_s21 }
 0x1b0   :  { %14 = sbr.rel (!%p12_p6) target bundleno = 2 (0x2), region = 114 }

// kernel: _lambda_.9
= control target key start
LH: loop header
LB: loop body
LE: loop exit
PB: predicated region body
PF: predicated region fallthrough
CT: control target
= control target key end

     0   :  { %s1679_s18 = smov 0   ;;  %s1681_s19 = smov 0   ;;  %s1894_s0 = inlined_call_operand.vmem [shape: bf16[2,18,8,18], index: 0, kind: input, shape index: {}]   ;;  %s1895_s1 = inlined_call_operand.vmem [shape: bf16[2,18,16,18], index: 1, kind: input, shape index: {}]   ;;  %s1896_s2 = inlined_call_operand.vmem [shape: bf16[9,8,8], index: 2, kind: input, shape index: {}]   ;;  %s1897_s3 = inlined_call_operand.vmem [shape: bf16[9,8,16], index: 3, kind: input, shape index: {}]   ;;  %s1898_s4 = inlined_call_operand.vmem [shape: f32[8,1], index: 4, kind: input, shape index: {}]   ;;  %s1899_s5 = inlined_call_operand.vmem [shape: bf16[2,16,8,16], index: 5, kind: output, shape index: {}]  }
   0x1   :  { %s1683_s20 = smov 0  }
   0x2 LB: > { %s27_s21 = sadd.s32 1, %s1634_s19  ;;  %p1359_p0 = scmp.ge.s32.totalorder %s1638_s20, 1  ;;  %s1638_s20 = sphi %s1683_s20, %s15_s20   ;;  %s1634_s19 = sphi %s1681_s19, %s1901_s19   ;;  %s1630_s18 = sphi %s1679_s18, %s1900_s18  }
   0x3   : > { %p29_p1 = scmp.ge.s32.totalorder %s27_s21, 2  ;;  %p211_p2 = scmp.lt.s32.totalorder %s1638_s20, 3 }
   0x5   : > { %s1903_s21 = smov (%p29_p1, %s27_s21), 0  ;;  %p212_p3 = pnand %p1359_p0, %p211_p2 }
   0x6   : > { %p248_p4 = scmp.lt.s32.totalorder (!%p212_p3), %s1630_s18, 1  ;;  %v1700_v0 = vld [vmem:[%s1898_s4] sm:$0xff] (!%p212_p3)  ;;  %s1717_s11 = smov (!%p212_p3), 0  }
   0x7   : > { %215 = sbr.rel (%p212_p3) target bundleno = 430 (0x1ae), region = 40 }
   0xe   : > { %s1905_s18 = smov (!%p248_p4, %s1630_s18), 1 }
   0xf   : > { %s1566_s24 = smul.u32 72, %s1905_s18  ;;  %s1420_s25 = sshll.u32 %s1905_s18, 6 }
  0x10   : > { %s1567_s26 = smul.u32 144, %s1905_s18  ;;  %s1705_s29 = scalar_lea.vmem %s1899_s5, %s1420_s25 }
  0x11   : > { %s1710_s7 = scalar_lea.vmem %s1894_s0, %s1566_s24 }
  0x12   : > { %s1715_s10 = scalar_lea.vmem %s1895_s1, %s1567_s26 }
  0x13 LB: >> { %v1644_v1 = vmov 0.0   ;;  %s1364_s12 = sshll.u32 %s1642_s11, 2  ;;  %s1421_s13 = sshll.u32 %s1642_s11, 3  ;;  %vm293_vm0 = vcmask 1043456   ;;  %vm1645_vm1 = vmmov 0   ;;  %vm289_vm2 = vcmask 64512   ;;  %s1642_s11 = sphi %s1717_s11, %s276_s11  }
  0x14   : >> { %1458 = vmatprep.subr.bf16.mxu0 %v1644_v1  ;;  %1464 = vmatprep.subr.bf16.mxu1 %v1644_v1  ;;  %s279_s14 = scalar_lea.vmem %s1710_s7, %s1364_s12  ;;  %s1734_s15 = scalar_lea.vmem %s1715_s10, %s1421_s13  ;;  %v281_v7 = vld [vmem:[%s1896_s2] sm:$0xf]  ;;  %v1373_v11 = vld [vmem:[%s1896_s2 + $0xc] sm:$0xf]  ;;  %v1648_v15 = vmov 0   ;;  %vm762_vm3 = vcmask 130048  }
  0x15   : >> { %1460 = vmatprep.mubr.msk.bf16.mxu0 %vm1645_vm1, %v1644_v1  ;;  %1466 = vmatprep.mubr.msk.bf16.mxu1 %vm1645_vm1, %v1644_v1  ;;  %v280_v2 = vld [vmem:[%s279_s14] sm:$0xf]  ;;  %v1372_v3 = vld [vmem:[%s279_s14 + $0x4] sm:$0xf]  ;;  %s1646_s18 = smov 127   ;;  %s1647_s22 = smov 126  }
  0x16   : >> { %v1366_v4 = vcombine.low %v280_v2, %v280_v2  ;;  %v1376_v5 = vcombine.low %v1372_v3, %v1372_v3  ;;  %v341_v6 = vsel %vm293_vm0, %v280_v2, 0  ;;  %v444_v8 = vsel %vm293_vm0, %v1372_v3, 0  ;;  %v1381_v9 = vld [vmem:[%s279_s14 + $0x8] sm:$0xf]  ;;  %v1609_v12 = vld [vmem:[%s1734_s15] sm:$0xff]   ;;  %v1759_v14 = vld [vmem:[%s1734_s15 + $0x10] sm:$0xff]   ;;  %1605 = vset.pattern.permute.xlu0 %v1648_v15  ;;  %s1224_s23 = scalar_lea.vmem %s1705_s29, %s1364_s12 }
  0x17   : >> { %1465 = vmatpush3.bf16.msra.mxu1 %v341_v6  ;;  %v1385_v10 = vcombine.low %v1381_v9, %v1381_v9  ;;  %v1754_v13 = vld [vmem:[%s1734_s15 + $0x8] sm:$0xff]   ;;  %v1365_v19 = vld [vmem:[%s1896_s2 + $0x4] sm:$0xf]  ;;  %v1378_v24 = vld [vmem:[%s1896_s2 + $0x14] sm:$0xf]  ;;  %v602_v31 = vsel %vm293_vm0, %v1381_v9, 0 }
  0x18   : >> { %287 = vrot.lane.b32.xlu0 %v1366_v4, %s1646_s18  ;;  %492 = vrot.lane.b32.xlu1 %v1376_v5, %s1646_s18  ;;  %v1369_v27 = vld [vmem:[%s1896_s2 + $0x8] sm:$0xf]  ;;  %v1384_v29 = vld [vmem:[%s1896_s2 + $0x1c] sm:$0xf]  ;;  %vm1225_vm4 = vcmask 125952   ;;  %s276_s11 = sadd.s32 1, %s1642_s11  }
  0x19   : >> { %1476 = vmatprep.subr.bf16.mxu1 %v1644_v1  ;;  %v1375_v30 = vld [vmem:[%s1896_s2 + $0x10] sm:$0xf]  ;;  %v755_v33 = vld [vmem:[%s1897_s3] sm:$0xf]  ;;  %v1382_v35 = vld [vmem:[%s1896_s2 + $0x18] sm:$0xf] }
  0x1a   : >> { %1467 = vmatmul.mubr.msk.bf16.vlgmr.msra.gmra.mrb[0].mxu1 %vm289_vm2, %v281_v7  ;;  %v1395_v38 = vld [vmem:[%s1897_s3 + $0x8] sm:$0xf]  ;;  %v1387_v40 = vld [vmem:[%s1896_s2 + $0x20] sm:$0xf]  ;;  %v1403_v41 = vld [vmem:[%s1897_s3 + $0x10] sm:$0xf] }
  0x1b   : >> { %1477 = vmatpush3.bf16.msra.mxu1 %v444_v8  ;;  %1478 = vmatprep.mubr.msk.bf16.mxu1 %vm1645_vm1, %v1644_v1  ;;  %v1393_v42 = vld [vmem:[%s1897_s3 + $0x4] sm:$0xf]  ;;  %v1410_v44 = vld [vmem:[%s1897_s3 + $0x18] sm:$0xf]  ;;  %v1400_v46 = vld [vmem:[%s1897_s3 + $0xc] sm:$0xf] }
  0x1c   : >> { %385 = vrot.lane.b32.xlu0 %v1366_v4, %s1647_s22  ;;  %543 = vrot.lane.b32.xlu1 %v1376_v5, %s1647_s22  ;;  %v1415_v47 = vld [vmem:[%s1897_s3 + $0x20] sm:$0xf]  ;;  %v1405_v48 = vld [vmem:[%s1897_s3 + $0x14] sm:$0xf]  ;;  %p273_p5 = scmp.ge.s32.totalorder %s276_s11, 16  }
  0x1d   : >> { %1488 = vmatprep.subr.bf16.mxu1 %v1644_v1  ;;  %v1413_v50 = vld [vmem:[%s1897_s3 + $0x1c] sm:$0xf] }
  0x20   : >> { %650 = vrot.lane.b32.xlu0 %v1385_v10, %s1646_s18  ;;  %701 = vrot.lane.b32.xlu1 %v1385_v10, %s1647_s22 }
  0x22   : >> { %1479 = vmatmul.mubr.msk.bf16.vlgmr.msra.gmra.mrb[4].mxu1 %vm289_vm2, %v1373_v11 }
  0x23   : >> { %1490 = vmatprep.mubr.msk.bf16.mxu1 %vm1645_vm1, %v1644_v1 }
  0x24   : >> { %809 = vrot.lane.b32.xlu0 %v1609_v12, %s1646_s18  ;;  %858 = vrot.lane.b32.xlu1 %v1609_v12, %s1647_s22 }
  0x28   : >> { %964 = vrot.lane.b32.xlu0 %v1754_v13, %s1646_s18  ;;  %1013 = vrot.lane.b32.xlu1 %v1754_v13, %s1647_s22 }
  0x2c   : >> { %1119 = vrot.lane.b32.xlu0 %v1759_v14, %s1646_s18  ;;  %1168 = vrot.lane.b32.xlu1 %v1759_v14, %s1647_s22 }
  0x30   : >> { %1217 = vperm.xlu0 %1605, %v1700_v0  }
  0x8a   : >> { %v288_v16 = vpop.permute.xlu0 %287  ;;  %v493_v17 = vpop.permute.xlu1 %492 }
  0x8b   : >> { %v295_v18 = vsel %vm293_vm0, %v288_v16, 0  ;;  %v498_v28 = vsel %vm293_vm0, %v493_v17, 0 }
  0x8c   : >> { %1459 = vmatpush3.bf16.msra.mxu0 %v295_v18 }
  0x8d   : >> { %1470 = vmatprep.subr.bf16.mxu0 %v1644_v1 }
  0x8e   : >> { %v386_v20 = vpop.permute.xlu0 %385  ;;  %v544_v21 = vpop.permute.xlu1 %543 }
  0x8f   : >> { %v391_v22 = vsel %vm293_vm0, %v386_v20, 0  ;;  %1461 = vmatmul.mubr.msk.bf16.vlgmr.msra.gmra.mrb[0].mxu0 %vm289_vm2, %v1365_v19  ;;  %v549_v23 = vsel %vm293_vm0, %v544_v21, 0 }
  0x90   : >> { %1471 = vmatpush3.bf16.msra.mxu0 %v391_v22  ;;  %1472 = vmatprep.mubr.msk.bf16.mxu0 %vm1645_vm1, %v1644_v1 }
  0x91   : >> { %1482 = vmatprep.subr.bf16.mxu0 %v1644_v1  ;;  %1489 = vmatpush3.bf16.msra.mxu1 %v549_v23 }
  0x92   : >> { %v651_v25 = vpop.permute.xlu0 %650  ;;  %1500 = vmatprep.subr.bf16.mxu1 %v1644_v1  ;;  %v702_v32 = vpop.permute.xlu1 %701 }
  0x93   : >> { %v656_v26 = vsel %vm293_vm0, %v651_v25, 0  ;;  %v707_v36 = vsel %vm293_vm0, %v702_v32, 0 }
  0x94   : >> { %1491 = vmatmul.mubr.msk.bf16.vlgmr.msra.gmra.mrb[8].mxu1 %vm289_vm2, %v1378_v24 }
  0x95   : >> { %1501 = vmatpush3.bf16.msra.mxu1 %v656_v26  ;;  %1502 = vmatprep.mubr.msk.bf16.mxu1 %vm1645_vm1, %v1644_v1 }
  0x96   : >> { %1512 = vmatprep.subr.bf16.mxu1 %v1644_v1  ;;  %v859_v34 = vpop.permute.xlu1 %858  ;;  %v810_v37 = vpop.permute.xlu0 %809 }
  0x97   : >> { %1473 = vmatmul.mubr.msk.bf16.vlgmr.msra.gmra.mrb[4].mxu0 %vm289_vm2, %v1369_v27 }
  0x98   : >> { %1483 = vmatpush3.bf16.msra.mxu0 %v498_v28  ;;  %1484 = vmatprep.mubr.msk.bf16.mxu0 %vm1645_vm1, %v1644_v1 }
  0x99   : >> { %1494 = vmatprep.subr.bf16.mxu0 %v1644_v1 }
  0x9a   : >> { %v965_v39 = vpop.permute.xlu0 %964  ;;  %v1014_v43 = vpop.permute.xlu1 %1013 }
  0x9c   : >> { %1503 = vmatmul.mubr.msk.bf16.vlgmr.msra.gmra.mrb[12].mxu1 %vm289_vm2, %v1384_v29 }
  0x9d   : >> { %1513 = vmatpush3.bf16.msra.mxu1 %v1609_v12  ;;  %1514 = vmatprep.mubr.msk.bf16.mxu1 %vm1645_vm1, %v1644_v1 }
  0x9e   : >> { %1524 = vmatprep.subr.bf16.mxu1 %v1644_v1  ;;  %v1169_v45 = vpop.permute.xlu1 %1168  ;;  %v1120_v49 = vpop.permute.xlu0 %1119 }
  0x9f   : >> { %1485 = vmatmul.mubr.msk.bf16.vlgmr.msra.gmra.mrb[8].mxu0 %vm289_vm2, %v1375_v30 }
  0xa0   : >> { %1495 = vmatpush3.bf16.msra.mxu0 %v602_v31  ;;  %1496 = vmatprep.mubr.msk.bf16.mxu0 %vm1645_vm1, %v1644_v1 }
  0xa1   : >> { %1506 = vmatprep.subr.bf16.mxu0 %v1644_v1 }
  0xa4   : >> { %1515 = vmatmul.mubr.msk.bf16.vlgmr.msra.gmra.mrb[16].mxu1 %vm762_vm3, %v755_v33 }
  0xa5   : >> { %1525 = vmatpush3.bf16.msra.mxu1 %v859_v34  ;;  %1526 = vmatprep.mubr.msk.bf16.mxu1 %vm1645_vm1, %v1644_v1 }
  0xa6   : >> { %1536 = vmatprep.subr.bf16.mxu1 %v1644_v1 }
  0xa7   : >> { %1497 = vmatmul.mubr.msk.bf16.vlgmr.msra.gmra.mrb[12].mxu0 %vm289_vm2, %v1382_v35 }
  0xa8   : >> { %1507 = vmatpush3.bf16.msra.mxu0 %v707_v36  ;;  %1508 = vmatprep.mubr.msk.bf16.mxu0 %vm1645_vm1, %v1644_v1 }
  0xa9   : >> { %1518 = vmatprep.subr.bf16.mxu0 %v1644_v1 }
  0xac   : >> { %1527 = vmatmul.mubr.msk.bf16.vlgmr.msra.gmra.mrb[20].mxu1 %vm762_vm3, %v1395_v38 }
  0xad   : >> { %1537 = vmatpush3.bf16.msra.mxu1 %v965_v39  ;;  %1538 = vmatprep.mubr.msk.bf16.mxu1 %vm1645_vm1, %v1644_v1 }
  0xae   : >> { %1548 = vmatprep.subr.bf16.mxu1 %v1644_v1 }
  0xaf   : >> { %1509 = vmatmul.mubr.msk.bf16.vlgmr.msra.gmra.mrb[16].mxu0 %vm289_vm2, %v1387_v40 }
  0xb0   : >> { %1519 = vmatpush3.bf16.msra.mxu0 %v810_v37  ;;  %1520 = vmatprep.mubr.msk.bf16.mxu0 %vm1645_vm1, %v1644_v1 }
  0xb1   : >> { %1530 = vmatprep.subr.bf16.mxu0 %v1644_v1 }
  0xb4   : >> { %1539 = vmatmul.mubr.msk.bf16.vlgmr.msra.gmra.mrb[24].mxu1 %vm762_vm3, %v1403_v41 }
  0xb5   : >> { %1549 = vmatpush3.bf16.msra.mxu1 %v1759_v14  ;;  %1550 = vmatprep.mubr.msk.bf16.mxu1 %vm1645_vm1, %v1644_v1 }
  0xb6   : >> { %1560 = vmatprep.subr.bf16.mxu1 %v1644_v1 }
  0xb7   : >> { %1521 = vmatmul.mubr.msk.bf16.vlgmr.msra.gmra.mrb[20].mxu0 %vm762_vm3, %v1393_v42 }
  0xb8   : >> { %1531 = vmatpush3.bf16.msra.mxu0 %v1754_v13  ;;  %1532 = vmatprep.mubr.msk.bf16.mxu0 %vm1645_vm1, %v1644_v1 }
  0xb9   : >> { %1542 = vmatprep.subr.bf16.mxu0 %v1644_v1 }
  0xbc   : >> { %1551 = vmatmul.mubr.msk.bf16.vlgmr.msra.gmra.mrb[28].mxu1 %vm762_vm3, %v1410_v44 }
  0xbd   : >> { %1561 = vmatpush3.bf16.msra.mxu1 %v1169_v45  ;;  %1562 = vmatprep.mubr.msk.bf16.mxu1 %vm1645_vm1, %v1644_v1 }
  0xbf   : >> { %1533 = vmatmul.mubr.msk.bf16.vlgmr.msra.gmra.mrb[24].mxu0 %vm762_vm3, %v1400_v46 }
  0xc0   : >> { %1543 = vmatpush3.bf16.msra.mxu0 %v1014_v43  ;;  %1544 = vmatprep.mubr.msk.bf16.mxu0 %vm1645_vm1, %v1644_v1 }
  0xc1   : >> { %1554 = vmatprep.subr.bf16.mxu0 %v1644_v1 }
  0xc4   : >> { %1563 = vmatmul.mubr.msk.bf16.vlgmr.msra.gmra.mrb[32].mxu1 %vm762_vm3, %v1415_v47 }
  0xc7   : >> { %1545 = vmatmul.mubr.msk.bf16.vlgmr.msra.gmra.mrb[28].mxu0 %vm762_vm3, %v1405_v48 }
  0xc8   : >> { %1555 = vmatpush3.bf16.msra.mxu0 %v1120_v49  ;;  %1556 = vmatprep.mubr.msk.bf16.mxu0 %vm1645_vm1, %v1644_v1 }
  0xcf   : >> { %1557 = vmatmul.mubr.msk.bf16.vlgmr.msra.gmra.mrb[32].mxu0 %vm762_vm3, %v1413_v50 }
  0xed   : >> { %v377_v51 = vpop.f32.mrb[0].mxu1 }
  0xee   : >> { %v1468_v52 = vpop.f32.mrb[1].mxu1 }
  0xef   : >> { %v380_v53 = vpop.f32.mrb[2].mxu1 }
  0xf0   : >> { %v1469_v54 = vpop.f32.mrb[3].mxu1 }
  0xf5   : >> { %v480_v55 = vpop.f32.mrb[4].mxu1 }
  0xf6   : >> { %v1480_v56 = vpop.f32.mrb[5].mxu1 }
  0xf7   : >> { %v483_v57 = vpop.f32.mrb[6].mxu1 }
  0xf8   : >> { %v1481_v58 = vpop.f32.mrb[7].mxu1 }
 0x162   : >> { %v331_v59 = vpop.f32.mrb[0].mxu0 }
 0x163   : >> { %v378_v60 = vadd.f32 %v377_v51, %v331_v59  ;;  %v1462_v61 = vpop.f32.mrb[1].mxu0 }
 0x164   : >> { %v334_v62 = vpop.f32.mrb[2].mxu0 }
 0x165   : >> { %v1463_v63 = vpop.f32.mrb[3].mxu0 }
 0x167   : >> { %v585_v1 = vpop.f32.mrb[8].mxu1 }
 0x168   : >> { %v1492_v2 = vpop.f32.mrb[9].mxu1 }
 0x169   : >> { %v588_v3 = vpop.f32.mrb[10].mxu1 }
 0x16a   : >> { %v427_v4 = vpop.f32.mrb[4].mxu0  ;;  %v1493_v5 = vpop.f32.mrb[11].mxu1 }
 0x16b   : >> { %v433_v6 = vadd.f32 %v427_v4, %v378_v60  ;;  %v1474_v7 = vpop.f32.mrb[5].mxu0 }
 0x16c   : >> { %v430_v8 = vpop.f32.mrb[6].mxu0 }
 0x16d   : >> { %v486_v9 = vadd.f32 %v480_v55, %v433_v6  ;;  %v1475_v10 = vpop.f32.mrb[7].mxu0 }
 0x16f   : >> { %v692_v11 = vpop.f32.mrb[12].mxu1 }
 0x170   : >> { %v1504_v12 = vpop.f32.mrb[13].mxu1 }
 0x171   : >> { %v695_v13 = vpop.f32.mrb[14].mxu1  ;;  %v1218_v12 = vpop.permute.xlu0 %1217 }
 0x172   : >> { %v534_v14 = vpop.f32.mrb[8].mxu0  ;;  %v1505_v15 = vpop.f32.mrb[15].mxu1 }
 0x173   : >> { %v540_v16 = vadd.f32 %v534_v14, %v486_v9  ;;  %v1486_v17 = vpop.f32.mrb[9].mxu0 }
 0x174   : >> { %v537_v18 = vpop.f32.mrb[10].mxu0 }
 0x175   : >> { %v591_v19 = vadd.f32 %v585_v1, %v540_v16  ;;  %v1487_v20 = vpop.f32.mrb[11].mxu0 }
 0x177   : >> { %v800_v21 = vpop.f32.mrb[16].mxu1 }
 0x178   : >> { %v1516_v22 = vpop.f32.mrb[17].mxu1 }
 0x179   : >> { %v803_v23 = vpop.f32.mrb[18].mxu1 }
 0x17a   : >> { %v638_v24 = vpop.f32.mrb[12].mxu0  ;;  %v1517_v25 = vpop.f32.mrb[19].mxu1 }
 0x17b   : >> { %v644_v26 = vadd.f32 %v638_v24, %v591_v19  ;;  %v1498_v27 = vpop.f32.mrb[13].mxu0 }
 0x17c   : >> { %v641_v28 = vpop.f32.mrb[14].mxu0 }
 0x17d   : >> { %v698_v29 = vadd.f32 %v692_v11, %v644_v26  ;;  %v1499_v30 = vpop.f32.mrb[15].mxu0 }
 0x17f   : >> { %v898_v31 = vpop.f32.mrb[20].mxu1 }
 0x180   : >> { %v1528_v32 = vpop.f32.mrb[21].mxu1 }
 0x181   : >> { %v901_v33 = vpop.f32.mrb[22].mxu1 }
 0x182   : >> { %v743_v34 = vpop.f32.mrb[16].mxu0  ;;  %v1529_v35 = vpop.f32.mrb[23].mxu1 }
 0x183   : >> { %v749_v36 = vadd.f32 %v743_v34, %v698_v29  ;;  %v1510_v37 = vpop.f32.mrb[17].mxu0 }
 0x184   : >> { %v746_v38 = vpop.f32.mrb[18].mxu0 }
 0x185   : >> { %v806_v39 = vadd.f32 %v800_v21, %v749_v36  ;;  %v1511_v40 = vpop.f32.mrb[19].mxu0 }
 0x187   : >> { %v1004_v41 = vpop.f32.mrb[24].mxu1 }
 0x188   : >> { %v1540_v42 = vpop.f32.mrb[25].mxu1 }
 0x189   : >> { %v1007_v43 = vpop.f32.mrb[26].mxu1 }
 0x18a   : >> { %v849_v44 = vpop.f32.mrb[20].mxu0  ;;  %v1541_v45 = vpop.f32.mrb[27].mxu1 }
 0x18b   : >> { %v855_v46 = vadd.f32 %v849_v44, %v806_v39  ;;  %v1522_v47 = vpop.f32.mrb[21].mxu0 }
 0x18c   : >> { %v852_v48 = vpop.f32.mrb[22].mxu0 }
 0x18d   : >> { %v904_v49 = vadd.f32 %v898_v31, %v855_v46  ;;  %v1523_v50 = vpop.f32.mrb[23].mxu0 }
 0x18f   : >> { %v1110_v51 = vpop.f32.mrb[28].mxu1 }
 0x190   : >> { %v1552_v52 = vpop.f32.mrb[29].mxu1 }
 0x191   : >> { %v1113_v53 = vpop.f32.mrb[30].mxu1 }
 0x192   : >> { %v955_v54 = vpop.f32.mrb[24].mxu0  ;;  %v1553_v55 = vpop.f32.mrb[31].mxu1 }
 0x193   : >> { %v961_v56 = vadd.f32 %v955_v54, %v904_v49  ;;  %v1534_v57 = vpop.f32.mrb[25].mxu0 }
 0x194   : >> { %v958_v58 = vpop.f32.mrb[26].mxu0 }
 0x195   : >> { %v1010_v59 = vadd.f32 %v1004_v41, %v961_v56  ;;  %v1535_v60 = vpop.f32.mrb[27].mxu0 }
 0x197   : >> { %v1208_v61 = vpop.f32.mrb[32].mxu1 }
 0x198   : >> { %v1564_v62 = vpop.f32.mrb[33].mxu1 }
 0x199   : >> { %v1211_v63 = vpop.f32.mrb[34].mxu1 }
 0x19a   : >> { %v1053_v1 = vpop.f32.mrb[28].mxu0  ;;  %v1565_v2 = vpop.f32.mrb[35].mxu1 }
 0x19b   : >> { %v1059_v3 = vadd.f32 %v1053_v1, %v1010_v59  ;;  %v1546_v4 = vpop.f32.mrb[29].mxu0 }
 0x19c   : >> { %v1056_v5 = vpop.f32.mrb[30].mxu0 }
 0x19d   : >> { %v1116_v6 = vadd.f32 %v1110_v51, %v1059_v3  ;;  %v1547_v7 = vpop.f32.mrb[31].mxu0 }
 0x1a2   : >> { %v1159_v8 = vpop.f32.mrb[32].mxu0 }
 0x1a3   : >> { %v1165_v9 = vadd.f32 %v1159_v8, %v1116_v6  ;;  %v1558_v10 = vpop.f32.mrb[33].mxu0 }
 0x1a4   : >> { %v1162_v11 = vpop.f32.mrb[34].mxu0 }
 0x1a5   : >> { %v1214_v13 = vadd.f32 %v1208_v61, %v1165_v9  ;;  %v1559_v14 = vpop.f32.mrb[35].mxu0 }
 0x1a7   : >> { %v1220_v15 = vadd.f32 %v1218_v12, %v1214_v13  ;;  %275 = sbr.rel (!%p273_p5) target bundleno = 19 (0x13), region = 103 }
 0x1a9   : >> { %v1221_v16 = vmax.f32 %v1220_v15, 0.0 }
 0x1ab   : >> { %v1222_v17 = vpack.c.bf16 %v1221_v16, %v1221_v16 }
 0x1ad   : >> { %1226 = vst.msk [vmem:[%s1224_s23] sm:$0xf] %vm1225_vm4, %v1222_v17 }
 0x1ae PF: > { %s15_s20 = sadd.s32 1, %s1638_s20   ;;  %s1900_s18 = smov %s1634_s19 }
 0x1af   : > { %p12_p6 = scmp.ge.s32.totalorder %s15_s20, 4   ;;  %s1901_s19 = smov %s1903_s21 }
 0x1b1   :  { %14 = sbr.rel (!%p12_p6) target bundleno = 2 (0x2), region = 114 }

// kernel: _lambda_.11
= control target key start
LH: loop header
LB: loop body
LE: loop exit
PB: predicated region body
PF: predicated region fallthrough
CT: control target
= control target key end

     0   :  { %s3040_s0 = inlined_call_operand.vmem [shape: bf16[2,18,8,18], index: 0, kind: input, shape index: {}]   ;;  %s3041_s1 = inlined_call_operand.vmem [shape: bf16[2,18,8,18], index: 1, kind: input, shape index: {}]   ;;  %s3042_s2 = inlined_call_operand.vmem [shape: bf16[2,18,16,18], index: 2, kind: input, shape index: {}]   ;;  %s3043_s3 = inlined_call_operand.vmem [shape: bf16[9,8,8], index: 3, kind: input, shape index: {}]   ;;  %s3044_s4 = inlined_call_operand.vmem [shape: bf16[9,8,8], index: 4, kind: input, shape index: {}]   ;;  %s3045_s5 = inlined_call_operand.vmem [shape: bf16[9,8,16], index: 5, kind: input, shape index: {}]   ;;  %s3046_s6 = inlined_call_operand.vmem [shape: f32[8,1], index: 6, kind: input, shape index: {}]   ;;  %s3047_s7 = inlined_call_operand.vmem [shape: f32[1,8], index: 7, kind: input, shape index: {}]   ;;  %s3048_s8 = inlined_call_operand.<no memory space> [shape: f32[1,1], index: 8, kind: input, shape index: {}]   ;;  %s3049_s9 = inlined_call_operand.hbm [shape: f32[2,16,1,16], index: 9, kind: output, shape index: {}]  }
   0x1   :  { %3053 = sst [smem:[#allocation8_spill]] %s3046_s6  ;;  %v14_v0 = vstv %s3048_s8 }
   0x2   :  { %15 = vst [vmem:[#allocation2] sm:$0x1] %v14_v0 }
   0x3   :  { %16 = vsyncpa [#allocation4], 0 }
   0x4   :  { %18 = vsyncpa [#allocation4 + $0x1], 0  ;;  %s2610_s11 = smov 0   ;;  %s2612_s12 = smov 0  }
   0x5   :  { %s2614_s13 = smov 0   ;;  %s2616_s14 = smov 0  }
   0x6   :  { %s2618_s15 = smov 0   ;;  %s2620_s16 = smov 0  }
   0x7 LB: > { %3054 = sst [smem:[#allocation6_spill]] %s2539_s15  ;;  %s2060_s8 = sadd.s32 4294967295, %s2543_s16   ;;  %s2543_s16 = sphi %s2620_s16, %s24_s16   ;;  %s2539_s15 = sphi %s2618_s15, %s3061_s15   ;;  %s2535_s14 = sphi %s2616_s14, %s3060_s14   ;;  %s2531_s13 = sphi %s2614_s13, %s3064_s13   ;;  %s2527_s12 = sphi %s2612_s12, %s3063_s12   ;;  %s2523_s11 = sphi %s2610_s11, %s3062_s11  }
   0x8   : > { %s2061_s17 = sadd.s32 4294967294, %s2543_s16   ;;  %s36_s18 = sadd.s32 1, %s2539_s15 }
   0x9   : > { %s249_s19 = sadd.s32 1, %s2531_s13  ;;  %p38_p0 = scmp.ge.s32.totalorder %s36_s18, 2 }
   0xa   : > { %p259_p1 = scmp.ne.s32.totalorder %s2531_s13, %s2527_s12  ;;  %p260_p2 = scmp.eq.s32.totalorder %s2060_s8, 1 }
   0xb   : > { %p265_p3 = scmp.ne.s32.totalorder %s2527_s12, %s2523_s11  ;;  %s3066_s18 = smov (%p38_p0, %s36_s18), 0 }
   0xc   : > { %3055 = sst [smem:[#allocation7_spill]] %s3066_s18  ;;  %p2650_p4 = por %p260_p2, %p259_p1 }
   0xd   : > { %p266_p5 = scmp.eq.s32.totalorder %s2061_s17, 1  ;;  %s244_s21 = ssub.s32 %s2539_s15, %s3066_s18 }
   0xe   : > { %p2064_p6 = scmp.ge.s32.totalorder %s2543_s16, 1  ;;  %p247_p7 = scmp.eq.s32.totalorder %s244_s21, 0 }
   0xf   : > { %p2657_p8 = por %p266_p5, %p265_p3  ;;  %p326_p9 = scmp.lt.s32.totalorder %s2543_s16, 3 }
  0x10   : > { %s2663_s23 = scalar_select %p247_p7, %s2531_s13, %s249_s19  }
  0x11   : > { %p327_p10 = pnand %p2064_p6, %p326_p9 }
  0x12   : > { %s3051_s24 = sand.u32 (!%p327_p10), 1, %s2527_s12   ;;  %p372_p11 = scmp.lt.s32.totalorder (!%p327_p10), %s2535_s14, 1 }
  0x13   : > { %330 = sbr.rel (%p327_p10) target bundleno = 708 (0x2c4), region = 56  ;;  %s3058_s6 = sld [smem:[#allocation8_spill]] (!%p327_p10) }
  0x14   : > { %s2674_s27 = sshll.u32 (!%p327_p10), %s3051_s24, 4  ;;  %s2693_s15 = smov (!%p327_p10), 0  }
  0x15   : > { %s371_s24 = scalar_lea.vmem (!%p327_p10), [#allocation3], %s2674_s27 }
  0x19   : > { %v2670_v1 = vld [vmem:[%s3058_s6] sm:$0xff] (!%p327_p10) }
  0x1a   : > { %s373_s28 = scalar_select %p372_p11, %s2535_s14, 1 }
  0x1c   : > { %s2378_s29 = smul.u32 72, %s373_s28 }
  0x1d   : > { %s2379_s30 = smul.u32 144, %s373_s28 }
  0x1e   : > { %s2680_s17 = scalar_lea.vmem %s3040_s0, %s2378_s29  ;;  %s2685_s18 = scalar_lea.vmem %s3041_s1, %s2378_s29 }
  0x1f   : > { %s2690_s6 = scalar_lea.vmem %s3042_s2, %s2379_s30 }
  0x20 LB: >> { %v2549_v2 = vmov 0.0   ;;  %s2069_s28 = sshll.u32 %s2547_s15, 2  ;;  %s2153_s29 = sshll.u32 %s2547_s15, 3  ;;  %vm2550_vm0 = vmmov 0   ;;  %vm413_vm1 = vcmask 1043456   ;;  %vm409_vm2 = vcmask 64512   ;;  %s2547_s15 = sphi %s2693_s15, %s396_s15  }
  0x21   : >> { %2211 = vmatprep.subr.bf16.mxu0 %v2549_v2  ;;  %2217 = vmatprep.subr.bf16.mxu1 %v2549_v2  ;;  %s399_s30 = scalar_lea.vmem %s2680_s17, %s2069_s28  ;;  %s2708_s10 = scalar_lea.vmem %s2690_s6, %s2153_s29  ;;  %v401_v9 = vld [vmem:[%s3043_s3] sm:$0xf]  ;;  %v2078_v15 = vld [vmem:[%s3043_s3 + $0xc] sm:$0xf]  ;;  %v2553_v22 = vmov 0   ;;  %vm1352_vm3 = vcmask 130048  }
  0x22   : >> { %2213 = vmatprep.mubr.msk.bf16.mxu0 %vm2550_vm0, %v2549_v2  ;;  %2219 = vmatprep.mubr.msk.bf16.mxu1 %vm2550_vm0, %v2549_v2  ;;  %v400_v3 = vld [vmem:[%s399_s30] sm:$0xf]  ;;  %v2077_v4 = vld [vmem:[%s399_s30 + $0x4] sm:$0xf]  ;;  %s2551_s8 = smov 127   ;;  %s871_s19 = scalar_lea.vmem %s2685_s18, %s2069_s28  ;;  %v2763_v20 = vld [vmem:[%s2708_s10 + $0x8] sm:$0xff]  }
  0x23   : >> { %v2071_v5 = vcombine.low %v400_v3, %v400_v3  ;;  %v2081_v6 = vcombine.low %v2077_v4, %v2077_v4  ;;  %v461_v7 = vsel %vm413_vm1, %v400_v3, 0  ;;  %v2713_v8 = vld [vmem:[%s399_s30 + $0x8] sm:$0xf]  ;;  %v564_v10 = vsel %vm413_vm1, %v2077_v4, 0  ;;  %s2552_s26 = smov 126   ;;  %v2756_v19 = vld [vmem:[%s2708_s10] sm:$0xff]   ;;  %2450 = vset.pattern.permute.xlu0 %v2553_v22  ;;  %2451 = vset.pattern.permute.xlu1 %v2553_v22  ;;  %s1896_s28 = scalar_lea.vmem %s371_s24, %s2547_s15 [#allocation3] }
  0x24   : >> { %2218 = vmatpush3.bf16.msra.mxu1 %v461_v7  ;;  %v2090_v11 = vcombine.low %v2713_v8, %v2713_v8  ;;  %v2725_v12 = vld [vmem:[%s871_s19] sm:$0xf]  ;;  %v2735_v14 = vld [vmem:[%s871_s19 + $0x4] sm:$0xf]  ;;  %v2744_v17 = vld [vmem:[%s871_s19 + $0x8] sm:$0xf] }
  0x25   : >> { %407 = vrot.lane.b32.xlu0 %v2071_v5, %s2551_s8  ;;  %612 = vrot.lane.b32.xlu1 %v2081_v6, %s2551_s8  ;;  %v2097_v13 = vcombine.low %v2725_v12, %v2725_v12  ;;  %v2106_v16 = vcombine.low %v2735_v14, %v2735_v14  ;;  %v2115_v18 = vcombine.low %v2744_v17, %v2744_v17  ;;  %v2770_v21 = vld [vmem:[%s2708_s10 + $0x10] sm:$0xff]   ;;  %v2070_v26 = vld [vmem:[%s3043_s3 + $0x4] sm:$0xf]  ;;  %v878_v37 = vsel %vm413_vm1, %v2725_v12, 0  ;;  %s396_s15 = sadd.s32 1, %s2547_s15  }
  0x26   : >> { %2229 = vmatprep.subr.bf16.mxu1 %v2549_v2  ;;  %v2083_v31 = vld [vmem:[%s3043_s3 + $0x14] sm:$0xf]  ;;  %v2074_v34 = vld [vmem:[%s3043_s3 + $0x8] sm:$0xf]  ;;  %v2089_v36 = vld [vmem:[%s3043_s3 + $0x1c] sm:$0xf] }
  0x27   : >> { %2220 = vmatmul.mubr.msk.bf16.vlgmr.msra.gmra.mrb[0].mxu1 %vm409_vm2, %v401_v9  ;;  %v2080_v39 = vld [vmem:[%s3043_s3 + $0x10] sm:$0xf]  ;;  %v722_v40 = vsel %vm413_vm1, %v2713_v8, 0  ;;  %v873_v42 = vld [vmem:[%s3044_s4] sm:$0xf]  ;;  %v1192_v53 = vsel %vm413_vm1, %v2744_v17, 0 }
  0x28   : >> { %2230 = vmatpush3.bf16.msra.mxu1 %v564_v10  ;;  %2231 = vmatprep.mubr.msk.bf16.mxu1 %vm2550_vm0, %v2549_v2  ;;  %v2087_v45 = vld [vmem:[%s3043_s3 + $0x18] sm:$0xf]  ;;  %v2099_v48 = vld [vmem:[%s3044_s4 + $0x8] sm:$0xf]  ;;  %v2092_v50 = vld [vmem:[%s3043_s3 + $0x20] sm:$0xf] }
  0x29   : >> { %505 = vrot.lane.b32.xlu0 %v2071_v5, %s2552_s26  ;;  %663 = vrot.lane.b32.xlu1 %v2081_v6, %s2552_s26  ;;  %v2105_v52 = vld [vmem:[%s3044_s4 + $0x10] sm:$0xf]  ;;  %v2096_v55 = vld [vmem:[%s3044_s4 + $0x4] sm:$0xf]  ;;  %v1035_v56 = vsel %vm413_vm1, %v2735_v14, 0  ;;  %vm1897_vm4 = vcmask 122880  }
  0x2a   : >> { %2241 = vmatprep.subr.bf16.mxu1 %v2549_v2  ;;  %v2112_v58 = vld [vmem:[%s3044_s4 + $0x18] sm:$0xf]  ;;  %v2103_v60 = vld [vmem:[%s3044_s4 + $0xc] sm:$0xf]  ;;  %v2117_v63 = vld [vmem:[%s3044_s4 + $0x20] sm:$0xf] }
  0x2b   : >> { %v2108_v3 = vld [vmem:[%s3044_s4 + $0x14] sm:$0xf]  ;;  %v2123_v5 = vld [vmem:[%s3045_s5 + $0x4] sm:$0xf]  ;;  %v2114_v6 = vld [vmem:[%s3044_s4 + $0x1c] sm:$0xf] }
  0x2c   : >> { %v2130_v8 = vld [vmem:[%s3045_s5 + $0xc] sm:$0xf]  ;;  %v1345_v10 = vld [vmem:[%s3045_s5] sm:$0xf]  ;;  %v2135_v12 = vld [vmem:[%s3045_s5 + $0x14] sm:$0xf] }
  0x2d   : >> { %770 = vrot.lane.b32.xlu0 %v2090_v11, %s2551_s8  ;;  %821 = vrot.lane.b32.xlu1 %v2090_v11, %s2552_s26  ;;  %v2125_v14 = vld [vmem:[%s3045_s5 + $0x8] sm:$0xf]  ;;  %v2140_v17 = vld [vmem:[%s3045_s5 + $0x18] sm:$0xf]  ;;  %p393_p12 = scmp.ge.s32.totalorder %s396_s15, 16  }
  0x2e   : > { %s2154_s29 = sshll.u32 (%p393_p12), %s2535_s14, 8  ;;  %s3059_s21 = sand.u32 (%p393_p12), 1, %s2527_s12  }
  0x2f   : >> { %2232 = vmatmul.mubr.msk.bf16.vlgmr.msra.gmra.mrb[4].mxu1 %vm409_vm2, %v2078_v15  ;;  %v2143_v15 = vld [vmem:[%s3045_s5 + $0x1c] sm:$0xf]  ;;  %s2986_s10 = scalar_lea.hbm (%p393_p12), %s3049_s9, %s2154_s29  ;;  %s2994_s15 = scalar_lea.sflag (%p393_p12), [#allocation4], %s3059_s21 }
  0x30   : >> { %2243 = vmatprep.mubr.msk.bf16.mxu1 %vm2550_vm0, %v2549_v2  ;;  %s2554_s14 = smov (%p393_p12), [#allocation3]  }
  0x31   : >> { %926 = vrot.lane.b32.xlu0 %v2097_v13, %s2551_s8  ;;  %977 = vrot.lane.b32.xlu1 %v2097_v13, %s2552_s26  ;;  %s2465_s18 = sshll.u32 (%p393_p12), %s2554_s14, 4  ;;  %s2466_s18 = int_to_ptr.vmem [resolvable:$false] %s2465_s18 }
  0x32   : > { %s2467_s17 = scalar_lea.vmem (%p393_p12), %s2466_s18, 512 }
  0x35   : >> { %1083 = vrot.lane.b32.xlu0 %v2106_v16, %s2551_s8  ;;  %1134 = vrot.lane.b32.xlu1 %v2106_v16, %s2552_s26  ;;  %v2133_v16 = vld [vmem:[%s3045_s5 + $0x10] sm:$0xf] }
  0x39   : >> { %1240 = vrot.lane.b32.xlu0 %v2115_v18, %s2551_s8  ;;  %1291 = vrot.lane.b32.xlu1 %v2115_v18, %s2552_s26 }
  0x3d   : >> { %1399 = vrot.lane.b32.xlu0 %v2756_v19, %s2551_s8  ;;  %1448 = vrot.lane.b32.xlu1 %v2756_v19, %s2552_s26 }
  0x41   : >> { %1554 = vrot.lane.b32.xlu0 %v2763_v20, %s2551_s8  ;;  %1603 = vrot.lane.b32.xlu1 %v2763_v20, %s2552_s26 }
  0x45   : >> { %1709 = vrot.lane.b32.xlu0 %v2770_v21, %s2551_s8  ;;  %1758 = vrot.lane.b32.xlu1 %v2770_v21, %s2552_s26  ;;  %s1915_s8 = sshll.u32 (%p393_p12), %s371_s24, 4  ;;  %s2990_s8 = int_to_ptr.vmem [resolvable:$true] %s1915_s8 }
  0x46   : > { %s2461_s6 = scalar_lea.vmem (%p393_p12), %s2990_s8, 256  ;;  %p2468_p2 = scmp.lt.s32.totalorder (%p393_p12), %s2990_s8, %s2466_s18 }
  0x47   : > { %p2462_p13 = scmp.ne.s32.totalorder (%p393_p12), %s2990_s8, %s2461_s6  ;;  %p2469_p3 = scmp.lt.s32.totalorder (%p393_p12), %s2467_s17, %s2461_s6 }
  0x49   : >> { %1807 = vperm.xlu0 %2450, %v2670_v1   ;;  %p2463_p0 = pnand (%p393_p12), %p2462_p13, %p2650_p4  ;;  %p2470_p5 = por (%p393_p12), %p2469_p3, %p2468_p2 }
  0x4b   : > { %p2464_p1 = pneg (%p393_p12), %p2463_p0 }
  0x4d   : > { %p2471_p6 = pnand (%p393_p12), %p2470_p5, %p2464_p1 }
  0x97   : >> { %v408_v23 = vpop.permute.xlu0 %407  ;;  %v613_v24 = vpop.permute.xlu1 %612 }
  0x98   : >> { %v415_v25 = vsel %vm413_vm1, %v408_v23, 0  ;;  %v618_v35 = vsel %vm413_vm1, %v613_v24, 0  ;;  %v2145_v23 = vld [vmem:[%s3045_s5 + $0x20] sm:$0xf] }
  0x99   : >> { %2212 = vmatpush3.bf16.msra.mxu0 %v415_v25 }
  0x9a   : >> { %2223 = vmatprep.subr.bf16.mxu0 %v2549_v2 }
  0x9b   : >> { %v506_v27 = vpop.permute.xlu0 %505  ;;  %v664_v28 = vpop.permute.xlu1 %663 }
  0x9c   : >> { %2214 = vmatmul.mubr.msk.bf16.vlgmr.msra.gmra.mrb[0].mxu0 %vm409_vm2, %v2070_v26  ;;  %v511_v29 = vsel %vm413_vm1, %v506_v27, 0  ;;  %v669_v30 = vsel %vm413_vm1, %v664_v28, 0  ;;  %v1813_v28 = vld [vmem:[#allocation2] sm:$0x1] }
  0x9d   : >> { %2224 = vmatpush3.bf16.msra.mxu0 %v511_v29  ;;  %2225 = vmatprep.mubr.msk.bf16.mxu0 %vm2550_vm0, %v2549_v2 }
  0x9e   : >> { %2235 = vmatprep.subr.bf16.mxu0 %v2549_v2  ;;  %2242 = vmatpush3.bf16.msra.mxu1 %v669_v30 }
  0x9f   : >> { %v771_v32 = vpop.permute.xlu0 %770  ;;  %2253 = vmatprep.subr.bf16.mxu1 %v2549_v2  ;;  %v822_v38 = vpop.permute.xlu1 %821  ;;  %1816 = vperm.xlu1 %2451, %v1813_v28  }
  0xa0   : >> { %v776_v33 = vsel %vm413_vm1, %v771_v32, 0  ;;  %v827_v46 = vsel %vm413_vm1, %v822_v38, 0 }
  0xa1   : >> { %2244 = vmatmul.mubr.msk.bf16.vlgmr.msra.gmra.mrb[8].mxu1 %vm409_vm2, %v2083_v31 }
  0xa2   : >> { %2254 = vmatpush3.bf16.msra.mxu1 %v776_v33  ;;  %2255 = vmatprep.mubr.msk.bf16.mxu1 %vm2550_vm0, %v2549_v2 }
  0xa3   : >> { %2265 = vmatprep.subr.bf16.mxu1 %v2549_v2  ;;  %v978_v41 = vpop.permute.xlu1 %977  ;;  %v927_v44 = vpop.permute.xlu0 %926 }
  0xa4   : >> { %2226 = vmatmul.mubr.msk.bf16.vlgmr.msra.gmra.mrb[4].mxu0 %vm409_vm2, %v2074_v34  ;;  %v983_v43 = vsel %vm413_vm1, %v978_v41, 0  ;;  %v932_v51 = vsel %vm413_vm1, %v927_v44, 0 }
  0xa5   : >> { %2236 = vmatpush3.bf16.msra.mxu0 %v618_v35  ;;  %2237 = vmatprep.mubr.msk.bf16.mxu0 %vm2550_vm0, %v2549_v2 }
  0xa6   : >> { %2247 = vmatprep.subr.bf16.mxu0 %v2549_v2 }
  0xa7   : >> { %v1084_v47 = vpop.permute.xlu0 %1083  ;;  %v1135_v54 = vpop.permute.xlu1 %1134 }
  0xa8   : >> { %v1089_v49 = vsel %vm413_vm1, %v1084_v47, 0  ;;  %v1140_v61 = vsel %vm413_vm1, %v1135_v54, 0 }
  0xa9   : >> { %2256 = vmatmul.mubr.msk.bf16.vlgmr.msra.gmra.mrb[12].mxu1 %vm409_vm2, %v2089_v36 }
  0xaa   : >> { %2266 = vmatpush3.bf16.msra.mxu1 %v878_v37  ;;  %2267 = vmatprep.mubr.msk.bf16.mxu1 %vm2550_vm0, %v2549_v2 }
  0xab   : >> { %2277 = vmatprep.subr.bf16.mxu1 %v2549_v2  ;;  %v1292_v57 = vpop.permute.xlu1 %1291  ;;  %v1241_v62 = vpop.permute.xlu0 %1240 }
  0xac   : >> { %2238 = vmatmul.mubr.msk.bf16.vlgmr.msra.gmra.mrb[8].mxu0 %vm409_vm2, %v2080_v39  ;;  %v1297_v59 = vsel %vm413_vm1, %v1292_v57, 0  ;;  %v1246_v4 = vsel %vm413_vm1, %v1241_v62, 0 }
  0xad   : >> { %2248 = vmatpush3.bf16.msra.mxu0 %v722_v40  ;;  %2249 = vmatprep.mubr.msk.bf16.mxu0 %vm2550_vm0, %v2549_v2 }
  0xae   : >> { %2259 = vmatprep.subr.bf16.mxu0 %v2549_v2 }
  0xaf   : >> { %v1400_v0 = vpop.permute.xlu0 %1399  ;;  %v1449_v7 = vpop.permute.xlu1 %1448 }
  0xb1   : >> { %2268 = vmatmul.mubr.msk.bf16.vlgmr.msra.gmra.mrb[16].mxu1 %vm409_vm2, %v873_v42 }
  0xb2   : >> { %2278 = vmatpush3.bf16.msra.mxu1 %v983_v43  ;;  %2279 = vmatprep.mubr.msk.bf16.mxu1 %vm2550_vm0, %v2549_v2 }
  0xb3   : >> { %2289 = vmatprep.subr.bf16.mxu1 %v2549_v2  ;;  %v1604_v9 = vpop.permute.xlu1 %1603  ;;  %v1555_v11 = vpop.permute.xlu0 %1554 }
  0xb4   : >> { %2250 = vmatmul.mubr.msk.bf16.vlgmr.msra.gmra.mrb[12].mxu0 %vm409_vm2, %v2087_v45 }
  0xb5   : >> { %2260 = vmatpush3.bf16.msra.mxu0 %v827_v46  ;;  %2261 = vmatprep.mubr.msk.bf16.mxu0 %vm2550_vm0, %v2549_v2 }
  0xb6   : >> { %2271 = vmatprep.subr.bf16.mxu0 %v2549_v2 }
  0xb7   : >> { %v1710_v13 = vpop.permute.xlu0 %1709  ;;  %v1759_v18 = vpop.permute.xlu1 %1758 }
  0xb9   : >> { %2280 = vmatmul.mubr.msk.bf16.vlgmr.msra.gmra.mrb[20].mxu1 %vm409_vm2, %v2099_v48 }
  0xba   : >> { %2290 = vmatpush3.bf16.msra.mxu1 %v1089_v49  ;;  %2291 = vmatprep.mubr.msk.bf16.mxu1 %vm2550_vm0, %v2549_v2 }
  0xbb   : >> { %2301 = vmatprep.subr.bf16.mxu1 %v2549_v2 }
  0xbc   : >> { %2262 = vmatmul.mubr.msk.bf16.vlgmr.msra.gmra.mrb[16].mxu0 %vm409_vm2, %v2092_v50 }
  0xbd   : >> { %2272 = vmatpush3.bf16.msra.mxu0 %v932_v51  ;;  %2273 = vmatprep.mubr.msk.bf16.mxu0 %vm2550_vm0, %v2549_v2 }
  0xbe   : >> { %2283 = vmatprep.subr.bf16.mxu0 %v2549_v2 }
  0xc1   : >> { %2292 = vmatmul.mubr.msk.bf16.vlgmr.msra.gmra.mrb[24].mxu1 %vm409_vm2, %v2105_v52 }
  0xc2   : >> { %2302 = vmatpush3.bf16.msra.mxu1 %v1192_v53  ;;  %2303 = vmatprep.mubr.msk.bf16.mxu1 %vm2550_vm0, %v2549_v2 }
  0xc3   : >> { %2313 = vmatprep.subr.bf16.mxu1 %v2549_v2 }
  0xc4   : >> { %2274 = vmatmul.mubr.msk.bf16.vlgmr.msra.gmra.mrb[20].mxu0 %vm409_vm2, %v2096_v55 }
  0xc5   : >> { %2284 = vmatpush3.bf16.msra.mxu0 %v1035_v56  ;;  %2285 = vmatprep.mubr.msk.bf16.mxu0 %vm2550_vm0, %v2549_v2 }
  0xc6   : >> { %2295 = vmatprep.subr.bf16.mxu0 %v2549_v2 }
  0xc9   : >> { %2304 = vmatmul.mubr.msk.bf16.vlgmr.msra.gmra.mrb[28].mxu1 %vm409_vm2, %v2112_v58 }
  0xca   : >> { %2314 = vmatpush3.bf16.msra.mxu1 %v1297_v59  ;;  %2315 = vmatprep.mubr.msk.bf16.mxu1 %vm2550_vm0, %v2549_v2 }
  0xcb   : >> { %2325 = vmatprep.subr.bf16.mxu1 %v2549_v2 }
  0xcc   : >> { %2286 = vmatmul.mubr.msk.bf16.vlgmr.msra.gmra.mrb[24].mxu0 %vm409_vm2, %v2103_v60 }
  0xcd   : >> { %2296 = vmatpush3.bf16.msra.mxu0 %v1140_v61  ;;  %2297 = vmatprep.mubr.msk.bf16.mxu0 %vm2550_vm0, %v2549_v2 }
  0xce   : >> { %2307 = vmatprep.subr.bf16.mxu0 %v2549_v2 }
  0xd1   : >> { %2316 = vmatmul.mubr.msk.bf16.vlgmr.msra.gmra.mrb[32].mxu1 %vm409_vm2, %v2117_v63 }
  0xd2   : >> { %2326 = vmatpush3.bf16.msra.mxu1 %v1400_v0  ;;  %2327 = vmatprep.mubr.msk.bf16.mxu1 %vm2550_vm0, %v2549_v2 }
  0xd3   : >> { %2337 = vmatprep.subr.bf16.mxu1 %v2549_v2 }
  0xd4   : >> { %2298 = vmatmul.mubr.msk.bf16.vlgmr.msra.gmra.mrb[28].mxu0 %vm409_vm2, %v2108_v3 }
  0xd5   : >> { %2308 = vmatpush3.bf16.msra.mxu0 %v1246_v4  ;;  %2309 = vmatprep.mubr.msk.bf16.mxu0 %vm2550_vm0, %v2549_v2 }
  0xd6   : >> { %2319 = vmatprep.subr.bf16.mxu0 %v2549_v2 }
  0xd9   : >> { %2328 = vmatmul.mubr.msk.bf16.vlgmr.msra.gmra.mrb[36].mxu1 %vm1352_vm3, %v2123_v5 }
  0xda   : >> { %2338 = vmatpush3.bf16.msra.mxu1 %v2763_v20  ;;  %2339 = vmatprep.mubr.msk.bf16.mxu1 %vm2550_vm0, %v2549_v2 }
  0xdb   : >> { %2349 = vmatprep.subr.bf16.mxu1 %v2549_v2 }
  0xdc   : >> { %2310 = vmatmul.mubr.msk.bf16.vlgmr.msra.gmra.mrb[32].mxu0 %vm409_vm2, %v2114_v6 }
  0xdd   : >> { %2320 = vmatpush3.bf16.msra.mxu0 %v2756_v19  ;;  %2321 = vmatprep.mubr.msk.bf16.mxu0 %vm2550_vm0, %v2549_v2 }
  0xde   : >> { %2331 = vmatprep.subr.bf16.mxu0 %v2549_v2 }
  0xe1   : >> { %2340 = vmatmul.mubr.msk.bf16.vlgmr.msra.gmra.mrb[40].mxu1 %vm1352_vm3, %v2130_v8 }
  0xe2   : >> { %2350 = vmatpush3.bf16.msra.mxu1 %v1604_v9  ;;  %2351 = vmatprep.mubr.msk.bf16.mxu1 %vm2550_vm0, %v2549_v2 }
  0xe3   : >> { %2361 = vmatprep.subr.bf16.mxu1 %v2549_v2 }
  0xe4   : >> { %2322 = vmatmul.mubr.msk.bf16.vlgmr.msra.gmra.mrb[36].mxu0 %vm1352_vm3, %v1345_v10 }
  0xe5   : >> { %2332 = vmatpush3.bf16.msra.mxu0 %v1449_v7  ;;  %2333 = vmatprep.mubr.msk.bf16.mxu0 %vm2550_vm0, %v2549_v2 }
  0xe6   : >> { %2343 = vmatprep.subr.bf16.mxu0 %v2549_v2 }
  0xe9   : >> { %2352 = vmatmul.mubr.msk.bf16.vlgmr.msra.gmra.mrb[44].mxu1 %vm1352_vm3, %v2135_v12 }
  0xea   : >> { %2362 = vmatpush3.bf16.msra.mxu1 %v1710_v13  ;;  %2363 = vmatprep.mubr.msk.bf16.mxu1 %vm2550_vm0, %v2549_v2 }
  0xeb   : >> { %2373 = vmatprep.subr.mxu1 %v2549_v2 }
  0xec   : >> { %2334 = vmatmul.mubr.msk.bf16.vlgmr.msra.gmra.mrb[40].mxu0 %vm1352_vm3, %v2125_v14 }
  0xed   : >> { %2344 = vmatpush3.bf16.msra.mxu0 %v1555_v11  ;;  %2345 = vmatprep.mubr.msk.bf16.mxu0 %vm2550_vm0, %v2549_v2 }
  0xee   : >> { %2355 = vmatprep.subr.bf16.mxu0 %v2549_v2 }
  0xf1   : >> { %2364 = vmatmul.mubr.msk.bf16.vlgmr.msra.gmra.mrb[48].mxu1 %vm1352_vm3, %v2143_v15 }
  0xf2   : >> { %2375 = vmatprep.mubr.msk.f32.mxu1 %vm2550_vm0, %v2549_v2 }
  0xf4   : >> { %2346 = vmatmul.mubr.msk.bf16.vlgmr.msra.gmra.mrb[44].mxu0 %vm1352_vm3, %v2133_v16 }
  0xf5   : >> { %2356 = vmatpush3.bf16.msra.mxu0 %v2770_v21  ;;  %2357 = vmatprep.mubr.msk.bf16.mxu0 %vm2550_vm0, %v2549_v2 }
  0xf6   : >> { %2367 = vmatprep.subr.bf16.mxu0 %v2549_v2 }
  0xfa   : >> { %v497_v19 = vpop.f32.mrb[0].mxu1 }
  0xfb   : >> { %v2221_v20 = vpop.f32.mrb[1].mxu1 }
  0xfc   : >> { %2358 = vmatmul.mubr.msk.bf16.vlgmr.msra.gmra.mrb[48].mxu0 %vm1352_vm3, %v2140_v17  ;;  %v500_v22 = vpop.f32.mrb[2].mxu1 }
  0xfd   : >> { %2368 = vmatpush3.bf16.msra.mxu0 %v1759_v18  ;;  %2369 = vmatprep.mubr.msk.bf16.mxu0 %vm2550_vm0, %v2549_v2  ;;  %v2222_v21 = vpop.f32.mrb[3].mxu1 }
 0x102   : >> { %v600_v24 = vpop.f32.mrb[4].mxu1 }
 0x103   : >> { %v2233_v25 = vpop.f32.mrb[5].mxu1 }
 0x104   : >> { %2370 = vmatmul.mubr.msk.bf16.vlgmr.msra.gmra.mrb[52].mxu0 %vm1352_vm3, %v2145_v23  ;;  %v603_v26 = vpop.f32.mrb[6].mxu1 }
 0x105   : >> { %v2234_v27 = vpop.f32.mrb[7].mxu1 }
 0x16f   : >> { %v451_v29 = vpop.f32.mrb[0].mxu0 }
 0x170   : >> { %v498_v30 = vadd.f32 %v497_v19, %v451_v29  ;;  %v2215_v31 = vpop.f32.mrb[1].mxu0 }
 0x171   : >> { %v454_v2 = vpop.f32.mrb[2].mxu0 }
 0x172   : >> { %v2216_v32 = vpop.f32.mrb[3].mxu0 }
 0x174   : >> { %v705_v33 = vpop.f32.mrb[8].mxu1 }
 0x175   : >> { %v2245_v34 = vpop.f32.mrb[9].mxu1 }
 0x176   : >> { %v708_v35 = vpop.f32.mrb[10].mxu1 }
 0x177   : >> { %v547_v36 = vpop.f32.mrb[4].mxu0  ;;  %v2246_v37 = vpop.f32.mrb[11].mxu1 }
 0x178   : >> { %v553_v38 = vadd.f32 %v547_v36, %v498_v30  ;;  %v2227_v39 = vpop.f32.mrb[5].mxu0 }
 0x179   : >> { %v550_v40 = vpop.f32.mrb[6].mxu0 }
 0x17a   : >> { %v606_v41 = vadd.f32 %v600_v24, %v553_v38  ;;  %v2228_v42 = vpop.f32.mrb[7].mxu0 }
 0x17c   : >> { %v812_v43 = vpop.f32.mrb[12].mxu1 }
 0x17d   : >> { %v2257_v44 = vpop.f32.mrb[13].mxu1 }
 0x17e   : >> { %v815_v45 = vpop.f32.mrb[14].mxu1 }
 0x17f   : >> { %v654_v46 = vpop.f32.mrb[8].mxu0  ;;  %v2258_v47 = vpop.f32.mrb[15].mxu1 }
 0x180   : >> { %v660_v48 = vadd.f32 %v654_v46, %v606_v41  ;;  %v2239_v49 = vpop.f32.mrb[9].mxu0 }
 0x181   : >> { %v657_v50 = vpop.f32.mrb[10].mxu0 }
 0x182   : >> { %v711_v51 = vadd.f32 %v705_v33, %v660_v48  ;;  %v2240_v52 = vpop.f32.mrb[11].mxu0 }
 0x184   : >> { %v914_v53 = vpop.f32.mrb[16].mxu1 }
 0x185   : >> { %v2269_v54 = vpop.f32.mrb[17].mxu1 }
 0x186   : >> { %v917_v55 = vpop.f32.mrb[18].mxu1 }
 0x187   : >> { %v758_v56 = vpop.f32.mrb[12].mxu0  ;;  %v2270_v57 = vpop.f32.mrb[19].mxu1 }
 0x188   : >> { %v764_v58 = vadd.f32 %v758_v56, %v711_v51  ;;  %v2251_v59 = vpop.f32.mrb[13].mxu0 }
 0x189   : >> { %v761_v60 = vpop.f32.mrb[14].mxu0 }
 0x18a   : >> { %v818_v61 = vadd.f32 %v812_v43, %v764_v58  ;;  %v2252_v62 = vpop.f32.mrb[15].mxu0 }
 0x18c   : >> { %v1019_v63 = vpop.f32.mrb[20].mxu1 }
 0x18d   : >> { %v2281_v0 = vpop.f32.mrb[21].mxu1 }
 0x18e   : >> { %v1022_v3 = vpop.f32.mrb[22].mxu1 }
 0x18f   : >> { %v863_v4 = vpop.f32.mrb[16].mxu0  ;;  %v2282_v5 = vpop.f32.mrb[23].mxu1 }
 0x190   : >> { %v869_v6 = vadd.f32 %v863_v4, %v818_v61  ;;  %v2263_v7 = vpop.f32.mrb[17].mxu0 }
 0x191   : >> { %v866_v8 = vpop.f32.mrb[18].mxu0 }
 0x192   : >> { %v920_v9 = vadd.f32 %v914_v53, %v869_v6  ;;  %v2264_v10 = vpop.f32.mrb[19].mxu0 }
 0x194   : >> { %v1125_v11 = vpop.f32.mrb[24].mxu1 }
 0x195   : >> { %v2293_v12 = vpop.f32.mrb[25].mxu1 }
 0x196   : >> { %v1128_v13 = vpop.f32.mrb[26].mxu1 }
 0x197   : >> { %v968_v14 = vpop.f32.mrb[20].mxu0  ;;  %v2294_v15 = vpop.f32.mrb[27].mxu1 }
 0x198   : >> { %v974_v16 = vadd.f32 %v968_v14, %v920_v9  ;;  %v2275_v17 = vpop.f32.mrb[21].mxu0 }
 0x199   : >> { %v971_v18 = vpop.f32.mrb[22].mxu0 }
 0x19a   : >> { %v1025_v19 = vadd.f32 %v1019_v63, %v974_v16  ;;  %v2276_v20 = vpop.f32.mrb[23].mxu0 }
 0x19c   : >> { %v1228_v22 = vpop.f32.mrb[28].mxu1 }
 0x19d   : >> { %v2305_v21 = vpop.f32.mrb[29].mxu1 }
 0x19e   : >> { %v1231_v23 = vpop.f32.mrb[30].mxu1 }
 0x19f   : >> { %v1071_v24 = vpop.f32.mrb[24].mxu0  ;;  %v2306_v25 = vpop.f32.mrb[31].mxu1 }
 0x1a0   : >> { %v1077_v26 = vadd.f32 %v1071_v24, %v1025_v19  ;;  %v2287_v27 = vpop.f32.mrb[25].mxu0  ;;  %v1808_v25 = vpop.permute.xlu0 %1807 }
 0x1a1   : >> { %v1074_v28 = vpop.f32.mrb[26].mxu0 }
 0x1a2   : >> { %v1131_v29 = vadd.f32 %v1125_v11, %v1077_v26  ;;  %v2288_v30 = vpop.f32.mrb[27].mxu0 }
 0x1a4   : >> { %v1333_v31 = vpop.f32.mrb[32].mxu1 }
 0x1a5   : >> { %v2317_v2 = vpop.f32.mrb[33].mxu1 }
 0x1a6   : >> { %v1336_v32 = vpop.f32.mrb[34].mxu1  ;;  %v1812_v2 = vld [vmem:[%s3047_s7] sm:$0x1] }
 0x1a7   : >> { %v1176_v33 = vpop.f32.mrb[28].mxu0  ;;  %v2318_v34 = vpop.f32.mrb[35].mxu1  ;;  %v1819_v32 = vlaneseq }
 0x1a8   : >> { %v1182_v35 = vadd.f32 %v1176_v33, %v1131_v29  ;;  %v2299_v36 = vpop.f32.mrb[29].mxu0 }
 0x1a9   : >> { %v1179_v37 = vpop.f32.mrb[30].mxu0  ;;  %v1820_v33 = vshrl.u32 %v1819_v32, 7 }
 0x1aa   : >> { %v1234_v38 = vadd.f32 %v1228_v22, %v1182_v35  ;;  %v2300_v39 = vpop.f32.mrb[31].mxu0  ;;  %v1817_v35 = vpop.permute.xlu1 %1816 }
 0x1ab   : >> { %v1821_v34 = vsub.s32 0, %v1820_v33 }
 0x1ac   : >> { %v1439_v40 = vpop.f32.mrb[36].mxu1 }
 0x1ad   : >> { %v2329_v41 = vpop.f32.mrb[37].mxu1  ;;  %v1822_v36 = vrot.slane %v1817_v35, %v1821_v34 }
 0x1ae   : >> { %v1442_v42 = vpop.f32.mrb[38].mxu1 }
 0x1af   : >> { %v1282_v43 = vpop.f32.mrb[32].mxu0  ;;  %v2330_v44 = vpop.f32.mrb[39].mxu1 }
 0x1b0   : >> { %v1288_v45 = vadd.f32 %v1282_v43, %v1234_v38  ;;  %v2311_v46 = vpop.f32.mrb[33].mxu0 }
 0x1b1   : >> { %v1285_v47 = vpop.f32.mrb[34].mxu0 }
 0x1b2   : >> { %v1339_v48 = vadd.f32 %v1333_v31, %v1288_v45  ;;  %v2312_v49 = vpop.f32.mrb[35].mxu0 }
 0x1b4   : >> { %v1545_v50 = vpop.f32.mrb[40].mxu1 }
 0x1b5   : >> { %v2341_v51 = vpop.f32.mrb[41].mxu1 }
 0x1b6   : >> { %v1548_v52 = vpop.f32.mrb[42].mxu1 }
 0x1b7   : >> { %v1390_v53 = vpop.f32.mrb[36].mxu0  ;;  %v2342_v54 = vpop.f32.mrb[43].mxu1 }
 0x1b8   : >> { %v1396_v55 = vadd.f32 %v1390_v53, %v1339_v48  ;;  %v2323_v56 = vpop.f32.mrb[37].mxu0 }
 0x1b9   : >> { %v1393_v57 = vpop.f32.mrb[38].mxu0 }
 0x1ba   : >> { %v1445_v58 = vadd.f32 %v1439_v40, %v1396_v55  ;;  %v2324_v59 = vpop.f32.mrb[39].mxu0 }
 0x1bc   : >> { %v1643_v60 = vpop.f32.mrb[44].mxu1 }
 0x1bd   : >> { %v2353_v61 = vpop.f32.mrb[45].mxu1 }
 0x1be   : >> { %v1646_v62 = vpop.f32.mrb[46].mxu1 }
 0x1bf   : >> { %v1488_v63 = vpop.f32.mrb[40].mxu0  ;;  %v2354_v0 = vpop.f32.mrb[47].mxu1 }
 0x1c0   : >> { %v1494_v3 = vadd.f32 %v1488_v63, %v1445_v58  ;;  %v2335_v4 = vpop.f32.mrb[41].mxu0 }
 0x1c1   : >> { %v1491_v5 = vpop.f32.mrb[42].mxu0 }
 0x1c2   : >> { %v1551_v6 = vadd.f32 %v1545_v50, %v1494_v3  ;;  %v2336_v7 = vpop.f32.mrb[43].mxu0 }
 0x1c4   : >> { %v1749_v8 = vpop.f32.mrb[48].mxu1 }
 0x1c5   : >> { %v2365_v9 = vpop.f32.mrb[49].mxu1 }
 0x1c6   : >> { %v1752_v10 = vpop.f32.mrb[50].mxu1 }
 0x1c7   : >> { %v1594_v11 = vpop.f32.mrb[44].mxu0  ;;  %v2366_v12 = vpop.f32.mrb[51].mxu1 }
 0x1c8   : >> { %v1600_v13 = vadd.f32 %v1594_v11, %v1551_v6  ;;  %v2347_v14 = vpop.f32.mrb[45].mxu0 }
 0x1c9   : >> { %v1597_v15 = vpop.f32.mrb[46].mxu0 }
 0x1ca   : >> { %v1649_v16 = vadd.f32 %v1643_v60, %v1600_v13  ;;  %v2348_v17 = vpop.f32.mrb[47].mxu0 }
 0x1cf   : >> { %v1700_v18 = vpop.f32.mrb[48].mxu0 }
 0x1d0   : >> { %v1706_v19 = vadd.f32 %v1700_v18, %v1649_v16  ;;  %v2359_v20 = vpop.f32.mrb[49].mxu0 }
 0x1d1   : >> { %v1703_v22 = vpop.f32.mrb[50].mxu0 }
 0x1d2   : >> { %v1755_v21 = vadd.f32 %v1749_v8, %v1706_v19  ;;  %v2360_v23 = vpop.f32.mrb[51].mxu0 }
 0x1d7   : >> { %v1798_v24 = vpop.f32.mrb[52].mxu0 }
 0x1d8   : >> { %v1804_v26 = vadd.f32 %v1798_v24, %v1755_v21  ;;  %v2371_v27 = vpop.f32.mrb[53].mxu0 }
 0x1d9   : >> { %v1801_v28 = vpop.f32.mrb[54].mxu0 }
 0x1da   : >> { %v1810_v29 = vadd.f32 %v1808_v25, %v1804_v26  ;;  %v2372_v30 = vpop.f32.mrb[55].mxu0 }
 0x1dc   : >> { %v1811_v31 = vmax.f32 %v1810_v29, 0.0 }
 0x1de   : >> { %2374 = vmatpush3.msra.mxu1 %v1811_v31 }
 0x1df   : >> { %2376 = vmatmul.mubr.msk.f32.vlgmr.msra.gmra.mrb[52].mxu1 %vm409_vm2, %v1812_v2 }
 0x2af   : > { %395 = sbr.rel (!%p393_p12) target bundleno = 32 (0x20), region = 138 }
 0x2b2   : >> { %v1892_v37 = vpop.f32.mrb[52].mxu1 }
 0x2b3   : >> { %v1893_v38 = vadd.f32 %v1892_v37, %v1822_v36  ;;  %v2377_v39 = vpop.f32.mrb[53].mxu1 }
 0x2b5   : >> { %1898 = vst.msk [vmem:[%s1896_s28] sm:$0x1] %vm1897_vm4, %v1893_v38 }
 0x2b6   : > { %2474 = shalt.err (!%p2471_p6)
}
 0x2b7   : > { %s2475_s24 = scalar_lea.hbm %s2986_s10, 256  ;;  %s2479_s26 = scalar_lea.hbm %s3049_s9, 512 }
 0x2b8   : > { %p2476_p7 = scmp.ne.s32.totalorder %s2986_s10, %s2475_s24  ;;  %p2480_p11 = scmp.lt.u32.totalorder %s2986_s10, %s3049_s9 }
 0x2b9   : > { %p2481_p12 = scmp.lt.u32.totalorder %s2479_s26, %s2475_s24  ;;  %p2483_p0 = scmp.lt.u32.totalorder %s2475_s24, %s2986_s10 }
 0x2ba   : > { %p2477_p9 = pnand %p2476_p7, %p2650_p4 }
 0x2bb   : > { %p2482_p13 = por %p2481_p12, %p2480_p11 }
 0x2bc   : > { %p2478_p10 = pneg %p2477_p9 }
 0x2bd   : > { %p2484_p1 = por %p2483_p0, %p2482_p13 }
 0x2bf   : > { %p2485_p2 = pnand %p2484_p1, %p2478_p10 }
 0x2c1   : > { %2488 = shalt.err (!%p2485_p2)
}
 0x2c2   : > { %s2555_s30 = smov 16   ;;  %s2556_s19 = smov 1  }
 0x2c3   : > { %2380 = dma.vmem_to_hbm [thread:$0]  (%p2650_p4), %s2990_s8, 256, %s2986_s10, %s2994_s15, %s2555_s30, %s2555_s30, %s2556_s19  }
 0x2c4 PF: > { %p2386_p3 = scmp.ge.s32.totalorder %s2543_s16, 2  ;;  %s1930_s21 = sand.u32 1, %s2523_s11  }
 0x2c5   : > { %s1931_s6 = scalar_lea.sflag [#allocation4], %s1930_s21 }
 0x2c6   : > { %p2383_p5 = pnand %p2386_p3, %p2657_p8 }
 0x2c8   : > { %2518 = dma.done.wait (!%p2383_p5), %s1931_s6, 256  }
 0x2c9   : > { %2520 = vsyncadd (!%p2383_p5), %s1931_s6, 4294967040  ;;  %s24_s16 = sadd.s32 1, %s2543_s16   ;;  %s3060_s14 = sld [smem:[#allocation6_spill]] }
 0x2ca   : > { %p21_p6 = scmp.ge.s32.totalorder %s24_s16, 4   ;;  %s3061_s15 = sld [smem:[#allocation7_spill]] }
 0x2cb   : > { %s3062_s11 = smov %s2527_s12  ;;  %s3063_s12 = smov %s2531_s13 }
 0x2cc   : > { %s3064_s13 = smov %s2663_s23  ;;  %23 = sbr.rel (!%p21_p6) target bundleno = 7 (0x7), region = 149 }
 0x2d3   :  { %1936 = vsyncpa [#allocation4], 1 }
 0x2d4   :  { %1938 = vsyncpa [#allocation4 + $0x1], 1 }

</bundles_post_ra>
